<compile_context>
chip_gen: v5e
topology: v5e:2x2
jax: 0.10.0
libtpu: 0.0.40
codegen_flags: <defaults>
</compile_context>

<pallas_src>
import functools

import jax
import jax.numpy as jnp
from jax import lax
from jax.experimental import pallas as pl
from jax.experimental.pallas import tpu as pltpu

EPS = 1e-5
DIM_IN = 28 * 28                                   # 784
HIDDENS = [392, 196, 98, 49, 32]
N_CODES = 16
LAYER_DIMS = [DIM_IN] + HIDDENS + [N_CODES]        # 784,392,196,98,49,32,16
N_LAYERS = 6
N_BN = 5


def _round_up(x, m):
    return (x + m - 1) // m * m


# Lane-dense padded feature dims (output dims padded to multiples of 128).
PAD_DIMS = [DIM_IN] + [_round_up(d, 128) for d in LAYER_DIMS[1:]]
#          [784, 512, 256, 128, 128, 128, 128]

# Whole-batch-in-VMEM plan: activations + weights + temporaries stay well under
# the v7x 64 MiB physical VMEM (and far under v5e/v6e's 128 MiB).
MAX_FUSED_ROWS = 2048
VMEM_LIMIT_BYTES = 48 * 1024 * 1024

_MATMUL_FLOPS_PER_ROW = 2 * sum(PAD_DIMS[i] * PAD_DIMS[i + 1]
                                for i in range(N_LAYERS))
_TANH_PER_ROW = sum(PAD_DIMS[1:])
_WEIGHT_BYTES = sum(PAD_DIMS[i] * PAD_DIMS[i + 1] for i in range(N_LAYERS)) * 2
_BIAS_BYTES = sum(PAD_DIMS[1:]) * 4


# --------------------------------- kernel -----------------------------------


def _encoder_kernel(x_ref,
                    w0_ref, w1_ref, w2_ref, w3_ref, w4_ref, w5_ref,
                    b0_ref, b1_ref, b2_ref, b3_ref, b4_ref, b5_ref,
                    gamma_ref, beta_ref,
                    o_ref, *, n_valid, b_pad):
    """Whole encoder in one pass: 6 fused [matmul (+BN +tanh)] stages."""
    w_refs = (w0_ref, w1_ref, w2_ref, w3_ref, w4_ref, w5_ref)
    b_refs = (b0_ref, b1_ref, b2_ref, b3_ref, b4_ref, b5_ref)

    h = x_ref[...]                                         # (b_pad, 784) f32
    need_row_mask = (b_pad != n_valid)

    for l in range(N_LAYERS):
        # Linear: bf16 operands, f32 MXU accumulation.  Padded weight rows are
        # zero, so any garbage in padded activation columns is harmless.
        z = jnp.dot(h.astype(jnp.bfloat16), w_refs[l][...],
                    preferred_element_type=jnp.float32) + b_refs[l][...]

        if l == N_LAYERS - 1:
            o_ref[...] = jnp.tanh(z)                       # padded cols stay 0
            break

        # Full-batch BatchNorm1d(C=1) over valid rows x true columns.
        d_true = LAYER_DIMS[l + 1]
        d_pad = z.shape[1]
        inv_count = 1.0 / float(n_valid * d_true)

        mask = None
        if need_row_mask:
            mask = lax.broadcasted_iota(jnp.int32, z.shape, 0) < n_valid
        if d_pad != d_true:
            col = lax.broadcasted_iota(jnp.int32, z.shape, 1) < d_true
            mask = col if mask is None else jnp.logical_and(mask, col)
        maskf = None if mask is None else mask.astype(jnp.float32)

        zm = z if maskf is None else z * maskf             # padded entries -> 0
        col_sum = jnp.sum(zm, axis=0, keepdims=True)       # sublane reduce
        mean = jnp.sum(col_sum, axis=1, keepdims=True) * inv_count      # (1,1)

        diff = z - mean                                    # centered variance
        if maskf is not None:
            diff = diff * maskf
        dcol = jnp.sum(diff * diff, axis=0, keepdims=True)
        var = jnp.sum(dcol, axis=1, keepdims=True) * inv_count          # (1,1)

        a = gamma_ref[l] * lax.rsqrt(var + EPS)            # fold gamma/beta
        c = beta_ref[l] - mean * a
        h = jnp.tanh(z * a + c)


# ----------------------------- pallas_call wrapper ---------------------------


def _encoder_call(x2d, ws_p, bs_p, gamma, beta, *, n_valid):
    b_pad = x2d.shape[0]
    vmem_spec = pl.BlockSpec(memory_space=pltpu.MemorySpace.VMEM)
    smem_spec = pl.BlockSpec(memory_space=pltpu.MemorySpace.SMEM)

    cost = pl.CostEstimate(
        flops=b_pad * _MATMUL_FLOPS_PER_ROW,
        transcendentals=b_pad * _TANH_PER_ROW + N_BN,
        bytes_accessed=(b_pad * DIM_IN * 4 + _WEIGHT_BYTES + _BIAS_BYTES
                        + b_pad * PAD_DIMS[-1] * 4 + 2 * N_BN * 4))

    kernel = functools.partial(_encoder_kernel, n_valid=n_valid, b_pad=b_pad)
    return pl.pallas_call(
        kernel,
        out_shape=jax.ShapeDtypeStruct((b_pad, PAD_DIMS[-1]), jnp.float32),
        in_specs=([vmem_spec] * (1 + 2 * N_LAYERS)) + [smem_spec, smem_spec],
        out_specs=vmem_spec,
        compiler_params=pltpu.CompilerParams(
            vmem_limit_bytes=VMEM_LIMIT_BYTES),
        cost_estimate=cost,
    )(x2d, *ws_p, *bs_p, gamma, beta)


# ---------------------------------- forward ----------------------------------


@jax.jit
def encoder_forward(x, ws_p, bs_p, gamma, beta):
    """x: (B,1,28,28) f32 -> (codes (B,1,16), flattened input (B,1,784))."""
    B = x.shape[0]
    flat = x.reshape(B, 1, DIM_IN)                         # nn.Flatten(-2, -1)
    x2d = flat.reshape(B, DIM_IN).astype(jnp.float32)

    b_pad = _round_up(max(B, 8), 8)
    if b_pad > MAX_FUSED_ROWS:
        # TODO(synk): batch-tiled fallback (grid over batch tiles with in-kernel
        # BN partial-sum accumulation) for batches that exceed the VMEM slab.
        raise ValueError(f"batch {B} exceeds the single-shot VMEM budget")
    if b_pad != B:
        x2d = jnp.pad(x2d, ((0, b_pad - B), (0, 0)))

    codes_pad = _encoder_call(x2d, ws_p, bs_p, gamma, beta, n_valid=B)
    codes = codes_pad[:B, :N_CODES]
    return codes.reshape(B, 1, N_CODES), flat


# ----------------------------- params & references ---------------------------


def init_params(key):
    """PyTorch-style uniform(-1/sqrt(fan_in), 1/sqrt(fan_in)) init (f32 masters)."""
    ws, bs = [], []
    for i in range(N_LAYERS):
        fan_in, fan_out = LAYER_DIMS[i], LAYER_DIMS[i + 1]
        key, kw, kb = jax.random.split(key, 3)
        bound = 1.0 / (fan_in ** 0.5)
        ws.append(jax.random.uniform(kw, (fan_in, fan_out), jnp.float32,
                                     -bound, bound))
        bs.append(jax.random.uniform(kb, (1, fan_out), jnp.float32,
                                     -bound, bound))
    gamma = jnp.ones((N_BN,), jnp.float32)
    beta = jnp.zeros((N_BN,), jnp.float32)
    return ws, bs, gamma, beta
# TODO(synk): running_mean/running_var momentum updates (training-time buffer
# side effects) are not modeled; they do not affect this forward's outputs.


def prepare_params(ws, bs):
    """Zero-pad output dims to multiples of 128 and cast weights to bf16.
    Called ONCE outside the jitted forward (weights stay cached in HBM)."""
    ws_p, bs_p = [], []
    for i, (w, b) in enumerate(zip(ws, bs)):
        di, do = w.shape
        dip, dop = PAD_DIMS[i], PAD_DIMS[i + 1]
        wp = jnp.zeros((dip, dop), jnp.float32).at[:di, :do].set(w)
        bp = jnp.zeros((1, dop), jnp.float32).at[:, :do].set(b)
        ws_p.append(wp.astype(jnp.bfloat16))
        bs_p.append(bp)
    return ws_p, bs_p


def reference_forward_f32(x, ws, bs, gamma, beta):
    """Pure-JAX f32 reference matching the PyTorch (training-mode BN) module."""
    B = x.shape[0]
    flat = x.reshape(B, 1, DIM_IN)
    h = flat.reshape(B, DIM_IN)
    for i in range(N_BN):
        h = h @ ws[i] + bs[i]
        mean = jnp.mean(h)
        var = jnp.mean((h - mean) ** 2)
        h = (h - mean) / jnp.sqrt(var + EPS) * gamma[i] + beta[i]
        h = jnp.tanh(h)
    h = jnp.tanh(h @ ws[5] + bs[5])
    return h.reshape(B, 1, N_CODES), flat


def reference_forward_bf16(x, ws, bs, gamma, beta):
    """Reference with the same bf16-operand / f32-accumulate matmuls and
    centered-variance BN as the kernel."""
    B = x.shape[0]
    h = x.reshape(B, DIM_IN).astype(jnp.float32)
    for i in range(N_BN):
        z = jnp.dot(h.astype(jnp.bfloat16), ws[i].astype(jnp.bfloat16),
                    preferred_element_type=jnp.float32) + bs[i]
        mean = jnp.mean(z)
        var = jnp.mean((z - mean) ** 2)
        a = gamma[i] * lax.rsqrt(var + EPS)
        h = jnp.tanh(z * a + (beta[i] - mean * a))
    z = jnp.dot(h.astype(jnp.bfloat16), ws[5].astype(jnp.bfloat16),
                preferred_element_type=jnp.float32) + bs[5]
    return jnp.tanh(z).reshape(B, 1, N_CODES)


# ----------------------------------- main ------------------------------------


if __name__ == "__main__":
    key = jax.random.PRNGKey(0)
    key, kx1, kx2, kp = jax.random.split(key, 4)
    ws, bs, gamma, beta = init_params(kp)
    ws_p, bs_p = prepare_params(ws, bs)     # once, outside the jitted forward

    # Case 1: small batch, no row padding (column padding only).
    B1 = 8
    x1 = jax.random.normal(kx1, (B1, 1, 28, 28), jnp.float32)
    codes1, flat1 = encoder_forward(x1, ws_p, bs_p, gamma, beta)
    jax.block_until_ready((codes1, flat1))
    assert codes1.shape == (B1, 1, N_CODES) and flat1.shape == (B1, 1, DIM_IN)

    ref_f32_1, ref_flat1 = reference_forward_f32(x1, ws, bs, gamma, beta)
    ref_bf16_1 = reference_forward_bf16(x1, ws, bs, gamma, beta)
    assert bool(jnp.allclose(flat1, ref_flat1))
    err_tight = float(jnp.max(jnp.abs(codes1 - ref_bf16_1)))
    err_loose = float(jnp.max(jnp.abs(codes1 - ref_f32_1)))
    assert err_tight < 3e-3, f"bf16-reference mismatch: {err_tight}"
    assert err_loose < 1e-1, f"f32-reference mismatch: {err_loose}"

    # Case 2: batch not a multiple of 8 -> padded rows masked out of BN stats.
    B2 = 20
    x2 = jax.random.normal(kx2, (B2, 1, 28, 28), jnp.float32)
    codes2, flat2 = encoder_forward(x2, ws_p, bs_p, gamma, beta)
    jax.block_until_ready((codes2, flat2))
    assert codes2.shape == (B2, 1, N_CODES) and flat2.shape == (B2, 1, DIM_IN)

    ref_f32_2, ref_flat2 = reference_forward_f32(x2, ws, bs, gamma, beta)
    ref_bf16_2 = reference_forward_bf16(x2, ws, bs, gamma, beta)
    assert bool(jnp.allclose(flat2, ref_flat2))
    err_tight2 = float(jnp.max(jnp.abs(codes2 - ref_bf16_2)))
    err_loose2 = float(jnp.max(jnp.abs(codes2 - ref_f32_2)))
    assert err_tight2 < 3e-3, f"bf16-reference mismatch: {err_tight2}"
    assert err_loose2 < 1e-1, f"f32-reference mismatch: {err_loose2}"

    print("KERNEL_OK")
</pallas_src>

<mosaic_0001>
module attributes {stable_mosaic.version = 11 : i64} {
  func.func @_encoder_kernel(%arg0: memref<8x784xf32, #tpu.memory_space<vmem>>, %arg1: memref<784x512xbf16, #tpu.memory_space<vmem>>, %arg2: memref<512x256xbf16, #tpu.memory_space<vmem>>, %arg3: memref<256x128xbf16, #tpu.memory_space<vmem>>, %arg4: memref<128x128xbf16, #tpu.memory_space<vmem>>, %arg5: memref<128x128xbf16, #tpu.memory_space<vmem>>, %arg6: memref<128x128xbf16, #tpu.memory_space<vmem>>, %arg7: memref<1x512xf32, #tpu.memory_space<vmem>>, %arg8: memref<1x256xf32, #tpu.memory_space<vmem>>, %arg9: memref<1x128xf32, #tpu.memory_space<vmem>>, %arg10: memref<1x128xf32, #tpu.memory_space<vmem>>, %arg11: memref<1x128xf32, #tpu.memory_space<vmem>>, %arg12: memref<1x128xf32, #tpu.memory_space<vmem>>, %arg13: memref<5xf32, #tpu.memory_space<smem>>, %arg14: memref<5xf32, #tpu.memory_space<smem>>, %arg15: memref<8x128xf32, #tpu.memory_space<vmem>>) attributes {dimension_semantics = [], scalar_prefetch = 0 : i64, scratch_operands = 0 : i64, tpu.core_type = #tpu.core_type<tc>} {
    %c0 = arith.constant 0 : index
    %c0_0 = arith.constant 0 : index
    %0 = vector.load %arg0[%c0, %c0_0] : memref<8x784xf32, #tpu.memory_space<vmem>>, vector<8x784xf32>
    %1 = arith.truncf %0 : vector<8x784xf32> to vector<8x784xbf16>
    %c0_1 = arith.constant 0 : index
    %c0_2 = arith.constant 0 : index
    %2 = vector.load %arg1[%c0_1, %c0_2] : memref<784x512xbf16, #tpu.memory_space<vmem>>, vector<784x512xbf16>
    %cst = arith.constant dense<0.000000e+00> : vector<8x512xf32>
    %3 = tpu.matmul %1, %2, %cst {dimension_numbers = #tpu.dot_dimension_numbers<[1], [0], [0], [1], [0, 0, 1, 1], [], []>} : vector<8x784xbf16>, vector<784x512xbf16>, vector<8x512xf32> -> vector<8x512xf32>
    %c0_3 = arith.constant 0 : index
    %c0_4 = arith.constant 0 : index
    %4 = vector.load %arg7[%c0_3, %c0_4] : memref<1x512xf32, #tpu.memory_space<vmem>>, vector<1x512xf32>
    %5 = vector.broadcast %4 : vector<1x512xf32> to vector<8x512xf32>
    %6 = arith.addf %3, %5 : vector<8x512xf32>
    %7 = tpu.iota {dimensions = array<i32: 1>} : vector<8x512xi32>
    %c392_i32 = arith.constant 392 : i32
    %8 = vector.broadcast %c392_i32 : i32 to vector<8x512xi32>
    %9 = arith.cmpi slt, %7, %8 : vector<8x512xi32>
    %10 = arith.extui %9 : vector<8x512xi1> to vector<8x512xi32>
    %11 = arith.sitofp %10 : vector<8x512xi32> to vector<8x512xf32>
    %12 = arith.mulf %6, %11 : vector<8x512xf32>
    %cst_5 = arith.constant dense<0.000000e+00> : vector<512xf32>
    %13 = vector.multi_reduction <add>, %12, %cst_5 [0] : vector<8x512xf32> to vector<512xf32>
    %14 = vector.shape_cast %13 : vector<512xf32> to vector<1x512xf32>
    %cst_6 = arith.constant dense<0.000000e+00> : vector<1xf32>
    %15 = vector.multi_reduction <add>, %14, %cst_6 [1] : vector<1x512xf32> to vector<1xf32>
    %16 = vector.shape_cast %15 : vector<1xf32> to vector<1x1xf32>
    %cst_7 = arith.constant 3.18877544E-4 : f32
    %17 = vector.broadcast %cst_7 : f32 to vector<1x1xf32>
    %18 = arith.mulf %16, %17 : vector<1x1xf32>
    %19 = vector.broadcast %18 : vector<1x1xf32> to vector<8x512xf32>
    %20 = arith.subf %6, %19 : vector<8x512xf32>
    %21 = arith.mulf %20, %11 : vector<8x512xf32>
    %22 = arith.mulf %21, %21 : vector<8x512xf32>
    %cst_8 = arith.constant dense<0.000000e+00> : vector<512xf32>
    %23 = vector.multi_reduction <add>, %22, %cst_8 [0] : vector<8x512xf32> to vector<512xf32>
    %24 = vector.shape_cast %23 : vector<512xf32> to vector<1x512xf32>
    %cst_9 = arith.constant dense<0.000000e+00> : vector<1xf32>
    %25 = vector.multi_reduction <add>, %24, %cst_9 [1] : vector<1x512xf32> to vector<1xf32>
    %26 = vector.shape_cast %25 : vector<1xf32> to vector<1x1xf32>
    %cst_10 = arith.constant 3.18877544E-4 : f32
    %27 = vector.broadcast %cst_10 : f32 to vector<1x1xf32>
    %28 = arith.mulf %26, %27 : vector<1x1xf32>
    %c0_11 = arith.constant 0 : index
    %29 = memref.load %arg13[%c0_11] : memref<5xf32, #tpu.memory_space<smem>>
    %cst_12 = arith.constant 9.99999974E-6 : f32
    %30 = vector.broadcast %cst_12 : f32 to vector<1x1xf32>
    %31 = arith.addf %28, %30 : vector<1x1xf32>
    %32 = math.rsqrt %31 : vector<1x1xf32>
    %33 = vector.broadcast %29 : f32 to vector<1x1xf32>
    %34 = arith.mulf %33, %32 : vector<1x1xf32>
    %c0_13 = arith.constant 0 : index
    %35 = memref.load %arg14[%c0_13] : memref<5xf32, #tpu.memory_space<smem>>
    %36 = arith.mulf %18, %34 : vector<1x1xf32>
    %37 = vector.broadcast %35 : f32 to vector<1x1xf32>
    %38 = arith.subf %37, %36 : vector<1x1xf32>
    %39 = vector.broadcast %34 : vector<1x1xf32> to vector<8x512xf32>
    %40 = arith.mulf %6, %39 : vector<8x512xf32>
    %41 = vector.broadcast %38 : vector<1x1xf32> to vector<8x512xf32>
    %42 = arith.addf %40, %41 : vector<8x512xf32>
    %43 = math.tanh %42 : vector<8x512xf32>
    %44 = arith.truncf %43 : vector<8x512xf32> to vector<8x512xbf16>
    %c0_14 = arith.constant 0 : index
    %c0_15 = arith.constant 0 : index
    %45 = vector.load %arg2[%c0_14, %c0_15] : memref<512x256xbf16, #tpu.memory_space<vmem>>, vector<512x256xbf16>
    %cst_16 = arith.constant dense<0.000000e+00> : vector<8x256xf32>
    %46 = tpu.matmul %44, %45, %cst_16 {dimension_numbers = #tpu.dot_dimension_numbers<[1], [0], [0], [1], [0, 0, 1, 1], [], []>} : vector<8x512xbf16>, vector<512x256xbf16>, vector<8x256xf32> -> vector<8x256xf32>
    %c0_17 = arith.constant 0 : index
    %c0_18 = arith.constant 0 : index
    %47 = vector.load %arg8[%c0_17, %c0_18] : memref<1x256xf32, #tpu.memory_space<vmem>>, vector<1x256xf32>
    %48 = vector.broadcast %47 : vector<1x256xf32> to vector<8x256xf32>
    %49 = arith.addf %46, %48 : vector<8x256xf32>
    %50 = tpu.iota {dimensions = array<i32: 1>} : vector<8x256xi32>
    %c196_i32 = arith.constant 196 : i32
    %51 = vector.broadcast %c196_i32 : i32 to vector<8x256xi32>
    %52 = arith.cmpi slt, %50, %51 : vector<8x256xi32>
    %53 = arith.extui %52 : vector<8x256xi1> to vector<8x256xi32>
    %54 = arith.sitofp %53 : vector<8x256xi32> to vector<8x256xf32>
    %55 = arith.mulf %49, %54 : vector<8x256xf32>
    %cst_19 = arith.constant dense<0.000000e+00> : vector<256xf32>
    %56 = vector.multi_reduction <add>, %55, %cst_19 [0] : vector<8x256xf32> to vector<256xf32>
    %57 = vector.shape_cast %56 : vector<256xf32> to vector<1x256xf32>
    %cst_20 = arith.constant dense<0.000000e+00> : vector<1xf32>
    %58 = vector.multi_reduction <add>, %57, %cst_20 [1] : vector<1x256xf32> to vector<1xf32>
    %59 = vector.shape_cast %58 : vector<1xf32> to vector<1x1xf32>
    %cst_21 = arith.constant 6.37755089E-4 : f32
    %60 = vector.broadcast %cst_21 : f32 to vector<1x1xf32>
    %61 = arith.mulf %59, %60 : vector<1x1xf32>
    %62 = vector.broadcast %61 : vector<1x1xf32> to vector<8x256xf32>
    %63 = arith.subf %49, %62 : vector<8x256xf32>
    %64 = arith.mulf %63, %54 : vector<8x256xf32>
    %65 = arith.mulf %64, %64 : vector<8x256xf32>
    %cst_22 = arith.constant dense<0.000000e+00> : vector<256xf32>
    %66 = vector.multi_reduction <add>, %65, %cst_22 [0] : vector<8x256xf32> to vector<256xf32>
    %67 = vector.shape_cast %66 : vector<256xf32> to vector<1x256xf32>
    %cst_23 = arith.constant dense<0.000000e+00> : vector<1xf32>
    %68 = vector.multi_reduction <add>, %67, %cst_23 [1] : vector<1x256xf32> to vector<1xf32>
    %69 = vector.shape_cast %68 : vector<1xf32> to vector<1x1xf32>
    %cst_24 = arith.constant 6.37755089E-4 : f32
    %70 = vector.broadcast %cst_24 : f32 to vector<1x1xf32>
    %71 = arith.mulf %69, %70 : vector<1x1xf32>
    %c1 = arith.constant 1 : index
    %72 = memref.load %arg13[%c1] : memref<5xf32, #tpu.memory_space<smem>>
    %cst_25 = arith.constant 9.99999974E-6 : f32
    %73 = vector.broadcast %cst_25 : f32 to vector<1x1xf32>
    %74 = arith.addf %71, %73 : vector<1x1xf32>
    %75 = math.rsqrt %74 : vector<1x1xf32>
    %76 = vector.broadcast %72 : f32 to vector<1x1xf32>
    %77 = arith.mulf %76, %75 : vector<1x1xf32>
    %c1_26 = arith.constant 1 : index
    %78 = memref.load %arg14[%c1_26] : memref<5xf32, #tpu.memory_space<smem>>
    %79 = arith.mulf %61, %77 : vector<1x1xf32>
    %80 = vector.broadcast %78 : f32 to vector<1x1xf32>
    %81 = arith.subf %80, %79 : vector<1x1xf32>
    %82 = vector.broadcast %77 : vector<1x1xf32> to vector<8x256xf32>
    %83 = arith.mulf %49, %82 : vector<8x256xf32>
    %84 = vector.broadcast %81 : vector<1x1xf32> to vector<8x256xf32>
    %85 = arith.addf %83, %84 : vector<8x256xf32>
    %86 = math.tanh %85 : vector<8x256xf32>
    %87 = arith.truncf %86 : vector<8x256xf32> to vector<8x256xbf16>
    %c0_27 = arith.constant 0 : index
    %c0_28 = arith.constant 0 : index
    %88 = vector.load %arg3[%c0_27, %c0_28] : memref<256x128xbf16, #tpu.memory_space<vmem>>, vector<256x128xbf16>
    %cst_29 = arith.constant dense<0.000000e+00> : vector<8x128xf32>
    %89 = tpu.matmul %87, %88, %cst_29 {dimension_numbers = #tpu.dot_dimension_numbers<[1], [0], [0], [1], [0, 0, 1, 1], [], []>} : vector<8x256xbf16>, vector<256x128xbf16>, vector<8x128xf32> -> vector<8x128xf32>
    %c0_30 = arith.constant 0 : index
    %c0_31 = arith.constant 0 : index
    %90 = vector.load %arg9[%c0_30, %c0_31] : memref<1x128xf32, #tpu.memory_space<vmem>>, vector<1x128xf32>
    %91 = vector.broadcast %90 : vector<1x128xf32> to vector<8x128xf32>
    %92 = arith.addf %89, %91 : vector<8x128xf32>
    %93 = tpu.iota {dimensions = array<i32: 1>} : vector<8x128xi32>
    %c98_i32 = arith.constant 98 : i32
    %94 = vector.broadcast %c98_i32 : i32 to vector<8x128xi32>
    %95 = arith.cmpi slt, %93, %94 : vector<8x128xi32>
    %96 = arith.extui %95 : vector<8x128xi1> to vector<8x128xi32>
    %97 = arith.sitofp %96 : vector<8x128xi32> to vector<8x128xf32>
    %98 = arith.mulf %92, %97 : vector<8x128xf32>
    %cst_32 = arith.constant dense<0.000000e+00> : vector<128xf32>
    %99 = vector.multi_reduction <add>, %98, %cst_32 [0] : vector<8x128xf32> to vector<128xf32>
    %100 = vector.shape_cast %99 : vector<128xf32> to vector<1x128xf32>
    %cst_33 = arith.constant dense<0.000000e+00> : vector<1xf32>
    %101 = vector.multi_reduction <add>, %100, %cst_33 [1] : vector<1x128xf32> to vector<1xf32>
    %102 = vector.shape_cast %101 : vector<1xf32> to vector<1x1xf32>
    %cst_34 = arith.constant 0.00127551018 : f32
    %103 = vector.broadcast %cst_34 : f32 to vector<1x1xf32>
    %104 = arith.mulf %102, %103 : vector<1x1xf32>
    %105 = vector.broadcast %104 : vector<1x1xf32> to vector<8x128xf32>
    %106 = arith.subf %92, %105 : vector<8x128xf32>
    %107 = arith.mulf %106, %97 : vector<8x128xf32>
    %108 = arith.mulf %107, %107 : vector<8x128xf32>
    %cst_35 = arith.constant dense<0.000000e+00> : vector<128xf32>
    %109 = vector.multi_reduction <add>, %108, %cst_35 [0] : vector<8x128xf32> to vector<128xf32>
    %110 = vector.shape_cast %109 : vector<128xf32> to vector<1x128xf32>
    %cst_36 = arith.constant dense<0.000000e+00> : vector<1xf32>
    %111 = vector.multi_reduction <add>, %110, %cst_36 [1] : vector<1x128xf32> to vector<1xf32>
    %112 = vector.shape_cast %111 : vector<1xf32> to vector<1x1xf32>
    %cst_37 = arith.constant 0.00127551018 : f32
    %113 = vector.broadcast %cst_37 : f32 to vector<1x1xf32>
    %114 = arith.mulf %112, %113 : vector<1x1xf32>
    %c2 = arith.constant 2 : index
    %115 = memref.load %arg13[%c2] : memref<5xf32, #tpu.memory_space<smem>>
    %cst_38 = arith.constant 9.99999974E-6 : f32
    %116 = vector.broadcast %cst_38 : f32 to vector<1x1xf32>
    %117 = arith.addf %114, %116 : vector<1x1xf32>
    %118 = math.rsqrt %117 : vector<1x1xf32>
    %119 = vector.broadcast %115 : f32 to vector<1x1xf32>
    %120 = arith.mulf %119, %118 : vector<1x1xf32>
    %c2_39 = arith.constant 2 : index
    %121 = memref.load %arg14[%c2_39] : memref<5xf32, #tpu.memory_space<smem>>
    %122 = arith.mulf %104, %120 : vector<1x1xf32>
    %123 = vector.broadcast %121 : f32 to vector<1x1xf32>
    %124 = arith.subf %123, %122 : vector<1x1xf32>
    %125 = vector.broadcast %120 : vector<1x1xf32> to vector<8x128xf32>
    %126 = arith.mulf %92, %125 : vector<8x128xf32>
    %127 = vector.broadcast %124 : vector<1x1xf32> to vector<8x128xf32>
    %128 = arith.addf %126, %127 : vector<8x128xf32>
    %129 = math.tanh %128 : vector<8x128xf32>
    %130 = arith.truncf %129 : vector<8x128xf32> to vector<8x128xbf16>
    %c0_40 = arith.constant 0 : index
    %c0_41 = arith.constant 0 : index
    %131 = vector.load %arg4[%c0_40, %c0_41] : memref<128x128xbf16, #tpu.memory_space<vmem>>, vector<128x128xbf16>
    %cst_42 = arith.constant dense<0.000000e+00> : vector<8x128xf32>
    %132 = tpu.matmul %130, %131, %cst_42 {dimension_numbers = #tpu.dot_dimension_numbers<[1], [0], [0], [1], [0, 0, 1, 1], [], []>} : vector<8x128xbf16>, vector<128x128xbf16>, vector<8x128xf32> -> vector<8x128xf32>
    %c0_43 = arith.constant 0 : index
    %c0_44 = arith.constant 0 : index
    %133 = vector.load %arg10[%c0_43, %c0_44] : memref<1x128xf32, #tpu.memory_space<vmem>>, vector<1x128xf32>
    %134 = vector.broadcast %133 : vector<1x128xf32> to vector<8x128xf32>
    %135 = arith.addf %132, %134 : vector<8x128xf32>
    %136 = tpu.iota {dimensions = array<i32: 1>} : vector<8x128xi32>
    %c49_i32 = arith.constant 49 : i32
    %137 = vector.broadcast %c49_i32 : i32 to vector<8x128xi32>
    %138 = arith.cmpi slt, %136, %137 : vector<8x128xi32>
    %139 = arith.extui %138 : vector<8x128xi1> to vector<8x128xi32>
    %140 = arith.sitofp %139 : vector<8x128xi32> to vector<8x128xf32>
    %141 = arith.mulf %135, %140 : vector<8x128xf32>
    %cst_45 = arith.constant dense<0.000000e+00> : vector<128xf32>
    %142 = vector.multi_reduction <add>, %141, %cst_45 [0] : vector<8x128xf32> to vector<128xf32>
    %143 = vector.shape_cast %142 : vector<128xf32> to vector<1x128xf32>
    %cst_46 = arith.constant dense<0.000000e+00> : vector<1xf32>
    %144 = vector.multi_reduction <add>, %143, %cst_46 [1] : vector<1x128xf32> to vector<1xf32>
    %145 = vector.shape_cast %144 : vector<1xf32> to vector<1x1xf32>
    %cst_47 = arith.constant 0.00255102036 : f32
    %146 = vector.broadcast %cst_47 : f32 to vector<1x1xf32>
    %147 = arith.mulf %145, %146 : vector<1x1xf32>
    %148 = vector.broadcast %147 : vector<1x1xf32> to vector<8x128xf32>
    %149 = arith.subf %135, %148 : vector<8x128xf32>
    %150 = arith.mulf %149, %140 : vector<8x128xf32>
    %151 = arith.mulf %150, %150 : vector<8x128xf32>
    %cst_48 = arith.constant dense<0.000000e+00> : vector<128xf32>
    %152 = vector.multi_reduction <add>, %151, %cst_48 [0] : vector<8x128xf32> to vector<128xf32>
    %153 = vector.shape_cast %152 : vector<128xf32> to vector<1x128xf32>
    %cst_49 = arith.constant dense<0.000000e+00> : vector<1xf32>
    %154 = vector.multi_reduction <add>, %153, %cst_49 [1] : vector<1x128xf32> to vector<1xf32>
    %155 = vector.shape_cast %154 : vector<1xf32> to vector<1x1xf32>
    %cst_50 = arith.constant 0.00255102036 : f32
    %156 = vector.broadcast %cst_50 : f32 to vector<1x1xf32>
    %157 = arith.mulf %155, %156 : vector<1x1xf32>
    %c3 = arith.constant 3 : index
    %158 = memref.load %arg13[%c3] : memref<5xf32, #tpu.memory_space<smem>>
    %cst_51 = arith.constant 9.99999974E-6 : f32
    %159 = vector.broadcast %cst_51 : f32 to vector<1x1xf32>
    %160 = arith.addf %157, %159 : vector<1x1xf32>
    %161 = math.rsqrt %160 : vector<1x1xf32>
    %162 = vector.broadcast %158 : f32 to vector<1x1xf32>
    %163 = arith.mulf %162, %161 : vector<1x1xf32>
    %c3_52 = arith.constant 3 : index
    %164 = memref.load %arg14[%c3_52] : memref<5xf32, #tpu.memory_space<smem>>
    %165 = arith.mulf %147, %163 : vector<1x1xf32>
    %166 = vector.broadcast %164 : f32 to vector<1x1xf32>
    %167 = arith.subf %166, %165 : vector<1x1xf32>
    %168 = vector.broadcast %163 : vector<1x1xf32> to vector<8x128xf32>
    %169 = arith.mulf %135, %168 : vector<8x128xf32>
    %170 = vector.broadcast %167 : vector<1x1xf32> to vector<8x128xf32>
    %171 = arith.addf %169, %170 : vector<8x128xf32>
    %172 = math.tanh %171 : vector<8x128xf32>
    %173 = arith.truncf %172 : vector<8x128xf32> to vector<8x128xbf16>
    %c0_53 = arith.constant 0 : index
    %c0_54 = arith.constant 0 : index
    %174 = vector.load %arg5[%c0_53, %c0_54] : memref<128x128xbf16, #tpu.memory_space<vmem>>, vector<128x128xbf16>
    %cst_55 = arith.constant dense<0.000000e+00> : vector<8x128xf32>
    %175 = tpu.matmul %173, %174, %cst_55 {dimension_numbers = #tpu.dot_dimension_numbers<[1], [0], [0], [1], [0, 0, 1, 1], [], []>} : vector<8x128xbf16>, vector<128x128xbf16>, vector<8x128xf32> -> vector<8x128xf32>
    %c0_56 = arith.constant 0 : index
    %c0_57 = arith.constant 0 : index
    %176 = vector.load %arg11[%c0_56, %c0_57] : memref<1x128xf32, #tpu.memory_space<vmem>>, vector<1x128xf32>
    %177 = vector.broadcast %176 : vector<1x128xf32> to vector<8x128xf32>
    %178 = arith.addf %175, %177 : vector<8x128xf32>
    %179 = tpu.iota {dimensions = array<i32: 1>} : vector<8x128xi32>
    %c32_i32 = arith.constant 32 : i32
    %180 = vector.broadcast %c32_i32 : i32 to vector<8x128xi32>
    %181 = arith.cmpi slt, %179, %180 : vector<8x128xi32>
    %182 = arith.extui %181 : vector<8x128xi1> to vector<8x128xi32>
    %183 = arith.sitofp %182 : vector<8x128xi32> to vector<8x128xf32>
    %184 = arith.mulf %178, %183 : vector<8x128xf32>
    %cst_58 = arith.constant dense<0.000000e+00> : vector<128xf32>
    %185 = vector.multi_reduction <add>, %184, %cst_58 [0] : vector<8x128xf32> to vector<128xf32>
    %186 = vector.shape_cast %185 : vector<128xf32> to vector<1x128xf32>
    %cst_59 = arith.constant dense<0.000000e+00> : vector<1xf32>
    %187 = vector.multi_reduction <add>, %186, %cst_59 [1] : vector<1x128xf32> to vector<1xf32>
    %188 = vector.shape_cast %187 : vector<1xf32> to vector<1x1xf32>
    %cst_60 = arith.constant 3.906250e-03 : f32
    %189 = vector.broadcast %cst_60 : f32 to vector<1x1xf32>
    %190 = arith.mulf %188, %189 : vector<1x1xf32>
    %191 = vector.broadcast %190 : vector<1x1xf32> to vector<8x128xf32>
    %192 = arith.subf %178, %191 : vector<8x128xf32>
    %193 = arith.mulf %192, %183 : vector<8x128xf32>
    %194 = arith.mulf %193, %193 : vector<8x128xf32>
    %cst_61 = arith.constant dense<0.000000e+00> : vector<128xf32>
    %195 = vector.multi_reduction <add>, %194, %cst_61 [0] : vector<8x128xf32> to vector<128xf32>
    %196 = vector.shape_cast %195 : vector<128xf32> to vector<1x128xf32>
    %cst_62 = arith.constant dense<0.000000e+00> : vector<1xf32>
    %197 = vector.multi_reduction <add>, %196, %cst_62 [1] : vector<1x128xf32> to vector<1xf32>
    %198 = vector.shape_cast %197 : vector<1xf32> to vector<1x1xf32>
    %cst_63 = arith.constant 3.906250e-03 : f32
    %199 = vector.broadcast %cst_63 : f32 to vector<1x1xf32>
    %200 = arith.mulf %198, %199 : vector<1x1xf32>
    %c4 = arith.constant 4 : index
    %201 = memref.load %arg13[%c4] : memref<5xf32, #tpu.memory_space<smem>>
    %cst_64 = arith.constant 9.99999974E-6 : f32
    %202 = vector.broadcast %cst_64 : f32 to vector<1x1xf32>
    %203 = arith.addf %200, %202 : vector<1x1xf32>
    %204 = math.rsqrt %203 : vector<1x1xf32>
    %205 = vector.broadcast %201 : f32 to vector<1x1xf32>
    %206 = arith.mulf %205, %204 : vector<1x1xf32>
    %c4_65 = arith.constant 4 : index
    %207 = memref.load %arg14[%c4_65] : memref<5xf32, #tpu.memory_space<smem>>
    %208 = arith.mulf %190, %206 : vector<1x1xf32>
    %209 = vector.broadcast %207 : f32 to vector<1x1xf32>
    %210 = arith.subf %209, %208 : vector<1x1xf32>
    %211 = vector.broadcast %206 : vector<1x1xf32> to vector<8x128xf32>
    %212 = arith.mulf %178, %211 : vector<8x128xf32>
    %213 = vector.broadcast %210 : vector<1x1xf32> to vector<8x128xf32>
    %214 = arith.addf %212, %213 : vector<8x128xf32>
    %215 = math.tanh %214 : vector<8x128xf32>
    %216 = arith.truncf %215 : vector<8x128xf32> to vector<8x128xbf16>
    %c0_66 = arith.constant 0 : index
    %c0_67 = arith.constant 0 : index
    %217 = vector.load %arg6[%c0_66, %c0_67] : memref<128x128xbf16, #tpu.memory_space<vmem>>, vector<128x128xbf16>
    %cst_68 = arith.constant dense<0.000000e+00> : vector<8x128xf32>
    %218 = tpu.matmul %216, %217, %cst_68 {dimension_numbers = #tpu.dot_dimension_numbers<[1], [0], [0], [1], [0, 0, 1, 1], [], []>} : vector<8x128xbf16>, vector<128x128xbf16>, vector<8x128xf32> -> vector<8x128xf32>
    %c0_69 = arith.constant 0 : index
    %c0_70 = arith.constant 0 : index
    %219 = vector.load %arg12[%c0_69, %c0_70] : memref<1x128xf32, #tpu.memory_space<vmem>>, vector<1x128xf32>
    %220 = vector.broadcast %219 : vector<1x128xf32> to vector<8x128xf32>
    %221 = arith.addf %218, %220 : vector<8x128xf32>
    %222 = math.tanh %221 : vector<8x128xf32>
    %c0_71 = arith.constant 0 : index
    %c0_72 = arith.constant 0 : index
    %223 = vector.load %arg15[%c0_71, %c0_72] : memref<8x128xf32, #tpu.memory_space<vmem>>, vector<8x128xf32>
    tpu.vector_store %arg15[%c0_71, %c0_72], %222 {strides = array<i32>} : memref<8x128xf32, #tpu.memory_space<vmem>>, vector<8x128xf32>,
    return
  }
}

</mosaic_0001>

<bundles_post_ra>
// kernel: encoder_forward.1
= control target key start
LH: loop header
LB: loop body
LE: loop exit
PB: predicated region body
PF: predicated region fallthrough
CT: control target
= control target key end

     0   :  { %20 = vsyncpa [#allocation3], 0  ;;  %s5355_s0 = inlined_call_operand.vmem [shape: f32[8,784], index: 0, kind: input, shape index: {}]   ;;  %s5356_s1 = inlined_call_operand.hbm [shape: bf16[784,512], index: 1, kind: input, shape index: {}]   ;;  %s5357_s2 = inlined_call_operand.vmem [shape: bf16[512,256], index: 2, kind: input, shape index: {}]   ;;  %s5358_s3 = inlined_call_operand.vmem [shape: bf16[256,128], index: 3, kind: input, shape index: {}]   ;;  %s5359_s4 = inlined_call_operand.vmem [shape: bf16[128,128], index: 4, kind: input, shape index: {}]   ;;  %s5360_s5 = inlined_call_operand.vmem [shape: bf16[128,128], index: 5, kind: input, shape index: {}]   ;;  %s5361_s6 = inlined_call_operand.hbm [shape: bf16[128,128], index: 6, kind: input, shape index: {}]   ;;  %s5362_s7 = inlined_call_operand.vmem [shape: f32[1,512], index: 7, kind: input, shape index: {}]   ;;  %s5363_s8 = inlined_call_operand.vmem [shape: f32[1,256], index: 8, kind: input, shape index: {}]   ;;  %s5364_s9 = inlined_call_operand.vmem [shape: f32[1,128], index: 9, kind: input, shape index: {}]   ;;  %s5365_s10 = inlined_call_operand.vmem [shape: f32[1,128], index: 10, kind: input, shape index: {}]   ;;  %s5366_s11 = inlined_call_operand.vmem [shape: f32[1,128], index: 11, kind: input, shape index: {}]   ;;  %s5367_s12 = inlined_call_operand.vmem [shape: f32[1,128], index: 12, kind: input, shape index: {}]   ;;  %s5368_s13 = inlined_call_operand.vmem [shape: f32[5], index: 13, kind: input, shape index: {}]   ;;  %s5369_s14 = inlined_call_operand.vmem [shape: f32[5], index: 14, kind: input, shape index: {}]   ;;  %s5370_s15 = inlined_call_operand.hbm [shape: f32[8,128], index: 15, kind: output, shape index: {}]  }
   0x1   :  { %21 = vsyncpa [#allocation7], 0 }
   0x2   :  { %22 = vsyncpa [#allocation5], 0 }
   0x3   :  { %23 = vsyncpa [#allocation10], 0 }
   0x4   :  { %24 = vsyncpa [#allocation4], 0  ;;  %s31_s20 = sshll.u32 %s5356_s1, 4  ;;  %s4601_s21 = smov [#allocation2]   ;;  %s32_s20 = int_to_ptr.hbm [resolvable:$true] %s31_s20 }
   0x5   :  { %s33_s22 = sshll.u32 %s4601_s21, 4  ;;  %s52_s25 = sshll.u32 %s5361_s6, 4  ;;  %s34_s22 = int_to_ptr.vmem [resolvable:$true] %s33_s22  ;;  %s53_s25 = int_to_ptr.hbm [resolvable:$true] %s52_s25 }
   0x6   :  { %s4602_s26 = smov 256   ;;  %s4603_s27 = smov 16  }
   0x7   :  { %39 = dma.hbm_to_vmem [thread:$0]  %s32_s20, 25088, %s34_s22, [#allocation3], %s4602_s26, %s4602_s26, %s4603_s27  }
   0x8   :  { %s4604_s28 = smov [#allocation6]   ;;  %s4605_s30 = smov 64  }
   0x9   :  { %s54_s29 = sshll.u32 %s4604_s28, 4  ;;  %s4606_s16 = smov 4   ;;  %s55_s29 = int_to_ptr.vmem [resolvable:$true] %s54_s29 }
   0xa   :  { %60 = dma.hbm_to_vmem [thread:$0]  %s53_s25, 1024, %s55_s29, [#allocation7], %s4605_s30, %s4605_s30, %s4606_s16  }
   0xb   :  { %s78_s18 = sshll.u32 %s5368_s13, 4  ;;  %s87_s23 = sshll.u32 %s5369_s14, 4  ;;  %s79_s18 = int_to_ptr.vmem [resolvable:$true] %s78_s18  ;;  %s88_s23 = int_to_ptr.vmem [resolvable:$true] %s87_s23 }
   0xc   :  { %s4607_s6 = smov [#allocation8]   ;;  %s4608_s20 = smov [#allocation9]  }
   0xd   :  { %81 = dma.vmem_to_smem %s79_s18, 16, %s4607_s6, [#allocation5]  }
   0xe   :  { %90 = dma.vmem_to_smem %s88_s23, 16, %s4608_s20, [#allocation10]  }
   0xf   :  { %4591 = dma.done.wait [#allocation3], 25088  }
  0x10   :  { %4592 = vsyncadd [#allocation3], 4294942208 }
  0x11   :  { %4593 = dma.done.wait [#allocation7], 1024  }
  0x12   :  { %4594 = vsyncadd [#allocation7], 4294966272 }
  0x13   :  { %4595 = dma.done.wait [#allocation5], 16  }
  0x14   :  { %4596 = vsyncadd [#allocation5], 4294967280 }
  0x15   :  { %4597 = dma.done.wait [#allocation10], 16  }
  0x16   :  { %4598 = vsyncadd [#allocation10], 4294967280 }
  0x17   :  { %107 = sfence }
  0x18   :  { %v3048_v0 = vld [vmem:[#allocation2 + $0xe0] sm:$0xf]  ;;  %v4181_v1 = vld [vmem:[#allocation2 + $0xec] sm:$0xf0]  ;;  %vm1309_vm0 = vcmask 130048   ;;  %s5099_s6 = sld [smem:[#allocation8]] }
  0x19   :  { %v3176_v2 = vld [vmem:[#allocation2 + $0x1e0] sm:$0xf]  ;;  %v3049_v3 = vor.u32 %v4181_v1, %v3048_v0  ;;  %v4213_v4 = vld [vmem:[#allocation2 + $0x1ec] sm:$0xf0]  ;;  %s5141_s24 = sld [smem:[#allocation9]]  ;;  %s4610_s28 = smov [#allocation11]  }
  0x1a   :  { %v3304_v5 = vld [vmem:[#allocation2 + $0x2e0] sm:$0xf]  ;;  %v4245_v6 = vld [vmem:[#allocation2 + $0x2ec] sm:$0xf0]  ;;  %v3177_v7 = vor.u32 %v4213_v4, %v3176_v2  ;;  %s3980_s18 = sld [smem:[#allocation8 + $0x1]]  ;;  %s2921_s16 = sshll.u32 %s5370_s15, 4  ;;  %s2922_s16 = int_to_ptr.hbm [resolvable:$true] %s2921_s16 }
  0x1b   :  { %v3305_v8 = vor.u32 %v4245_v6, %v3304_v5  ;;  %v3432_v9 = vld [vmem:[#allocation2 + $0x3e0] sm:$0xf]  ;;  %v4277_v10 = vld [vmem:[#allocation2 + $0x3ec] sm:$0xf0]  ;;  %1313 = vmatpush.bf16.msra.mxu0 %v3049_v3  ;;  %s4047_s29 = sld [smem:[#allocation8 + $0x2]] }
  0x1c   :  { %v3032_v11 = vld [vmem:[#allocation2 + $0xc0] sm:$0xf]  ;;  %v3433_v12 = vor.u32 %v4277_v10, %v3432_v9  ;;  %v4177_v13 = vld [vmem:[#allocation2 + $0xcc] sm:$0xf0]  ;;  %1326 = vmatpush.bf16.msra.mxu1 %v3177_v7  ;;  %s4048_s30 = sld [smem:[#allocation9 + $0x2]] }
  0x1d   :  { %v3160_v14 = vld [vmem:[#allocation2 + $0x1c0] sm:$0xf]  ;;  %v4209_v15 = vld [vmem:[#allocation2 + $0x1cc] sm:$0xf0]  ;;  %1339 = vmatpush.bf16.msra.mxu2 %v3305_v8  ;;  %v3033_v16 = vor.u32 %v4177_v13, %v3032_v11  ;;  %s4082_s26 = sld [smem:[#allocation8 + $0x3]] }
  0x1e   :  { %v3161_v17 = vor.u32 %v4209_v15, %v3160_v14  ;;  %v3288_v18 = vld [vmem:[#allocation2 + $0x2c0] sm:$0xf]  ;;  %v4241_v19 = vld [vmem:[#allocation2 + $0x2cc] sm:$0xf0]  ;;  %1352 = vmatpush.bf16.msra.mxu3 %v3433_v12 }
  0x1f   :  { %v3416_v20 = vld [vmem:[#allocation2 + $0x3c0] sm:$0xf]  ;;  %v3289_v21 = vor.u32 %v4241_v19, %v3288_v18  ;;  %v4273_v22 = vld [vmem:[#allocation2 + $0x3cc] sm:$0xf0]  ;;  %1314 = vmatpush.bf16.msra.mxu0 %v3033_v16 }
  0x20   :  { %v3016_v23 = vld [vmem:[#allocation2 + $0xa0] sm:$0xf]  ;;  %v4173_v24 = vld [vmem:[#allocation2 + $0xac] sm:$0xf0]  ;;  %v3417_v25 = vor.u32 %v4273_v22, %v3416_v20  ;;  %1327 = vmatpush.bf16.msra.mxu1 %v3161_v17 }
  0x21   :  { %v3144_v26 = vld [vmem:[#allocation2 + $0x1a0] sm:$0xf]  ;;  %v4205_v27 = vld [vmem:[#allocation2 + $0x1ac] sm:$0xf0]  ;;  %v3017_v29 = vor.u32 %v4173_v24, %v3016_v23  ;;  %1340 = vmatpush.bf16.msra.mxu2 %v3289_v21 }
  0x22   :  { %v3272_v28 = vld [vmem:[#allocation2 + $0x2a0] sm:$0xf]  ;;  %v4237_v30 = vld [vmem:[#allocation2 + $0x2ac] sm:$0xf0]  ;;  %v3145_v33 = vor.u32 %v4205_v27, %v3144_v26  ;;  %1353 = vmatpush.bf16.msra.mxu3 %v3417_v25 }
  0x23   :  { %v3400_v31 = vld [vmem:[#allocation2 + $0x3a0] sm:$0xf]  ;;  %v4269_v32 = vld [vmem:[#allocation2 + $0x3ac] sm:$0xf0]  ;;  %v3273_v34 = vor.u32 %v4237_v30, %v3272_v28  ;;  %1315 = vmatpush.bf16.msra.mxu0 %v3017_v29 }
  0x24   :  { %v3000_v35 = vld [vmem:[#allocation2 + $0x80] sm:$0xf]  ;;  %v4169_v36 = vld [vmem:[#allocation2 + $0x8c] sm:$0xf0]  ;;  %v3401_v38 = vor.u32 %v4269_v32, %v3400_v31  ;;  %1328 = vmatpush.bf16.msra.mxu1 %v3145_v33  ;;  %v4179_v33 = vld [vmem:[#allocation2 + $0xe4] sm:$0xf] }
  0x25   :  { %v3128_v37 = vld [vmem:[#allocation2 + $0x180] sm:$0xf]  ;;  %v4201_v39 = vld [vmem:[#allocation2 + $0x18c] sm:$0xf0]  ;;  %v3001_v44 = vor.u32 %v4169_v36, %v3000_v35  ;;  %1341 = vmatpush.bf16.msra.mxu2 %v3273_v34  ;;  %v3050_v34 = vld [vmem:[#allocation2 + $0xf0] sm:$0xf0] }
  0x26   :  { %v3256_v40 = vld [vmem:[#allocation2 + $0x280] sm:$0xf]  ;;  %v4233_v41 = vld [vmem:[#allocation2 + $0x28c] sm:$0xf0]  ;;  %v3129_v45 = vor.u32 %v4201_v39, %v3128_v37  ;;  %1354 = vmatpush.bf16.msra.mxu3 %v3401_v38 }
  0x27   :  { %v3384_v42 = vld [vmem:[#allocation2 + $0x380] sm:$0xf]  ;;  %v4265_v43 = vld [vmem:[#allocation2 + $0x38c] sm:$0xf0]  ;;  %v3257_v46 = vor.u32 %v4233_v41, %v3256_v40  ;;  %1316 = vmatpush.bf16.msra.mxu0 %v3001_v44  ;;  %v3178_v44 = vld [vmem:[#allocation2 + $0x1f0] sm:$0xf0] }
  0x28   :  { %v2984_v47 = vld [vmem:[#allocation2 + $0x60] sm:$0xf]  ;;  %v4165_v48 = vld [vmem:[#allocation2 + $0x6c] sm:$0xf0]  ;;  %v3385_v50 = vor.u32 %v4265_v43, %v3384_v42  ;;  %1329 = vmatpush.bf16.msra.mxu1 %v3129_v45  ;;  %v4211_v43 = vld [vmem:[#allocation2 + $0x1e4] sm:$0xf] }
  0x29   :  { %v3112_v49 = vld [vmem:[#allocation2 + $0x160] sm:$0xf]  ;;  %v4197_v51 = vld [vmem:[#allocation2 + $0x16c] sm:$0xf0]  ;;  %v2985_v56 = vor.u32 %v4165_v48, %v2984_v47  ;;  %1342 = vmatpush.bf16.msra.mxu2 %v3257_v46  ;;  %v112_v45 = vld [vmem:[%s5355_s0 + $0x18] sm:$0xff]  ;;  %v3053_v47 = vor.u32 %v4179_v33, %v3050_v34 }
  0x2a   :  { %v3240_v52 = vld [vmem:[#allocation2 + $0x260] sm:$0xf]  ;;  %v4229_v53 = vld [vmem:[#allocation2 + $0x26c] sm:$0xf0]  ;;  %v3113_v57 = vor.u32 %v4197_v51, %v3112_v49  ;;  %1355 = vmatpush.bf16.msra.mxu3 %v3385_v50 }
  0x2b   :  { %v3368_v54 = vld [vmem:[#allocation2 + $0x360] sm:$0xf]  ;;  %v4261_v55 = vld [vmem:[#allocation2 + $0x36c] sm:$0xf0]  ;;  %v3241_v58 = vor.u32 %v4229_v53, %v3240_v52  ;;  %1317 = vmatpush.bf16.msra.mxu0 %v2985_v56  ;;  %v4175_v53 = vld [vmem:[#allocation2 + $0xc4] sm:$0xf] }
  0x2c   :  { %v2968_v59 = vld [vmem:[#allocation2 + $0x40] sm:$0xf]  ;;  %v4161_v60 = vld [vmem:[#allocation2 + $0x4c] sm:$0xf0]  ;;  %v3369_v62 = vor.u32 %v4261_v55, %v3368_v54  ;;  %1330 = vmatpush.bf16.msra.mxu1 %v3113_v57  ;;  %v3034_v54 = vld [vmem:[#allocation2 + $0xd0] sm:$0xf0]  ;;  %v4716_v57 = vpack.c.bf16 %v112_v45, %v112_v45 }
  0x2d   :  { %v3096_v61 = vld [vmem:[#allocation2 + $0x140] sm:$0xf]  ;;  %v4193_v63 = vld [vmem:[#allocation2 + $0x14c] sm:$0xf0]  ;;  %v2969_v4 = vor.u32 %v4161_v60, %v2968_v59  ;;  %1343 = vmatpush.bf16.msra.mxu2 %v3241_v58  ;;  %v110_v58 = vld [vmem:[%s5355_s0 + $0x8] sm:$0xff]  ;;  %v3181_v59 = vor.u32 %v4211_v43, %v3178_v44 }
  0x2e   :  { %v3224_v0 = vld [vmem:[#allocation2 + $0x240] sm:$0xf]  ;;  %v4225_v1 = vld [vmem:[#allocation2 + $0x24c] sm:$0xf0]  ;;  %v3097_v5 = vor.u32 %v4193_v63, %v3096_v61  ;;  %1356 = vmatpush.bf16.msra.mxu3 %v3369_v62  ;;  %v4207_v61 = vld [vmem:[#allocation2 + $0x1c4] sm:$0xf] }
  0x2f   :  { %v3352_v2 = vld [vmem:[#allocation2 + $0x340] sm:$0xf]  ;;  %v4257_v3 = vld [vmem:[#allocation2 + $0x34c] sm:$0xf0]  ;;  %v3225_v6 = vor.u32 %v4225_v1, %v3224_v0  ;;  %1318 = vmatpush.bf16.msra.mxu0 %v2969_v4  ;;  %v3162_v62 = vld [vmem:[#allocation2 + $0x1d0] sm:$0xf0]  ;;  %v3037_v0 = vor.u32 %v4175_v53, %v3034_v54 }
  0x30   :  { %v2952_v7 = vld [vmem:[#allocation2 + $0x20] sm:$0xf]  ;;  %v4157_v8 = vld [vmem:[#allocation2 + $0x2c] sm:$0xf0]  ;;  %v3353_v10 = vor.u32 %v4257_v3, %v3352_v2  ;;  %1331 = vmatpush.bf16.msra.mxu1 %v3097_v5  ;;  %v4171_v5 = vld [vmem:[#allocation2 + $0xa4] sm:$0xf] }
  0x31   :  { %v3080_v9 = vld [vmem:[#allocation2 + $0x120] sm:$0xf]  ;;  %v4189_v11 = vld [vmem:[#allocation2 + $0x12c] sm:$0xf0]  ;;  %v2953_v16 = vor.u32 %v4157_v8, %v2952_v7  ;;  %1344 = vmatpush.bf16.msra.mxu2 %v3225_v6  ;;  %v3018_v6 = vld [vmem:[#allocation2 + $0xb0] sm:$0xf0]  ;;  %v4723_v7 = vpack.c.bf16 %v110_v58, %v110_v58  ;;  %v3165_v8 = vor.u32 %v4207_v61, %v3162_v62 }
  0x32   :  { %v3208_v12 = vld [vmem:[#allocation2 + $0x220] sm:$0xf]  ;;  %v4221_v13 = vld [vmem:[#allocation2 + $0x22c] sm:$0xf0]  ;;  %v3081_v20 = vor.u32 %v4189_v11, %v3080_v9  ;;  %1357 = vmatpush.bf16.msra.mxu3 %v3353_v10  ;;  %v4203_v10 = vld [vmem:[#allocation2 + $0x1a4] sm:$0xf] }
  0x33   :  { %v3336_v14 = vld [vmem:[#allocation2 + $0x320] sm:$0xf]  ;;  %v4253_v15 = vld [vmem:[#allocation2 + $0x32c] sm:$0xf0]  ;;  %v3209_v21 = vor.u32 %v4221_v13, %v3208_v12  ;;  %1319 = vmatpush.bf16.msra.mxu0 %v2953_v16  ;;  %v3146_v11 = vld [vmem:[#allocation2 + $0x1b0] sm:$0xf0]  ;;  %v3021_v13 = vor.u32 %v4171_v5, %v3018_v6 }
  0x34   :  { %v2936_v17 = vld [vmem:[#allocation2] sm:$0xf]  ;;  %v4153_v18 = vld [vmem:[#allocation2 + $0xc] sm:$0xf0]  ;;  %v3337_v25 = vor.u32 %v4253_v15, %v3336_v14  ;;  %1332 = vmatpush.bf16.msra.mxu1 %v3081_v20  ;;  %v3149_v20 = vor.u32 %v4203_v10, %v3146_v11  ;;  %v4159_v43 = vld [vmem:[#allocation2 + $0x44] sm:$0xf] }
  0x35   :  { %v3064_v19 = vld [vmem:[#allocation2 + $0x100] sm:$0xf]  ;;  %v4185_v22 = vld [vmem:[#allocation2 + $0x10c] sm:$0xf0]  ;;  %v2937_v32 = vor.u32 %v4153_v18, %v2936_v17  ;;  %1345 = vmatpush.bf16.msra.mxu2 %v3209_v21  ;;  %v4167_v18 = vld [vmem:[#allocation2 + $0x84] sm:$0xf] }
  0x36   :  { %v3192_v23 = vld [vmem:[#allocation2 + $0x200] sm:$0xf]  ;;  %v4217_v24 = vld [vmem:[#allocation2 + $0x20c] sm:$0xf0]  ;;  %v3065_v36 = vor.u32 %v4185_v22, %v3064_v19  ;;  %1358 = vmatpush.bf16.msra.mxu3 %v3337_v25  ;;  %v3002_v19 = vld [vmem:[#allocation2 + $0x90] sm:$0xf0] }
  0x37   :  { %v3320_v26 = vld [vmem:[#allocation2 + $0x300] sm:$0xf]  ;;  %v4249_v27 = vld [vmem:[#allocation2 + $0x30c] sm:$0xf0]  ;;  %v3193_v37 = vor.u32 %v4217_v24, %v3192_v23  ;;  %1320 = vmatpush.bf16.msra.mxu0 %v2937_v32  ;;  %v4199_v22 = vld [vmem:[#allocation2 + $0x184] sm:$0xf]  ;;  %v3005_v25 = vor.u32 %v4167_v18, %v3002_v19 }
  0x38   :  { %v3560_v28 = vld [vmem:[#allocation2 + $0x4e0] sm:$0xf]  ;;  %v4309_v29 = vld [vmem:[#allocation2 + $0x4ec] sm:$0xf0]  ;;  %v3321_v41 = vor.u32 %v4249_v27, %v3320_v26  ;;  %1333 = vmatpush.bf16.msra.mxu1 %v3065_v36  ;;  %v3130_v23 = vld [vmem:[#allocation2 + $0x190] sm:$0xf0] }
  0x39   :  { %v3688_v30 = vld [vmem:[#allocation2 + $0x5e0] sm:$0xf]  ;;  %v4341_v31 = vld [vmem:[#allocation2 + $0x5ec] sm:$0xf0]  ;;  %v3561_v42 = vor.u32 %v4309_v29, %v3560_v28  ;;  %1346 = vmatpush.bf16.msra.mxu2 %v3193_v37  ;;  %v3133_v33 = vor.u32 %v4199_v22, %v3130_v23  ;;  %v3114_v36 = vld [vmem:[#allocation2 + $0x170] sm:$0xf0] }
  0x3a   :  { %v111_v35 = vld [vmem:[%s5355_s0 + $0x10] sm:$0xff]  ;;  %v3704_v38 = vld [vmem:[#allocation2 + $0x600] sm:$0xf]  ;;  %v3689_v46 = vor.u32 %v4341_v31, %v3688_v30  ;;  %1359 = vmatpush.bf16.msra.mxu3 %v3321_v41  ;;  %v4163_v30 = vld [vmem:[#allocation2 + $0x64] sm:$0xf] }
  0x3b   :  { %v4345_v39 = vld [vmem:[#allocation2 + $0x60c] sm:$0xf0]  ;;  %v109_v40 = vld [vmem:[%s5355_s0] sm:$0xff]  ;;  %v4712_v51 = vpack.c.bf16 %v111_v35, %v111_v35  ;;  %1365 = vmatpush.bf16.msrb.mxu0 %v3561_v42  ;;  %1334 = vmatmul.bf16.vlgmr.msra.gmra.mxu1 %v4723_v7  ;;  %v2986_v31 = vld [vmem:[#allocation2 + $0x70] sm:$0xf0] }
  0x3c   :  { %v3544_v48 = vld [vmem:[#allocation2 + $0x4c0] sm:$0xf]  ;;  %v4305_v49 = vld [vmem:[#allocation2 + $0x4cc] sm:$0xf0]  ;;  %v4714_v55 = vpack.c.bf16 %v109_v40, %v109_v40  ;;  %v3705_v56 = vor.u32 %v4345_v39, %v3704_v38  ;;  %1378 = vmatpush.bf16.msrb.mxu1 %v3689_v46  ;;  %v4195_v35 = vld [vmem:[#allocation2 + $0x164] sm:$0xf]  ;;  %v2989_v38 = vor.u32 %v4163_v30, %v2986_v31 }
  0x3d   :  { %v3672_v50 = vld [vmem:[#allocation2 + $0x5c0] sm:$0xf]  ;;  %v4337_v52 = vld [vmem:[#allocation2 + $0x5cc] sm:$0xf0]  ;;  %v3545_v60 = vor.u32 %v4305_v49, %v3544_v48  ;;  %1347 = vmatmul.bf16.vlgmr.msra.gmra.mxu2 %v4712_v51  ;;  %1360 = vmatmul.bf16.vlgmr.msra.gmra.mxu3 %v4716_v57  ;;  %v2970_v44 = vld [vmem:[#allocation2 + $0x50] sm:$0xf0]  ;;  %v3117_v46 = vor.u32 %v4195_v35, %v3114_v36 }
  0x3e   :  { %1404 = vmatpush.bf16.msrb.mxu3 %v3053_v47  ;;  %v3673_v63 = vor.u32 %v4337_v52, %v3672_v50  ;;  %v3528_v1 = vld [vmem:[#allocation2 + $0x4a0] sm:$0xf]  ;;  %v4301_v2 = vld [vmem:[#allocation2 + $0x4ac] sm:$0xf0]  ;;  %1321 = vmatmul.bf16.vlgmr.msra.gmra.mxu0 %v4714_v55  ;;  %v4191_v48 = vld [vmem:[#allocation2 + $0x144] sm:$0xf]  ;;  %v2973_v52 = vor.u32 %v4159_v43, %v2970_v44 }
  0x3f   :  { %v3656_v3 = vld [vmem:[#allocation2 + $0x5a0] sm:$0xf]  ;;  %v4333_v4 = vld [vmem:[#allocation2 + $0x5ac] sm:$0xf0]  ;;  %1398 = vmatpush.bf16.msrb.mxu2 %v3705_v56  ;;  %1366 = vmatpush.bf16.msrb.mxu0 %v3545_v60  ;;  %v3529_v9 = vor.u32 %v4301_v2, %v3528_v1  ;;  %v3098_v49 = vld [vmem:[#allocation2 + $0x150] sm:$0xf0] }
  0x40   :  { %1379 = vmatpush.bf16.msrb.mxu1 %v3673_v63  ;;  %v3657_v12 = vor.u32 %v4333_v4, %v3656_v3  ;;  %v3512_v14 = vld [vmem:[#allocation2 + $0x480] sm:$0xf]  ;;  %v4297_v15 = vld [vmem:[#allocation2 + $0x48c] sm:$0xf0]  ;;  %v2954_v60 = vld [vmem:[#allocation2 + $0x30] sm:$0xf0]  ;;  %v3101_v61 = vor.u32 %v4191_v48, %v3098_v49 }
  0x41   :  { %v3640_v16 = vld [vmem:[#allocation2 + $0x580] sm:$0xf]  ;;  %v4329_v17 = vld [vmem:[#allocation2 + $0x58c] sm:$0xf0]  ;;  %v3513_v21 = vor.u32 %v4297_v15, %v3512_v14  ;;  %v4187_v63 = vld [vmem:[#allocation2 + $0x124] sm:$0xf] }
  0x42   :  { %1405 = vmatpush.bf16.msrb.mxu3 %v3037_v0  ;;  %v3641_v24 = vor.u32 %v4329_v17, %v3640_v16  ;;  %v3496_v26 = vld [vmem:[#allocation2 + $0x460] sm:$0xf]  ;;  %v4293_v27 = vld [vmem:[#allocation2 + $0x46c] sm:$0xf0]  ;;  %v3082_v0 = vld [vmem:[#allocation2 + $0x130] sm:$0xf0] }
  0x43   :  { %1417 = vmatpush.bf16.msra.mxu2 %v3181_v59  ;;  %1367 = vmatpush.bf16.msrb.mxu0 %v3529_v9  ;;  %v3624_v28 = vld [vmem:[#allocation2 + $0x560] sm:$0xf]  ;;  %v4325_v29 = vld [vmem:[#allocation2 + $0x56c] sm:$0xf0]  ;;  %v3497_v34 = vor.u32 %v4293_v27, %v3496_v26  ;;  %v4155_v59 = vld [vmem:[#allocation2 + $0x24] sm:$0xf]  ;;  %v3085_v14 = vor.u32 %v4187_v63, %v3082_v0 }
  0x44   :  { %1380 = vmatpush.bf16.msrb.mxu1 %v3657_v12  ;;  %v115_v32 = vld [vmem:[%s5355_s0 + $0x30] sm:$0xff]  ;;  %v3625_v37 = vor.u32 %v4325_v29, %v3624_v28  ;;  %v3480_v39 = vld [vmem:[#allocation2 + $0x440] sm:$0xf]  ;;  %v2957_v3 = vor.u32 %v4155_v59, %v2954_v60  ;;  %v4243_v10 = vld [vmem:[#allocation2 + $0x2e4] sm:$0xf] }
  0x45   :  { %v4289_v40 = vld [vmem:[#allocation2 + $0x44c] sm:$0xf0]  ;;  %v3608_v41 = vld [vmem:[#allocation2 + $0x540] sm:$0xf]  ;;  %v4730_v45 = vpack.c.bf16 %v115_v32, %v115_v32  ;;  %v2938_v9 = vld [vmem:[#allocation2 + $0x10] sm:$0xf0] }
  0x46   :  { %1406 = vmatpush.bf16.msrb.mxu3 %v3021_v13  ;;  %v4321_v42 = vld [vmem:[#allocation2 + $0x54c] sm:$0xf0]  ;;  %v3481_v47 = vor.u32 %v4289_v40, %v3480_v39  ;;  %v3464_v53 = vld [vmem:[#allocation2 + $0x420] sm:$0xf]  ;;  %v3306_v11 = vld [vmem:[#allocation2 + $0x2f0] sm:$0xf0] }
  0x47   :  { %1418 = vmatpush.bf16.msra.mxu2 %v3165_v8  ;;  %1368 = vmatpush.bf16.msrb.mxu0 %v3513_v21  ;;  %v3609_v50 = vor.u32 %v4321_v42, %v3608_v41  ;;  %v4285_v54 = vld [vmem:[#allocation2 + $0x42c] sm:$0xf0]  ;;  %v3592_v56 = vld [vmem:[#allocation2 + $0x520] sm:$0xf]  ;;  %v4151_v8 = vld [vmem:[#allocation2 + $0x4] sm:$0xf] }
  0x48   :  { %1381 = vmatpush.bf16.msrb.mxu1 %v3641_v24  ;;  %v4317_v58 = vld [vmem:[#allocation2 + $0x52c] sm:$0xf0]  ;;  %v3465_v62 = vor.u32 %v4285_v54, %v3464_v53  ;;  %v3448_v1 = vld [vmem:[#allocation2 + $0x400] sm:$0xf]  ;;  %v4275_v12 = vld [vmem:[#allocation2 + $0x3e4] sm:$0xf]  ;;  %v3309_v24 = vor.u32 %v4243_v10, %v3306_v11 }
  0x49   :  { %v3593_v2 = vor.u32 %v4317_v58, %v3592_v56  ;;  %v4281_v4 = vld [vmem:[#allocation2 + $0x40c] sm:$0xf0]  ;;  %v3576_v5 = vld [vmem:[#allocation2 + $0x500] sm:$0xf]  ;;  %v3434_v13 = vld [vmem:[#allocation2 + $0x3f0] sm:$0xf0] }
  0x4a   :  { %1407 = vmatpush.bf16.msrb.mxu3 %v3005_v25  ;;  %v4313_v6 = vld [vmem:[#allocation2 + $0x50c] sm:$0xf0]  ;;  %v3449_v15 = vor.u32 %v4281_v4, %v3448_v1  ;;  %v4307_v16 = vld [vmem:[#allocation2 + $0x4e4] sm:$0xf]  ;;  %v3562_v17 = vld [vmem:[#allocation2 + $0x4f0] sm:$0xf0]  ;;  %v3437_v25 = vor.u32 %v4275_v12, %v3434_v13 }
  0x4b   :  { %1419 = vmatpush.bf16.msra.mxu2 %v3149_v20  ;;  %1369 = vmatpush.bf16.msrb.mxu0 %v3497_v34  ;;  %v113_v18 = vld [vmem:[%s5355_s0 + $0x20] sm:$0xff]  ;;  %v3577_v19 = vor.u32 %v4313_v6, %v3576_v5  ;;  %v2941_v20 = vor.u32 %v4151_v8, %v2938_v9  ;;  %v3066_v22 = vld [vmem:[#allocation2 + $0x110] sm:$0xf0]  ;;  %v114_v23 = vld [vmem:[%s5355_s0 + $0x28] sm:$0xff]  ;;  %v3565_v29 = vor.u32 %v4307_v16, %v3562_v17  ;;  %s3981_s0 = sld [smem:[#allocation9 + $0x1]] }
  0x4c   :  { %1382 = vmatpush.bf16.msrb.mxu1 %v3625_v37  ;;  %v4183_v21 = vld [vmem:[#allocation2 + $0x104] sm:$0xf]  ;;  %v3690_v27 = vld [vmem:[#allocation2 + $0x5f0] sm:$0xf0]  ;;  %v4740_v30 = vpack.c.bf16 %v113_v18, %v113_v18  ;;  %v4742_v35 = vpack.c.bf16 %v114_v23, %v114_v23 }
  0x4d   :  { %3718 = vmatmul.msk.bf16.vlgmr.msrb.gmra.mxu2 %vm1309_vm0, %v4730_v45  ;;  %v4339_v26 = vld [vmem:[#allocation2 + $0x5e4] sm:$0xf]  ;;  %v3290_v31 = vld [vmem:[#allocation2 + $0x2d0] sm:$0xf0]  ;;  %v3069_v34 = vor.u32 %v4183_v21, %v3066_v22 }
  0x4e   :  { %1408 = vmatpush.bf16.msrb.mxu3 %v2989_v38  ;;  %v4239_v28 = vld [vmem:[#allocation2 + $0x2c4] sm:$0xf]  ;;  %v3546_v37 = vld [vmem:[#allocation2 + $0x4d0] sm:$0xf0]  ;;  %v3693_v38 = vor.u32 %v4339_v26, %v3690_v27 }
  0x4f   :  { %1420 = vmatpush.bf16.msra.mxu2 %v3133_v33  ;;  %1370 = vmatpush.bf16.msrb.mxu0 %v3481_v47  ;;  %v4271_v32 = vld [vmem:[#allocation2 + $0x3c4] sm:$0xf]  ;;  %v3418_v33 = vld [vmem:[#allocation2 + $0x3d0] sm:$0xf0]  ;;  %v3293_v39 = vor.u32 %v4239_v28, %v3290_v31 }
  0x50   :  { %1383 = vmatpush.bf16.msrb.mxu1 %v3609_v50  ;;  %v4303_v36 = vld [vmem:[#allocation2 + $0x4c4] sm:$0xf]  ;;  %v3421_v40 = vor.u32 %v4271_v32, %v3418_v33  ;;  %v3674_v42 = vld [vmem:[#allocation2 + $0x5d0] sm:$0xf0] }
  0x51   :  { %v4335_v41 = vld [vmem:[#allocation2 + $0x5c4] sm:$0xf]  ;;  %v3549_v44 = vor.u32 %v4303_v36, %v3546_v37  ;;  %v3402_v48 = vld [vmem:[#allocation2 + $0x3b0] sm:$0xf0] }
  0x52   :  { %1409 = vmatpush.bf16.msrb.mxu3 %v2973_v52  ;;  %v4235_v43 = vld [vmem:[#allocation2 + $0x2a4] sm:$0xf]  ;;  %v3530_v50 = vld [vmem:[#allocation2 + $0x4b0] sm:$0xf0]  ;;  %v3677_v52 = vor.u32 %v4335_v41, %v3674_v42 }
  0x53   :  { %1421 = vmatpush.bf16.msra.mxu2 %v3117_v46  ;;  %1371 = vmatpush.bf16.msrb.mxu0 %v3465_v62  ;;  %v3274_v46 = vld [vmem:[#allocation2 + $0x2b0] sm:$0xf0]  ;;  %v4267_v47 = vld [vmem:[#allocation2 + $0x3a4] sm:$0xf] }
  0x54   :  { %1384 = vmatpush.bf16.msrb.mxu1 %v3593_v2  ;;  %v4299_v49 = vld [vmem:[#allocation2 + $0x4a4] sm:$0xf]  ;;  %v3277_v53 = vor.u32 %v4235_v43, %v3274_v46  ;;  %v3405_v54 = vor.u32 %v4267_v47, %v3402_v48  ;;  %v3658_v58 = vld [vmem:[#allocation2 + $0x5b0] sm:$0xf0] }
  0x55   :  { %v4331_v56 = vld [vmem:[#allocation2 + $0x5a4] sm:$0xf]  ;;  %v3533_v60 = vor.u32 %v4299_v49, %v3530_v50  ;;  %v3386_v63 = vld [vmem:[#allocation2 + $0x390] sm:$0xf0] }
  0x56   :  { %1410 = vmatpush.bf16.msrb.mxu3 %v2957_v3  ;;  %v4231_v59 = vld [vmem:[#allocation2 + $0x284] sm:$0xf]  ;;  %v3514_v1 = vld [vmem:[#allocation2 + $0x490] sm:$0xf0]  ;;  %v3661_v2 = vor.u32 %v4331_v56, %v3658_v58  ;;  %v3056_v56 = vld [vmem:[#allocation2 + $0xe8] sm:$0xf] }
  0x57   :  { %1422 = vmatpush.bf16.msra.mxu2 %v3101_v61  ;;  %1372 = vmatpush.bf16.msrb.mxu0 %v3449_v15  ;;  %v3258_v61 = vld [vmem:[#allocation2 + $0x290] sm:$0xf0]  ;;  %v4263_v62 = vld [vmem:[#allocation2 + $0x384] sm:$0xf]  ;;  %v4182_v58 = vld [vmem:[#allocation2 + $0xf4] sm:$0xf0] }
  0x58   :  { %1385 = vmatpush.bf16.msrb.mxu1 %v3577_v19  ;;  %v4295_v0 = vld [vmem:[#allocation2 + $0x484] sm:$0xf]  ;;  %v3261_v3 = vor.u32 %v4231_v59, %v3258_v61  ;;  %v3389_v4 = vor.u32 %v4263_v62, %v3386_v63  ;;  %v3642_v6 = vld [vmem:[#allocation2 + $0x590] sm:$0xf0]  ;;  %v3184_v59 = vld [vmem:[#allocation2 + $0x1e8] sm:$0xf] }
  0x59   :  { %v4327_v5 = vld [vmem:[#allocation2 + $0x584] sm:$0xf]  ;;  %v3517_v9 = vor.u32 %v4295_v0, %v3514_v1  ;;  %v3242_v10 = vld [vmem:[#allocation2 + $0x270] sm:$0xf0]  ;;  %v4214_v61 = vld [vmem:[#allocation2 + $0x1f4] sm:$0xf0] }
  0x5a   :  { %1411 = vmatpush.bf16.msrb.mxu3 %v2941_v20  ;;  %1373 = vmatmul.bf16.vlgmr.msrb.gmra.mxu0 %v4740_v30  ;;  %v4227_v8 = vld [vmem:[#allocation2 + $0x264] sm:$0xf]  ;;  %v3370_v12 = vld [vmem:[#allocation2 + $0x370] sm:$0xf0]  ;;  %v3645_v15 = vor.u32 %v4327_v5, %v3642_v6  ;;  %v3057_v6 = vor.u32 %v4182_v58, %v3056_v56  ;;  %v4166_v56 = vld [vmem:[#allocation2 + $0x74] sm:$0xf0] }
  0x5b   :  { %1423 = vmatpush.bf16.msra.mxu2 %v3085_v14  ;;  %1430 = vmatpush.bf16.msra.mxu0 %v3309_v24  ;;  %v4259_v11 = vld [vmem:[#allocation2 + $0x364] sm:$0xf]  ;;  %v3498_v14 = vld [vmem:[#allocation2 + $0x470] sm:$0xf0]  ;;  %v3245_v16 = vor.u32 %v4227_v8, %v3242_v10  ;;  %v4246_v8 = vld [vmem:[#allocation2 + $0x2f4] sm:$0xf0] }
  0x5c   :  { %1443 = vmatpush.bf16.msra.mxu1 %v3437_v25  ;;  %v4291_v13 = vld [vmem:[#allocation2 + $0x464] sm:$0xf]  ;;  %v3373_v17 = vor.u32 %v4259_v11, %v3370_v12  ;;  %v3626_v19 = vld [vmem:[#allocation2 + $0x570] sm:$0xf0]  ;;  %v4278_v10 = vld [vmem:[#allocation2 + $0x3f4] sm:$0xf0]  ;;  %v3185_v11 = vor.u32 %v4214_v61, %v3184_v59 }
  0x5d   :  { %1386 = vmatmul.bf16.vlgmr.msrb.gmra.mxu1 %v4742_v35  ;;  %1412 = vmatmul.bf16.vlgmr.msrb.gmra.mxu3 %v4714_v55  ;;  %v4323_v18 = vld [vmem:[#allocation2 + $0x564] sm:$0xf]  ;;  %v3501_v21 = vor.u32 %v4291_v13, %v3498_v14  ;;  %v3226_v22 = vld [vmem:[#allocation2 + $0x250] sm:$0xf0]  ;;  %v3040_v13 = vld [vmem:[#allocation2 + $0xc8] sm:$0xf] }
  0x5e   :  { %1456 = vmatpush.bf16.msra.mxu3 %v3565_v29  ;;  %v4223_v20 = vld [vmem:[#allocation2 + $0x244] sm:$0xf]  ;;  %v3354_v24 = vld [vmem:[#allocation2 + $0x350] sm:$0xf0]  ;;  %v3629_v27 = vor.u32 %v4323_v18, %v3626_v19  ;;  %v4178_v14 = vld [vmem:[#allocation2 + $0xd4] sm:$0xf0] }
  0x5f   :  { %1424 = vmatpush.bf16.msra.mxu2 %v3069_v34  ;;  %1431 = vmatpush.bf16.msra.mxu0 %v3293_v39  ;;  %v4255_v23 = vld [vmem:[#allocation2 + $0x344] sm:$0xf]  ;;  %v3482_v26 = vld [vmem:[#allocation2 + $0x450] sm:$0xf0]  ;;  %v3229_v28 = vor.u32 %v4223_v20, %v3226_v22  ;;  %v3296_v20 = vld [vmem:[#allocation2 + $0x2c8] sm:$0xf] }
  0x60   :  { %1444 = vmatpush.bf16.msra.mxu1 %v3421_v40  ;;  %v4287_v25 = vld [vmem:[#allocation2 + $0x444] sm:$0xf]  ;;  %v3357_v29 = vor.u32 %v4255_v23, %v3354_v24  ;;  %v3610_v32 = vld [vmem:[#allocation2 + $0x550] sm:$0xf0]  ;;  %v4242_v22 = vld [vmem:[#allocation2 + $0x2d4] sm:$0xf0] }
  0x61   :  { %v4319_v31 = vld [vmem:[#allocation2 + $0x544] sm:$0xf]  ;;  %v3485_v34 = vor.u32 %v4287_v25, %v3482_v26  ;;  %v3210_v36 = vld [vmem:[#allocation2 + $0x230] sm:$0xf0]  ;;  %v3424_v23 = vld [vmem:[#allocation2 + $0x3c8] sm:$0xf] }
  0x62   :  { %1457 = vmatpush.bf16.msra.mxu3 %v3549_v44  ;;  %1425 = vmatmul.bf16.vlgmr.msra.gmra.mxu2 %v4723_v7  ;;  %v4219_v33 = vld [vmem:[#allocation2 + $0x224] sm:$0xf]  ;;  %v3466_v40 = vld [vmem:[#allocation2 + $0x430] sm:$0xf0]  ;;  %v3613_v41 = vor.u32 %v4319_v31, %v3610_v32  ;;  %v4274_v24 = vld [vmem:[#allocation2 + $0x3d4] sm:$0xf0]  ;;  %v3297_v31 = vor.u32 %v4242_v22, %v3296_v20 }
  0x63   :  { %1469 = vmatpush.bf16.msrb.mxu2 %v3693_v38  ;;  %1432 = vmatpush.bf16.msra.mxu0 %v3277_v53  ;;  %v4251_v37 = vld [vmem:[#allocation2 + $0x324] sm:$0xf]  ;;  %v3338_v38 = vld [vmem:[#allocation2 + $0x330] sm:$0xf0]  ;;  %v3213_v44 = vor.u32 %v4219_v33, %v3210_v36  ;;  %v3024_v26 = vld [vmem:[#allocation2 + $0xa8] sm:$0xf]  ;;  %v3425_v32 = vor.u32 %v4274_v24, %v3424_v23 }
  0x64   :  { %1445 = vmatpush.bf16.msra.mxu1 %v3405_v54  ;;  %v4283_v39 = vld [vmem:[#allocation2 + $0x424] sm:$0xf]  ;;  %v3594_v43 = vld [vmem:[#allocation2 + $0x530] sm:$0xf0]  ;;  %v3341_v46 = vor.u32 %v4251_v37, %v3338_v38  ;;  %v3280_v33 = vld [vmem:[#allocation2 + $0x2a8] sm:$0xf] }
  0x65   :  { %v4315_v42 = vld [vmem:[#allocation2 + $0x524] sm:$0xf]  ;;  %v3194_v48 = vld [vmem:[#allocation2 + $0x210] sm:$0xf0]  ;;  %v3469_v50 = vor.u32 %v4283_v39, %v3466_v40  ;;  %v3408_v36 = vld [vmem:[#allocation2 + $0x3a8] sm:$0xf] }
  0x66   :  { %1458 = vmatpush.bf16.msra.mxu3 %v3533_v60  ;;  %v4215_v47 = vld [vmem:[#allocation2 + $0x204] sm:$0xf]  ;;  %v3450_v54 = vld [vmem:[#allocation2 + $0x410] sm:$0xf0]  ;;  %v3597_v60 = vor.u32 %v4315_v42, %v3594_v43  ;;  %v4270_v38 = vld [vmem:[#allocation2 + $0x3b4] sm:$0xf0] }
  0x67   :  { %1470 = vmatpush.bf16.msrb.mxu2 %v3677_v52  ;;  %1433 = vmatpush.bf16.msra.mxu0 %v3261_v3  ;;  %v4247_v49 = vld [vmem:[#allocation2 + $0x304] sm:$0xf]  ;;  %v3322_v52 = vld [vmem:[#allocation2 + $0x310] sm:$0xf0]  ;;  %v3197_v0 = vor.u32 %v4215_v47, %v3194_v48  ;;  %v3008_v40 = vld [vmem:[#allocation2 + $0x88] sm:$0xf] }
  0x68   :  { %1446 = vmatpush.bf16.msra.mxu1 %v3389_v4  ;;  %v4279_v53 = vld [vmem:[#allocation2 + $0x404] sm:$0xf]  ;;  %v3706_v63 = vld [vmem:[#allocation2 + $0x610] sm:$0xf0]  ;;  %v3325_v1 = vor.u32 %v4247_v49, %v3322_v52  ;;  %v3312_v4 = vld [vmem:[#allocation2 + $0x2e8] sm:$0xf] }
  0x69   :  { %v4343_v62 = vld [vmem:[#allocation2 + $0x604] sm:$0xf]  ;;  %v3578_v3 = vld [vmem:[#allocation2 + $0x510] sm:$0xf0]  ;;  %v3453_v5 = vor.u32 %v4279_v53, %v3450_v54  ;;  %v3313_v18 = vor.u32 %v4246_v8, %v3312_v4  ;;  %v3136_v42 = vld [vmem:[#allocation2 + $0x188] sm:$0xf] }
  0x6a   :  { %1459 = vmatpush.bf16.msra.mxu3 %v3517_v9  ;;  %v3440_v9 = vld [vmem:[#allocation2 + $0x3e8] sm:$0xf]  ;;  %v3709_v12 = vor.u32 %v4343_v62, %v3706_v63  ;;  %v4202_v43 = vld [vmem:[#allocation2 + $0x194] sm:$0xf0] }
  0x6b   :  { %1471 = vmatpush.bf16.msrb.mxu2 %v3661_v2  ;;  %1434 = vmatpush.bf16.msra.mxu0 %v3245_v16  ;;  %v4311_v2 = vld [vmem:[#allocation2 + $0x504] sm:$0xf]  ;;  %v3168_v16 = vld [vmem:[#allocation2 + $0x1c8] sm:$0xf]  ;;  %v3441_v19 = vor.u32 %v4278_v10, %v3440_v9  ;;  %v4234_v49 = vld [vmem:[#allocation2 + $0x294] sm:$0xf0]  ;;  %v3137_v53 = vor.u32 %v4202_v43, %v3136_v42 }
  0x6c   :  { %1447 = vmatpush.bf16.msra.mxu1 %v3373_v17  ;;  %v4210_v17 = vld [vmem:[#allocation2 + $0x1d4] sm:$0xf0]  ;;  %v3264_v47 = vld [vmem:[#allocation2 + $0x288] sm:$0xf] }
  0x6d   :  { %v3169_v25 = vor.u32 %v4210_v17, %v3168_v16  ;;  %v4266_v52 = vld [vmem:[#allocation2 + $0x394] sm:$0xf0]  ;;  %v2992_v54 = vld [vmem:[#allocation2 + $0x68] sm:$0xf] }
  0x6e   :  { %1460 = vmatpush.bf16.msra.mxu3 %v3501_v21  ;;  %v3041_v21 = vor.u32 %v4178_v14, %v3040_v13  ;;  %v3120_v58 = vld [vmem:[#allocation2 + $0x168] sm:$0xf]  ;;  %v4198_v59 = vld [vmem:[#allocation2 + $0x174] sm:$0xf0]  ;;  %v2993_v63 = vor.u32 %v4166_v56, %v2992_v54 }
  0x6f   :  { %1472 = vmatpush.bf16.msrb.mxu2 %v3645_v15  ;;  %1435 = vmatpush.bf16.msra.mxu0 %v3229_v28  ;;  %v3581_v15 = vor.u32 %v4311_v2, %v3578_v3  ;;  %v3152_v28 = vld [vmem:[#allocation2 + $0x1a8] sm:$0xf]  ;;  %v4262_v2 = vld [vmem:[#allocation2 + $0x374] sm:$0xf0]  ;;  %v3121_v3 = vor.u32 %v4198_v59, %v3120_v58 }
  0x70   :  { %1448 = vmatpush.bf16.msra.mxu1 %v3357_v29  ;;  %v4206_v29 = vld [vmem:[#allocation2 + $0x1b4] sm:$0xf0]  ;;  %v3248_v62 = vld [vmem:[#allocation2 + $0x268] sm:$0xf] }
  0x71   :  { %v3153_v39 = vor.u32 %v4206_v29, %v3152_v28  ;;  %v2976_v4 = vld [vmem:[#allocation2 + $0x48] sm:$0xf]  ;;  %v4194_v8 = vld [vmem:[#allocation2 + $0x154] sm:$0xf0] }
  0x72   :  { %1461 = vmatpush.bf16.msra.mxu3 %v3485_v34  ;;  %v4238_v34 = vld [vmem:[#allocation2 + $0x2b4] sm:$0xf0]  ;;  %v3360_v14 = vld [vmem:[#allocation2 + $0x348] sm:$0xf] }
  0x73   :  { %1473 = vmatpush.bf16.msrb.mxu2 %v3629_v27  ;;  %1436 = vmatpush.bf16.msra.mxu0 %v3213_v44  ;;  %v4174_v27 = vld [vmem:[#allocation2 + $0xb4] sm:$0xf0]  ;;  %v3281_v44 = vor.u32 %v4238_v34, %v3280_v33  ;;  %v2960_v17 = vld [vmem:[#allocation2 + $0x28] sm:$0xf] }
  0x74   :  { %1449 = vmatpush.bf16.msra.mxu1 %v3341_v46  ;;  %v3025_v37 = vor.u32 %v4174_v27, %v3024_v26  ;;  %v3409_v46 = vor.u32 %v4270_v38, %v3408_v36  ;;  %v4226_v13 = vld [vmem:[#allocation2 + $0x254] sm:$0xf0]  ;;  %v3216_v23 = vld [vmem:[#allocation2 + $0x228] sm:$0xf] }
  0x75   :  { %v4190_v20 = vld [vmem:[#allocation2 + $0x134] sm:$0xf0]  ;;  %v3344_v26 = vld [vmem:[#allocation2 + $0x328] sm:$0xf] }
  0x76   :  { %1462 = vmatpush.bf16.msra.mxu3 %v3469_v50  ;;  %v3392_v50 = vld [vmem:[#allocation2 + $0x388] sm:$0xf]  ;;  %v4222_v24 = vld [vmem:[#allocation2 + $0x234] sm:$0xf0] }
  0x77   :  { %1474 = vmatpush.bf16.msrb.mxu2 %v3613_v41  ;;  %1437 = vmatpush.bf16.msra.mxu0 %v3197_v0  ;;  %v4170_v41 = vld [vmem:[#allocation2 + $0x94] sm:$0xf0]  ;;  %v3393_v61 = vor.u32 %v4266_v52, %v3392_v50  ;;  %v2944_v28 = vld [vmem:[#allocation2 + $0x8] sm:$0xf]  ;;  %v3217_v38 = vor.u32 %v4222_v24, %v3216_v23  ;;  %v3058_v50 = vld [vmem:[#allocation2 + $0xf8] sm:$0xf0] }
  0x78   :  { %1450 = vmatpush.bf16.msra.mxu1 %v3325_v1  ;;  %v3009_v48 = vor.u32 %v4170_v41, %v3008_v40  ;;  %v4230_v0 = vld [vmem:[#allocation2 + $0x274] sm:$0xf0]  ;;  %v3376_v1 = vld [vmem:[#allocation2 + $0x368] sm:$0xf] }
  0x79   :  { %v3249_v9 = vor.u32 %v4230_v0, %v3248_v62  ;;  %v3377_v10 = vor.u32 %v4262_v2, %v3376_v1  ;;  %v4254_v27 = vld [vmem:[#allocation2 + $0x334] sm:$0xf0]  ;;  %v3568_v34 = vld [vmem:[#allocation2 + $0x4e8] sm:$0xf]  ;;  %v4212_v1 = vld [vmem:[#allocation2 + $0x1ec] sm:$0xf] }
  0x7a   :  { %1463 = vmatpush.bf16.msra.mxu3 %v3453_v5  ;;  %1438 = vmatmul.bf16.vlgmr.msra.gmra.mxu0 %v4712_v51  ;;  %v4162_v5 = vld [vmem:[#allocation2 + $0x54] sm:$0xf0]  ;;  %v3200_v41 = vld [vmem:[#allocation2 + $0x208] sm:$0xf]  ;;  %v3186_v2 = vld [vmem:[#allocation2 + $0x1f8] sm:$0xf0] }
  0x7b   :  { %1475 = vmatpush.bf16.msrb.mxu2 %v3597_v60  ;;  %1489 = vmatpush.bf16.msrb.mxu0 %v3709_v12  ;;  %v3265_v60 = vor.u32 %v4234_v49, %v3264_v47  ;;  %v2977_v12 = vor.u32 %v4162_v5, %v2976_v4  ;;  %v4186_v33 = vld [vmem:[#allocation2 + $0x114] sm:$0xf0]  ;;  %v4180_v47 = vld [vmem:[#allocation2 + $0xec] sm:$0xf]  ;;  %v3712_v52 = vld [vmem:[#allocation2 + $0x608] sm:$0xf] }
  0x7c   :  { %1495 = vmatpush.bf16.msrb.mxu1 %v3057_v6  ;;  %v3104_v6 = vld [vmem:[#allocation2 + $0x148] sm:$0xf]  ;;  %v4310_v36 = vld [vmem:[#allocation2 + $0x4f4] sm:$0xf0]  ;;  %v4176_v4 = vld [vmem:[#allocation2 + $0xcc] sm:$0xf] }
  0x7d   :  { %1464 = vmatmul.bf16.vlgmr.msra.gmra.mxu3 %v4740_v30  ;;  %1451 = vmatmul.bf16.vlgmr.msra.gmra.mxu1 %v4716_v57  ;;  %v3105_v16 = vor.u32 %v4194_v8, %v3104_v6  ;;  %v4342_v40 = vld [vmem:[#allocation2 + $0x5f4] sm:$0xf0]  ;;  %v3569_v49 = vor.u32 %v4310_v36, %v3568_v34  ;;  %v3552_v56 = vld [vmem:[#allocation2 + $0x4c8] sm:$0xf]  ;;  %v3042_v5 = vld [vmem:[#allocation2 + $0xd8] sm:$0xf0] }
  0x7e   :  { %1508 = vmatpush.bf16.msrb.mxu3 %v3185_v11  ;;  %v3232_v11 = vld [vmem:[#allocation2 + $0x248] sm:$0xf]  ;;  %v4218_v42 = vld [vmem:[#allocation2 + $0x214] sm:$0xf0] }
  0x7f   :  { %1476 = vmatpush.bf16.msrb.mxu2 %v3581_v15  ;;  %1521 = vmatpush.bf16.msra.mxu0 %v3313_v18  ;;  %v4258_v15 = vld [vmem:[#allocation2 + $0x354] sm:$0xf0]  ;;  %v3201_v59 = vor.u32 %v4218_v42, %v3200_v41  ;;  %v3536_v8 = vld [vmem:[#allocation2 + $0x4a8] sm:$0xf]  ;;  %v3138_v41 = vld [vmem:[#allocation2 + $0x198] sm:$0xf0] }
  0x80   :  { %1496 = vmatpush.bf16.msrb.mxu1 %v3041_v21  ;;  %v4158_v18 = vld [vmem:[#allocation2 + $0x34] sm:$0xf0]  ;;  %v3233_v21 = vor.u32 %v4226_v13, %v3232_v11  ;;  %v3361_v22 = vor.u32 %v4258_v15, %v3360_v14  ;;  %v3664_v11 = vld [vmem:[#allocation2 + $0x5a8] sm:$0xf]  ;;  %v3045_v13 = vor.u32 %v4176_v4, %v3042_v5  ;;  %v4208_v14 = vld [vmem:[#allocation2 + $0x1cc] sm:$0xf] }
  0x81   :  { %v4306_v58 = vld [vmem:[#allocation2 + $0x4d4] sm:$0xf0]  ;;  %v3170_v15 = vld [vmem:[#allocation2 + $0x1d8] sm:$0xf0]  ;;  %v3648_v23 = vld [vmem:[#allocation2 + $0x588] sm:$0xf] }
  0x82   :  { %1509 = vmatpush.bf16.msrb.mxu3 %v3169_v25  ;;  %1477 = vmatmul.bf16.vlgmr.msrb.gmra.mxu2 %v4742_v35  ;;  %v2961_v25 = vor.u32 %v4158_v18, %v2960_v17  ;;  %v4338_v62 = vld [vmem:[#allocation2 + $0x5d4] sm:$0xf0]  ;;  %v4172_v17 = vld [vmem:[#allocation2 + $0xac] sm:$0xf]  ;;  %v3026_v18 = vld [vmem:[#allocation2 + $0xb8] sm:$0xf0] }
  0x83   :  { %1534 = vmatpush.bf16.msra.mxu2 %v3441_v19  ;;  %1522 = vmatpush.bf16.msra.mxu0 %v3297_v31  ;;  %v3088_v19 = vld [vmem:[#allocation2 + $0x128] sm:$0xf]  ;;  %v4154_v31 = vld [vmem:[#allocation2 + $0x14] sm:$0xf0]  ;;  %v4192_v4 = vld [vmem:[#allocation2 + $0x14c] sm:$0xf] }
  0x84   :  { %1497 = vmatpush.bf16.msrb.mxu1 %v3025_v37  ;;  %v3089_v29 = vor.u32 %v4190_v20, %v3088_v19  ;;  %v3696_v37 = vld [vmem:[#allocation2 + $0x5e8] sm:$0xf]  ;;  %v2945_v43 = vor.u32 %v4154_v31, %v2944_v28  ;;  %v4330_v24 = vld [vmem:[#allocation2 + $0x594] sm:$0xf0]  ;;  %v3010_v31 = vld [vmem:[#allocation2 + $0x98] sm:$0xf0] }
  0x85   :  { %v3697_v54 = vor.u32 %v4342_v40, %v3696_v37  ;;  %v3520_v20 = vld [vmem:[#allocation2 + $0x488] sm:$0xf]  ;;  %v4294_v34 = vld [vmem:[#allocation2 + $0x474] sm:$0xf0]  ;;  %v4200_v40 = vld [vmem:[#allocation2 + $0x18c] sm:$0xf] }
  0x86   :  { %1510 = vmatpush.bf16.msrb.mxu3 %v3153_v39  ;;  %v3345_v39 = vor.u32 %v4254_v27, %v3344_v26  ;;  %v4204_v26 = vld [vmem:[#allocation2 + $0x1ac] sm:$0xf]  ;;  %v3154_v27 = vld [vmem:[#allocation2 + $0x1b8] sm:$0xf0]  ;;  %v3632_v37 = vld [vmem:[#allocation2 + $0x568] sm:$0xf] }
  0x87   :  { %1535 = vmatpush.bf16.msra.mxu2 %v3425_v32  ;;  %1523 = vmatpush.bf16.msra.mxu0 %v3281_v44  ;;  %v3072_v32 = vld [vmem:[#allocation2 + $0x108] sm:$0xf]  ;;  %v3157_v36 = vor.u32 %v4204_v26, %v3154_v27  ;;  %v3106_v5 = vld [vmem:[#allocation2 + $0x158] sm:$0xf0] }
  0x88   :  { %1498 = vmatpush.bf16.msrb.mxu1 %v3009_v48  ;;  %v3328_v44 = vld [vmem:[#allocation2 + $0x308] sm:$0xf]  ;;  %v3073_v48 = vor.u32 %v4186_v33, %v3072_v32  ;;  %v3649_v32 = vor.u32 %v4330_v24, %v3648_v23  ;;  %v4152_v24 = vld [vmem:[#allocation2 + $0xc] sm:$0xf] }
  0x89   :  { %v3504_v33 = vld [vmem:[#allocation2 + $0x468] sm:$0xf] }
  0x8a   :  { %1511 = vmatpush.bf16.msrb.mxu3 %v3137_v53  ;;  %3719 = vmatmul.msk.bf16.vlgmr.msrb.gmra.mxu0 %vm1309_vm0, %v4730_v45  ;;  %v4346_v53 = vld [vmem:[#allocation2 + $0x614] sm:$0xf0]  ;;  %v3505_v42 = vor.u32 %v4294_v34, %v3504_v33  ;;  %v4240_v33 = vld [vmem:[#allocation2 + $0x2cc] sm:$0xf]  ;;  %v3298_v34 = vld [vmem:[#allocation2 + $0x2d8] sm:$0xf0] }
  0x8b   :  { %1536 = vmatpush.bf16.msra.mxu2 %v3409_v46  ;;  %1524 = vmatpush.bf16.msra.mxu0 %v3265_v60  ;;  %v4250_v46 = vld [vmem:[#allocation2 + $0x314] sm:$0xf0]  ;;  %v3713_v0 = vor.u32 %v4346_v53, %v3712_v52 }
  0x8c   :  { %1499 = vmatpush.bf16.msrb.mxu1 %v2993_v63  ;;  %v3329_v60 = vor.u32 %v4250_v46, %v3328_v44  ;;  %v3061_v63 = vor.u32 %v4180_v47, %v3058_v50  ;;  %v2994_v44 = vld [vmem:[#allocation2 + $0x78] sm:$0xf0]  ;;  %v3488_v47 = vld [vmem:[#allocation2 + $0x448] sm:$0xf]  ;;  %v4322_v52 = vld [vmem:[#allocation2 + $0x554] sm:$0xf0] }
  0x8d   :  { %v3616_v50 = vld [vmem:[#allocation2 + $0x548] sm:$0xf] }
  0x8e   :  { %1512 = vmatpush.bf16.msrb.mxu3 %v3121_v3  ;;  %v3553_v3 = vor.u32 %v4306_v58, %v3552_v56  ;;  %v3122_v56 = vld [vmem:[#allocation2 + $0x178] sm:$0xf0] }
  0x8f   :  { %1537 = vmatpush.bf16.msra.mxu2 %v3393_v61  ;;  %1525 = vmatpush.bf16.msra.mxu0 %v3249_v9  ;;  %v3680_v61 = vld [vmem:[#allocation2 + $0x5c8] sm:$0xf]  ;;  %v4302_v9 = vld [vmem:[#allocation2 + $0x4b4] sm:$0xf0] }
  0x90   :  { %1500 = vmatpush.bf16.msrb.mxu1 %v2977_v12  ;;  %v3681_v6 = vor.u32 %v4338_v62, %v3680_v61  ;;  %v4334_v12 = vld [vmem:[#allocation2 + $0x5b4] sm:$0xf0]  ;;  %v3617_v61 = vor.u32 %v4322_v52, %v3616_v50  ;;  %v3472_v62 = vld [vmem:[#allocation2 + $0x428] sm:$0xf]  ;;  %v4236_v50 = vld [vmem:[#allocation2 + $0x2ac] sm:$0xf] }
  0x91   :  { %v3665_v19 = vor.u32 %v4334_v12, %v3664_v11  ;;  %v4282_v12 = vld [vmem:[#allocation2 + $0x414] sm:$0xf0]  ;;  %v3282_v52 = vld [vmem:[#allocation2 + $0x2b8] sm:$0xf0] }
  0x92   :  { %1513 = vmatpush.bf16.msrb.mxu3 %v3105_v16  ;;  %v3537_v16 = vor.u32 %v4302_v9, %v3536_v8  ;;  %v4156_v8 = vld [vmem:[#allocation2 + $0x2c] sm:$0xf]  ;;  %v2962_v9 = vld [vmem:[#allocation2 + $0x38] sm:$0xf0] }
  0x93   :  { %1538 = vmatpush.bf16.msra.mxu2 %v3377_v10  ;;  %1526 = vmatpush.bf16.msra.mxu0 %v3233_v21  ;;  %v3189_v10 = vor.u32 %v4212_v1, %v3186_v2  ;;  %v4298_v21 = vld [vmem:[#allocation2 + $0x494] sm:$0xf0]  ;;  %v3600_v1 = vld [vmem:[#allocation2 + $0x528] sm:$0xf] }
  0x94   :  { %1501 = vmatpush.bf16.msrb.mxu1 %v2961_v25  ;;  %v3029_v25 = vor.u32 %v4172_v17, %v3026_v18  ;;  %v3521_v28 = vor.u32 %v4298_v21, %v3520_v20  ;;  %v4318_v2 = vld [vmem:[#allocation2 + $0x534] sm:$0xf0]  ;;  %v3314_v17 = vld [vmem:[#allocation2 + $0x2f8] sm:$0xf0]  ;;  %v4276_v18 = vld [vmem:[#allocation2 + $0x3ec] sm:$0xf] }
  0x95   :  { %v3601_v11 = vor.u32 %v4318_v2, %v3600_v1  ;;  %v3442_v20 = vld [vmem:[#allocation2 + $0x3f8] sm:$0xf0]  ;;  %v4188_v21 = vld [vmem:[#allocation2 + $0x12c] sm:$0xf] }
  0x96   :  { %1514 = vmatpush.bf16.msrb.mxu3 %v3089_v29  ;;  %v4168_v29 = vld [vmem:[#allocation2 + $0x8c] sm:$0xf] }
  0x97   :  { %1539 = vmatpush.bf16.msra.mxu2 %v3361_v22  ;;  %1527 = vmatpush.bf16.msra.mxu0 %v3217_v38  ;;  %v3173_v22 = vor.u32 %v4208_v14, %v3170_v15  ;;  %v4326_v38 = vld [vmem:[#allocation2 + $0x574] sm:$0xf0]  ;;  %v3109_v15 = vor.u32 %v4192_v4, %v3106_v5  ;;  %v4232_v2 = vld [vmem:[#allocation2 + $0x28c] sm:$0xf] }
  0x98   :  { %1502 = vmatpush.bf16.msrb.mxu1 %v2945_v43  ;;  %v4164_v43 = vld [vmem:[#allocation2 + $0x6c] sm:$0xf]  ;;  %v3633_v46 = vor.u32 %v4326_v38, %v3632_v37  ;;  %v4314_v14 = vld [vmem:[#allocation2 + $0x514] sm:$0xf0]  ;;  %v3426_v38 = vld [vmem:[#allocation2 + $0x3d8] sm:$0xf0] }
  0x99   :  { %v2997_v53 = vor.u32 %v4164_v43, %v2994_v44  ;;  %v3698_v43 = vld [vmem:[#allocation2 + $0x5f8] sm:$0xf0]  ;;  %v3301_v44 = vor.u32 %v4240_v33, %v3298_v34  ;;  %v4264_v5 = vld [vmem:[#allocation2 + $0x38c] sm:$0xf] }
  0x9a   :  { %1515 = vmatpush.bf16.msrb.mxu3 %v3073_v48  ;;  %v4290_v48 = vld [vmem:[#allocation2 + $0x454] sm:$0xf0]  ;;  %v4256_v33 = vld [vmem:[#allocation2 + $0x34c] sm:$0xf]  ;;  %v3362_v34 = vld [vmem:[#allocation2 + $0x358] sm:$0xf0] }
  0x9b   :  { %1540 = vmatpush.bf16.msra.mxu2 %v3345_v39  ;;  %1528 = vmatpush.bf16.msra.mxu0 %v3201_v59  ;;  %v3013_v39 = vor.u32 %v4168_v29, %v3010_v31  ;;  %v3489_v58 = vor.u32 %v4290_v48, %v3488_v47  ;;  %v4160_v59 = vld [vmem:[#allocation2 + $0x4c] sm:$0xf]  ;;  %v3570_v29 = vld [vmem:[#allocation2 + $0x4f8] sm:$0xf0]  ;;  %v3445_v31 = vor.u32 %v4276_v18, %v3442_v20 }
  0x9c   :  { %1547 = vmatpush.bf16.msra.mxu1 %v3569_v49  ;;  %v3141_v49 = vor.u32 %v4200_v40, %v3138_v41  ;;  %v3074_v40 = vld [vmem:[#allocation2 + $0x118] sm:$0xf0] }
  0x9d   :  { %1516 = vmatmul.bf16.vlgmr.msrb.gmra.mxu3 %v4723_v7  ;;  %1503 = vmatmul.bf16.vlgmr.msrb.gmra.mxu1 %v4714_v55  ;;  %v3554_v47 = vld [vmem:[#allocation2 + $0x4d8] sm:$0xf0] }
  0x9e   :  { %1560 = vmatpush.bf16.msra.mxu3 %v3697_v54  ;;  %1529 = vmatmul.bf16.vlgmr.msra.gmra.mxu0 %v4712_v51  ;;  %v4196_v54 = vld [vmem:[#allocation2 + $0x16c] sm:$0xf] }
  0x9f   :  { %1541 = vmatpush.bf16.msra.mxu2 %v3329_v60  ;;  %1580 = vmatpush.bf16.msrb.mxu0 %v3713_v0  ;;  %v2978_v60 = vld [vmem:[#allocation2 + $0x58] sm:$0xf0]  ;;  %v3125_v0 = vor.u32 %v4196_v54, %v3122_v56  ;;  %v4268_v54 = vld [vmem:[#allocation2 + $0x3ac] sm:$0xf] }
  0xa0   :  { %1548 = vmatpush.bf16.msra.mxu1 %v3553_v3  ;;  %v2981_v3 = vor.u32 %v4160_v59, %v2978_v60  ;;  %v3410_v56 = vld [vmem:[#allocation2 + $0x3b8] sm:$0xf0]  ;;  %v4336_v59 = vld [vmem:[#allocation2 + $0x5cc] sm:$0xf] }
  0xa1   :  { %v3682_v60 = vld [vmem:[#allocation2 + $0x5d8] sm:$0xf0]  ;;  %v3413_v1 = vor.u32 %v4268_v54, %v3410_v56 }
  0xa2   :  { %1561 = vmatpush.bf16.msra.mxu3 %v3681_v6  ;;  %1542 = vmatmul.bf16.vlgmr.msra.gmra.mxu2 %v4716_v57  ;;  %v3685_v4 = vor.u32 %v4336_v59, %v3682_v60  ;;  %v4320_v59 = vld [vmem:[#allocation2 + $0x54c] sm:$0xf]  ;;  %v3618_v60 = vld [vmem:[#allocation2 + $0x558] sm:$0xf0] }
  0xa3   :  { %1586 = vmatpush.bf16.msrb.mxu2 %v3061_v63  ;;  %1599 = vmatpush.bf16.msra.mxu0 %v3189_v10  ;;  %v4286_v63 = vld [vmem:[#allocation2 + $0x434] sm:$0xf0]  ;;  %v3456_v10 = vld [vmem:[#allocation2 + $0x408] sm:$0xf] }
  0xa4   :  { %1549 = vmatpush.bf16.msra.mxu1 %v3537_v16  ;;  %v3473_v6 = vor.u32 %v4286_v63, %v3472_v62  ;;  %v4244_v16 = vld [vmem:[#allocation2 + $0x2ec] sm:$0xf]  ;;  %v3457_v23 = vor.u32 %v4282_v12, %v3456_v10  ;;  %v3538_v63 = vld [vmem:[#allocation2 + $0x4b8] sm:$0xf0] }
  0xa5   :  { %v3317_v27 = vor.u32 %v4244_v16, %v3314_v17  ;;  %v4300_v62 = vld [vmem:[#allocation2 + $0x4ac] sm:$0xf]  ;;  %v3666_v10 = vld [vmem:[#allocation2 + $0x5b8] sm:$0xf0] }
  0xa6   :  { %1562 = vmatpush.bf16.msra.mxu3 %v3665_v19  ;;  %v2965_v19 = vor.u32 %v4156_v8, %v2962_v9  ;;  %v3541_v8 = vor.u32 %v4300_v62, %v3538_v63  ;;  %v4332_v9 = vld [vmem:[#allocation2 + $0x5ac] sm:$0xf]  ;;  %v3250_v17 = vld [vmem:[#allocation2 + $0x278] sm:$0xf0] }
  0xa7   :  { %1587 = vmatpush.bf16.msrb.mxu2 %v3045_v13  ;;  %1600 = vmatpush.bf16.msra.mxu0 %v3173_v22  ;;  %v3584_v13 = vld [vmem:[#allocation2 + $0x508] sm:$0xf]  ;;  %v3090_v22 = vld [vmem:[#allocation2 + $0x138] sm:$0xf0]  ;;  %v4228_v16 = vld [vmem:[#allocation2 + $0x26c] sm:$0xf]  ;;  %v3669_v18 = vor.u32 %v4332_v9, %v3666_v10 }
  0xa8   :  { %1550 = vmatpush.bf16.msra.mxu1 %v3521_v28  ;;  %v3585_v26 = vor.u32 %v4314_v14, %v3584_v13  ;;  %v4308_v28 = vld [vmem:[#allocation2 + $0x4ec] sm:$0xf]  ;;  %v3522_v14 = vld [vmem:[#allocation2 + $0x498] sm:$0xf0] }
  0xa9   :  { %v3573_v41 = vor.u32 %v4308_v28, %v3570_v29  ;;  %v4296_v13 = vld [vmem:[#allocation2 + $0x48c] sm:$0xf]  ;;  %v3234_v29 = vld [vmem:[#allocation2 + $0x258] sm:$0xf0] }
  0xaa   :  { %1563 = vmatpush.bf16.msra.mxu3 %v3649_v32  ;;  %v3093_v32 = vor.u32 %v4188_v21, %v3090_v22  ;;  %v3525_v21 = vor.u32 %v4296_v13, %v3522_v14  ;;  %v4224_v28 = vld [vmem:[#allocation2 + $0x24c] sm:$0xf]  ;;  %v3474_v63 = vld [vmem:[#allocation2 + $0x438] sm:$0xf0] }
  0xab   :  { %1588 = vmatpush.bf16.msrb.mxu2 %v3029_v25  ;;  %1601 = vmatpush.bf16.msra.mxu0 %v3157_v36  ;;  %v2946_v25 = vld [vmem:[#allocation2 + $0x18] sm:$0xf0]  ;;  %v4272_v36 = vld [vmem:[#allocation2 + $0x3cc] sm:$0xf] }
  0xac   :  { %1551 = vmatpush.bf16.msra.mxu1 %v3505_v42  ;;  %v2949_v37 = vor.u32 %v4152_v24, %v2946_v25  ;;  %v4340_v42 = vld [vmem:[#allocation2 + $0x5ec] sm:$0xf]  ;;  %v3429_v48 = vor.u32 %v4272_v36, %v3426_v38  ;;  %v3650_v24 = vld [vmem:[#allocation2 + $0x598] sm:$0xf0]  ;;  %v3253_v25 = vor.u32 %v4228_v16, %v3250_v17 }
  0xad   :  { %v4324_v38 = vld [vmem:[#allocation2 + $0x56c] sm:$0xf]  ;;  %v3714_v9 = vld [vmem:[#allocation2 + $0x618] sm:$0xf0] }
  0xae   :  { %1564 = vmatpush.bf16.msra.mxu3 %v3633_v46  ;;  %3720 = vmatmul.msk.bf16.vlgmr.msrb.gmra.mxu0 %vm1309_vm0, %v4730_v45  ;;  %v4304_v46 = vld [vmem:[#allocation2 + $0x4cc] sm:$0xf]  ;;  %v3602_v13 = vld [vmem:[#allocation2 + $0x538] sm:$0xf0] }
  0xaf   :  { %1589 = vmatpush.bf16.msrb.mxu2 %v3013_v39  ;;  %1602 = vmatpush.bf16.msra.mxu0 %v3141_v49  ;;  %v4184_v39 = vld [vmem:[#allocation2 + $0x10c] sm:$0xf]  ;;  %v3458_v17 = vld [vmem:[#allocation2 + $0x418] sm:$0xf0] }
  0xb0   :  { %1552 = vmatpush.bf16.msra.mxu1 %v3489_v58  ;;  %v3077_v49 = vor.u32 %v4184_v39, %v3074_v40  ;;  %v3557_v58 = vor.u32 %v4304_v46, %v3554_v47  ;;  %v3634_v39 = vld [vmem:[#allocation2 + $0x578] sm:$0xf0]  ;;  %v4284_v62 = vld [vmem:[#allocation2 + $0x42c] sm:$0xf] }
  0xb1   :  { %v4280_v16 = vld [vmem:[#allocation2 + $0x40c] sm:$0xf] }
  0xb2   :  { %1565 = vmatpush.bf16.msra.mxu3 %v3617_v61  ;;  %v3285_v61 = vor.u32 %v4236_v50, %v3282_v52  ;;  %v3637_v50 = vor.u32 %v4324_v38, %v3634_v39  ;;  %v4252_v52 = vld [vmem:[#allocation2 + $0x32c] sm:$0xf] }
  0xb3   :  { %1590 = vmatpush.bf16.msrb.mxu2 %v2997_v53  ;;  %1603 = vmatpush.bf16.msra.mxu0 %v3125_v0  ;;  %v3701_v53 = vor.u32 %v4340_v42, %v3698_v43  ;;  %v4765_v0 = vld [vmem:[%s5362_s7] sm:$0xf]  ;;  %v4288_v42 = vld [vmem:[#allocation2 + $0x44c] sm:$0xf]  ;;  %v3490_v43 = vld [vmem:[#allocation2 + $0x458] sm:$0xf0] }
  0xb4   :  { %1553 = vmatpush.bf16.msra.mxu1 %v3473_v6  ;;  %v3394_v6 = vld [vmem:[#allocation2 + $0x398] sm:$0xf0] }
  0xb6   :  { %1566 = vmatpush.bf16.msra.mxu3 %v3601_v11  ;;  %v321_v11 = vperm.slane %v4765_v0, 0 }
  0xb7   :  { %1591 = vmatpush.bf16.msrb.mxu2 %v2981_v3  ;;  %1604 = vmatpush.bf16.msra.mxu0 %v3109_v15  ;;  %v3266_v3 = vld [vmem:[#allocation2 + $0x298] sm:$0xf0]  ;;  %v3397_v15 = vor.u32 %v4264_v5, %v3394_v6  ;;  %v3621_v5 = vor.u32 %v4320_v59, %v3618_v60 }
  0xb8   :  { %1554 = vmatpush.bf16.msra.mxu1 %v3457_v23  ;;  %v3269_v12 = vor.u32 %v4232_v2, %v3266_v3  ;;  %v4328_v23 = vld [vmem:[#allocation2 + $0x58c] sm:$0xf]  ;;  %v3202_v3 = vld [vmem:[#allocation2 + $0x218] sm:$0xf0] }
  0xb9   :  { %v4216_v2 = vld [vmem:[#allocation2 + $0x20c] sm:$0xf]  ;;  %v3330_v6 = vld [vmem:[#allocation2 + $0x318] sm:$0xf0] }
  0xba   :  { %1567 = vmatpush.bf16.msra.mxu3 %v3585_v26  ;;  %v4292_v26 = vld [vmem:[#allocation2 + $0x46c] sm:$0xf] }
  0xbb   :  { %1592 = vmatpush.bf16.msrb.mxu2 %v2965_v19  ;;  %1605 = vmatpush.bf16.msra.mxu0 %v3093_v32  ;;  %v4260_v19 = vld [vmem:[#allocation2 + $0x36c] sm:$0xf]  ;;  %v1322_v20 = vpop.f32.mrf.mxu0  ;;  %v1335_v32 = vpop.f32.mrf.mxu1 }
  0xbc   :  { %1612 = vmatpush.bf16.msrb.mxu1 %v3317_v27  ;;  %v1323_v22 = vadd.f32 %v1322_v20, %v321_v11  ;;  %v3506_v27 = vld [vmem:[#allocation2 + $0x478] sm:$0xf0]  ;;  %v3477_v11 = vor.u32 %v4284_v62, %v3474_v63 }
  0xbd   :  { %1555 = vmatmul.bf16.vlgmr.msra.gmra.mxu1 %v4740_v30  ;;  %1568 = vmatmul.bf16.vlgmr.msra.gmra.mxu3 %v4742_v35 }
  0xbe   :  { %1625 = vmatpush.bf16.msrb.mxu3 %v3445_v31  ;;  %v3653_v31 = vor.u32 %v4328_v23, %v3650_v24  ;;  %v1336_v36 = vadd.f32 %v1335_v32, %v1323_v22  ;;  %v4312_v22 = vld [vmem:[#allocation2 + $0x50c] sm:$0xf]  ;;  %v3586_v23 = vld [vmem:[#allocation2 + $0x518] sm:$0xf0]  ;;  %v322_v32 = vperm.slane %v4765_v0, 1 }
  0xbf   :  { %1593 = vmatpush.bf16.msrb.mxu2 %v2949_v37  ;;  %1606 = vmatpush.bf16.msra.mxu0 %v3077_v49  ;;  %v3509_v37 = vor.u32 %v4292_v26, %v3506_v27  ;;  %v3218_v49 = vld [vmem:[#allocation2 + $0x238] sm:$0xf0]  ;;  %v3589_v24 = vor.u32 %v4312_v22, %v3586_v23 }
  0xc0   :  { %1613 = vmatpush.bf16.msrb.mxu1 %v3301_v44  ;;  %v1348_v40 = vpop.f32.mrf.mxu2  ;;  %v3365_v44 = vor.u32 %v4256_v33, %v3362_v34  ;;  %v1361_v47 = vpop.f32.mrf.mxu3 }
  0xc1   :  { %v1349_v46 = vadd.f32 %v1348_v40, %v1336_v36 }
  0xc2   :  { %1626 = vmatpush.bf16.msrb.mxu3 %v3429_v48  ;;  %1594 = vmatmul.bf16.vlgmr.msrb.gmra.mxu2 %v4714_v55  ;;  %v3378_v55 = vld [vmem:[#allocation2 + $0x378] sm:$0xf0]  ;;  %v4220_v48 = vld [vmem:[#allocation2 + $0x22c] sm:$0xf] }
  0xc3   :  { %1638 = vmatpush.bf16.msra.mxu2 %v3573_v41  ;;  %1651 = vmatpush.bf16.msrb.mxu0 %v3701_v53  ;;  %v3237_v41 = vor.u32 %v4224_v28, %v3234_v29  ;;  %v3346_v53 = vld [vmem:[#allocation2 + $0x338] sm:$0xf0]  ;;  %v1324_v54 = vpop.f32.mrf.mxu0  ;;  %v1362_v56 = vadd.f32 %v1361_v47, %v1349_v46  ;;  %v1337_v10 = vpop.f32.mrf.mxu1 }
  0xc4   :  { %1614 = vmatpush.bf16.msrb.mxu1 %v3285_v61  ;;  %1607 = vmatmul.bf16.vlgmr.msra.gmra.mxu0 %v4723_v7  ;;  %v3381_v7 = vor.u32 %v4260_v19, %v3378_v55  ;;  %v3221_v61 = vor.u32 %v4220_v48, %v3218_v49 }
  0xc6   :  { %1627 = vmatpush.bf16.msrb.mxu3 %v3413_v1  ;;  %v3349_v1 = vor.u32 %v4252_v52, %v3346_v53 }
  0xc7   :  { %1639 = vmatpush.bf16.msra.mxu2 %v3557_v58  ;;  %1652 = vmatpush.bf16.msrb.mxu0 %v3685_v4  ;;  %v3493_v58 = vor.u32 %v4288_v42, %v3490_v43  ;;  %v4248_v4 = vld [vmem:[#allocation2 + $0x30c] sm:$0xf] }
  0xc8   :  { %1615 = vmatpush.bf16.msrb.mxu1 %v3269_v12  ;;  %v4316_v12 = vld [vmem:[#allocation2 + $0x52c] sm:$0xf]  ;;  %v1350_v14 = vpop.f32.mrf.mxu2  ;;  %v1363_v55 = vpop.f32.mrf.mxu3 }
  0xc9   :  { %v3605_v20 = vor.u32 %v4316_v12, %v3602_v13 }
  0xca   :  { %1628 = vmatpush.bf16.msrb.mxu3 %v3397_v15  ;;  %v3205_v15 = vor.u32 %v4216_v2, %v3202_v3 }
  0xcb   :  { %1640 = vmatpush.bf16.msra.mxu2 %v3541_v8  ;;  %1653 = vmatpush.bf16.msrb.mxu0 %v3669_v18  ;;  %v4344_v8 = vld [vmem:[#allocation2 + $0x60c] sm:$0xf]  ;;  %v3333_v18 = vor.u32 %v4248_v4, %v3330_v6  ;;  %v323_v6 = vperm.slane %v4765_v0, 2 }
  0xcc   :  { %1616 = vmatpush.bf16.msrb.mxu1 %v3253_v25  ;;  %v3717_v19 = vor.u32 %v4344_v8, %v3714_v9 }
  0xce   :  { %1629 = vmatpush.bf16.msrb.mxu3 %v3381_v7 }
  0xcf   :  { %1641 = vmatpush.bf16.msra.mxu2 %v3525_v21  ;;  %1654 = vmatpush.bf16.msrb.mxu0 %v3653_v31  ;;  %v3461_v21 = vor.u32 %v4280_v16, %v3458_v17  ;;  %v324_v16 = vperm.slane %v4765_v0, 3 }
  0xd0   :  { %1617 = vmatpush.bf16.msrb.mxu1 %v3237_v41  ;;  %v1400_v25 = vpop.f32.mrf.mxu2 }
  0xd2   :  { %1630 = vmatpush.bf16.msrb.mxu3 %v3365_v44 }
  0xd3   :  { %1642 = vmatpush.bf16.msra.mxu2 %v3509_v37  ;;  %1655 = vmatpush.bf16.msrb.mxu0 %v3637_v50 }
  0xd4   :  { %1618 = vmatpush.bf16.msrb.mxu1 %v3221_v61 }
  0xd6   :  { %1631 = vmatpush.bf16.msrb.mxu3 %v3349_v1 }
  0xd7   :  { %1643 = vmatpush.bf16.msra.mxu2 %v3493_v58  ;;  %1656 = vmatpush.bf16.msrb.mxu0 %v3621_v5  ;;  %v1374_v26 = vpop.f32.mrf.mxu0 }
  0xd8   :  { %1619 = vmatpush.bf16.msrb.mxu1 %v3205_v15  ;;  %v1375_v27 = vadd.f32 %v1374_v26, %v1362_v56  ;;  %v1402_v28 = vpop.f32.mrf.mxu2 }
  0xda   :  { %1632 = vmatpush.bf16.msrb.mxu3 %v3333_v18  ;;  %v1387_v7 = vpop.f32.mrf.mxu1 }
  0xdb   :  { %1644 = vmatpush.bf16.msra.mxu2 %v3477_v11  ;;  %1657 = vmatpush.bf16.msrb.mxu0 %v3605_v20  ;;  %v1388_v29 = vadd.f32 %v1387_v7, %v1375_v27 }
  0xdc   :  { %1671 = vmatpush.bf16.msra.mxu1 %v3717_v19 }
  0xdd   :  { %1620 = vmatmul.bf16.vlgmr.msrb.gmra.mxu1 %v4712_v51  ;;  %1633 = vmatmul.bf16.vlgmr.msrb.gmra.mxu3 %v4716_v57  ;;  %v4774_v31 = vadd.f32 %v1400_v25, %v1388_v29 }
  0xdf   :  { %1645 = vmatpush.bf16.msra.mxu2 %v3461_v21  ;;  %1658 = vmatpush.bf16.msrb.mxu0 %v3589_v24  ;;  %v1376_v51 = vpop.f32.mrf.mxu0  ;;  %v1677_v21 = vlaneseq  ;;  %v1698_v7 = vrot.slane %v4774_v31, 4 }
  0xe0   :  { %v1413_v57 = vpop.f32.mrf.mxu3 }
  0xe1   :  { %v1414_v33 = vadd.f32 %v1413_v57, %v322_v32  ;;  %v4786_v25 = vand.u32 127, %v1677_v21  ;;  %v4360_v21 = vld [vmem:[%s5357_s2 + $0x64] sm:$0xf0] }
  0xe2   :  { %1646 = vmatmul.bf16.vlgmr.msra.gmra.mxu2 %v4740_v30  ;;  %1659 = vmatmul.bf16.vlgmr.msrb.gmra.mxu0 %v4742_v35  ;;  %v1389_v34 = vpop.f32.mrf.mxu1 }
  0xe3   :  { %v1699_v34 = vadd.f32 %v1698_v7, %v4774_v31  ;;  %v3901_v7 = vld [vmem:[%s5357_s2 + $0x160] sm:$0xf]  ;;  %vm2528_vm9 = vcmp.lt.s32.totalorder %v4786_v25, 98  ;;  %vm2656_vm13 = vcmp.lt.s32.totalorder %v4786_v25, 49 }
  0xe5   :  { %v1426_v30 = vpop.f32.mrf.mxu2 }
  0xe6   :  { %v1427_v36 = vadd.f32 %v1426_v30, %v1414_v33  ;;  %v1681_v33 = vadd.s32 384, %v4786_v25 }
  0xe8   :  { %v1415_v37 = vpop.f32.mrf.mxu3  ;;  %vm1685_vm1 = vcmp.lt.s32.totalorder %v1681_v33, 392 }
  0xed   :  { %3721 = vmatmul.msk.bf16.vlgmr.msra.gmra.mxu1 %vm1309_vm0, %v4730_v45  ;;  %v1428_v35 = vpop.f32.mrf.mxu2 }
  0xf7   :  { %v1439_v38 = vpop.f32.mrf.mxu0 }
  0xf8   :  { %v1440_v39 = vadd.f32 %v1439_v38, %v1427_v36 }
  0xfa   :  { %v1452_v40 = vpop.f32.mrf.mxu1 }
  0xfb   :  { %v1453_v41 = vadd.f32 %v1452_v40, %v1440_v39  ;;  %v1700_v40 = vrot.slane %v1699_v34, 2 }
  0xff   :  { %v1441_v42 = vpop.f32.mrf.mxu0 }
 0x100   :  { %v1465_v43 = vpop.f32.mrf.mxu3 }
 0x101   :  { %v1466_v44 = vadd.f32 %v1465_v43, %v1453_v41  ;;  %v4609_v43 = vmov 0.0  }
 0x102   :  { %v1454_v48 = vpop.f32.mrf.mxu1 }
 0x105   :  { %v1478_v46 = vpop.f32.mrf.mxu2 }
 0x106   :  { %v1479_v47 = vadd.f32 %v1478_v46, %v1466_v44  ;;  %v3722_v44 = vsel %vm1685_vm1, 1.0, %v4609_v43  ;;  %vm2784_vm1 = vcmp.lt.s32.totalorder %v4786_v25, 32 }
 0x107   :  { %v1491_v49 = vpop.f32.mrf.mxu0 }
 0x108   :  { %v1467_v45 = vpop.f32.mrf.mxu3  ;;  %v4779_v50 = vadd.f32 %v1491_v49, %v1479_v47 }
 0x109   :  { %v1701_v45 = vadd.f32 %v1700_v40, %v1699_v34 }
 0x10a   :  { %v1704_v24 = vrot.slane %v4779_v50, 4 }
 0x10c   :  { %v1705_v51 = vadd.f32 %v1704_v24, %v4779_v50  ;;  %v4376_v24 = vld [vmem:[%s5357_s2 + $0xe4] sm:$0xf0] }
 0x10d   :  { %v1480_v52 = vpop.f32.mrf.mxu2 }
 0x10e   :  { %v1706_v37 = vrot.slane %v1705_v51, 2 }
 0x10f   :  { %v1493_v53 = vpop.f32.mrf.mxu0 }
 0x110   :  { %v1707_v48 = vadd.f32 %v1706_v37, %v1705_v51 }
 0x11a   :  { %v1504_v56 = vpop.f32.mrf.mxu1 }
 0x11b   :  { %v1530_v54 = vpop.f32.mrf.mxu0  ;;  %v1505_v10 = vadd.f32 %v1504_v56, %v323_v6  ;;  %v1702_v56 = vrot.slane %v1701_v45, 1 }
 0x120   :  { %v1517_v58 = vpop.f32.mrf.mxu3 }
 0x121   :  { %v1518_v13 = vadd.f32 %v1517_v58, %v1505_v10  ;;  %v4362_v10 = vld [vmem:[%s5357_s2 + $0x74] sm:$0xf0] }
 0x122   :  { %v1506_v61 = vpop.f32.mrf.mxu1 }
 0x123   :  { %v1532_v59 = vpop.f32.mrf.mxu0  ;;  %v1531_v15 = vadd.f32 %v1530_v54, %v1518_v13  ;;  %v1708_v54 = vrot.slane %v1707_v48, 1  ;;  %v4378_v13 = vld [vmem:[%s5357_s2 + $0xf4] sm:$0xf0] }
 0x125   :  { %v1543_v60 = vpop.f32.mrf.mxu2  ;;  %v1709_v61 = vadd.f32 %v1708_v54, %v1707_v48 }
 0x126   :  { %v1544_v17 = vadd.f32 %v1543_v60, %v1531_v15  ;;  %v4394_v15 = vld [vmem:[%s5357_s2 + $0x174] sm:$0xf0] }
 0x128   :  { %v1519_v62 = vpop.f32.mrf.mxu3 }
 0x12b   :  { %v1582_v63 = vpop.f32.mrf.mxu0 }
 0x12d   :  { %v1545_v1 = vpop.f32.mrf.mxu2 }
 0x133   :  { %v1584_v2 = vpop.f32.mrf.mxu0 }
 0x13a   :  { %v1556_v3 = vpop.f32.mrf.mxu1 }
 0x13b   :  { %v1557_v18 = vadd.f32 %v1556_v3, %v1544_v17 }
 0x140   :  { %v1569_v5 = vpop.f32.mrf.mxu3 }
 0x141   :  { %v1608_v4 = vpop.f32.mrf.mxu0  ;;  %v1570_v55 = vadd.f32 %v1569_v5, %v1557_v18  ;;  %v3973_v18 = vld [vmem:[%s5357_s2 + $0x1f0] sm:$0xf] }
 0x142   :  { %v1558_v8 = vpop.f32.mrf.mxu1 }
 0x143   :  { %v4783_v23 = vadd.f32 %v1582_v63, %v1570_v55  ;;  %v1703_v63 = vadd.f32 %v1702_v56, %v1701_v45  ;;  %v3773_v55 = vld [vmem:[%s5357_s2 + $0x60] sm:$0xf] }
 0x145   :  { %v1595_v9 = vpop.f32.mrf.mxu2  ;;  %v1710_v0 = vrot.slane %v4783_v23, 4 }
 0x146   :  { %v1596_v19 = vadd.f32 %v1595_v9, %v324_v16  ;;  %v3781_v9 = vld [vmem:[%s5357_s2 + $0x70] sm:$0xf] }
 0x147   :  { %v1711_v36 = vadd.f32 %v1710_v0, %v4783_v23  ;;  %v3965_v0 = vld [vmem:[%s5357_s2 + $0x1e0] sm:$0xf] }
 0x148   :  { %v1571_v12 = vpop.f32.mrf.mxu3  ;;  %v1609_v22 = vadd.f32 %v1608_v4, %v1596_v19  ;;  %v1722_v4 = vadd.f32 %v1709_v61, %v1703_v63  ;;  %v4410_v19 = vld [vmem:[%s5357_s2 + $0x1f4] sm:$0xf0] }
 0x149   :  { %v1610_v11 = vpop.f32.mrf.mxu0  ;;  %v1712_v41 = vrot.slane %v1711_v36, 2  ;;  %v3782_v12 = vor.u32 %v4362_v10, %v3781_v9 }
 0x14a   :  { %v3845_v11 = vld [vmem:[%s5357_s2 + $0xf0] sm:$0xf] }
 0x14b   :  { %v1713_v52 = vadd.f32 %v1712_v41, %v1711_v36  ;;  %v3846_v16 = vor.u32 %v4378_v13, %v3845_v11  ;;  %2194 = vmatpush.bf16.msra.mxu3 %v3782_v12  ;;  %v3765_v13 = vld [vmem:[%s5357_s2 + $0x50] sm:$0xf] }
 0x14d   :  { %v1597_v14 = vpop.f32.mrf.mxu2  ;;  %v1714_v58 = vrot.slane %v1713_v52, 1  ;;  %2207 = vmatpush.bf16.msrb.mxu1 %v3846_v16 }
 0x14e   :  { %v3909_v14 = vld [vmem:[%s5357_s2 + $0x170] sm:$0xf] }
 0x14f   :  { %v1715_v1 = vadd.f32 %v1714_v58, %v1713_v52  ;;  %v3910_v17 = vor.u32 %v4394_v15, %v3909_v14  ;;  %v4358_v14 = vld [vmem:[%s5357_s2 + $0x54] sm:$0xf0]  ;;  %v3829_v15 = vld [vmem:[%s5357_s2 + $0xd0] sm:$0xf] }
 0x150   :  { %v3766_v16 = vor.u32 %v4358_v14, %v3765_v13  ;;  %v3925_v13 = vld [vmem:[%s5357_s2 + $0x190] sm:$0xf]  ;;  %v4398_v14 = vld [vmem:[%s5357_s2 + $0x194] sm:$0xf0] }
 0x151   :  { %v1723_v6 = vadd.f32 %v1722_v4, %v1715_v1  ;;  %2220 = vmatpush.bf16.msrb.mxu2 %v3910_v17  ;;  %v4374_v17 = vld [vmem:[%s5357_s2 + $0xd4] sm:$0xf0] }
 0x15a   :  { %v1621_v20 = vpop.f32.mrf.mxu1 }
 0x15b   :  { %v1622_v26 = vadd.f32 %v1621_v20, %v1609_v22  ;;  %v3974_v20 = vor.u32 %v4410_v19, %v3973_v18  ;;  %v3837_v22 = vld [vmem:[%s5357_s2 + $0xe0] sm:$0xf]  ;;  %v3893_v18 = vld [vmem:[%s5357_s2 + $0x150] sm:$0xf]  ;;  %v4390_v19 = vld [vmem:[%s5357_s2 + $0x154] sm:$0xf0] }
 0x15d   :  { %2233 = vmatpush.bf16.msra.mxu0 %v3974_v20  ;;  %v3894_v20 = vor.u32 %v4390_v19, %v3893_v18  ;;  %v3789_v18 = vld [vmem:[%s5357_s2 + $0x80] sm:$0xf] }
 0x15f   :  { %v1660_v27 = vpop.f32.mrf.mxu0 }
 0x160   :  { %v1634_v28 = vpop.f32.mrf.mxu3 }
 0x161   :  { %v1635_v29 = vadd.f32 %v1634_v28, %v1622_v26  ;;  %v3774_v26 = vor.u32 %v4360_v21, %v3773_v55  ;;  %v4392_v28 = vld [vmem:[%s5357_s2 + $0x164] sm:$0xf0]  ;;  %v3830_v55 = vor.u32 %v4374_v17, %v3829_v15  ;;  %v3957_v21 = vld [vmem:[%s5357_s2 + $0x1d0] sm:$0xf]  ;;  %v3926_v15 = vor.u32 %v4398_v14, %v3925_v13  ;;  %v4387_v13 = vld [vmem:[%s5357_s2 + $0x144] sm:$0xf] }
 0x162   :  { %v1623_v32 = vpop.f32.mrf.mxu1  ;;  %v4348_v17 = vld [vmem:[%s5357_s2 + $0x4] sm:$0xf0]  ;;  %v3887_v14 = vld [vmem:[%s5357_s2 + $0x148] sm:$0xf0] }
 0x163   :  { %v4408_v32 = vld [vmem:[%s5357_s2 + $0x1e4] sm:$0xf0]  ;;  %2195 = vmatpush.bf16.msra.mxu3 %v3774_v26  ;;  %v3757_v26 = vld [vmem:[%s5357_s2 + $0x40] sm:$0xf] }
 0x164   :  { %v3966_v51 = vor.u32 %v4408_v32, %v3965_v0  ;;  %v4372_v0 = vld [vmem:[%s5357_s2 + $0xc4] sm:$0xf0] }
 0x165   :  { %v1647_v57 = vpop.f32.mrf.mxu2  ;;  %v4388_v32 = vld [vmem:[%s5357_s2 + $0x144] sm:$0xf0] }
 0x166   :  { %v1648_v30 = vadd.f32 %v1647_v57, %v1635_v29  ;;  %v3902_v29 = vor.u32 %v4392_v28, %v3901_v7  ;;  %2234 = vmatpush.bf16.msra.mxu0 %v3966_v51  ;;  %v3821_v7 = vld [vmem:[%s5357_s2 + $0xc0] sm:$0xf] }
 0x167   :  { %v1662_v35 = vpop.f32.mrf.mxu0  ;;  %2196 = vmatpush.bf16.msra.mxu3 %v3766_v16  ;;  %v3822_v51 = vor.u32 %v4372_v0, %v3821_v7  ;;  %v3725_v16 = vld [vmem:[%s5357_s2] sm:$0xf]  ;;  %v4361_v7 = vld [vmem:[%s5357_s2 + $0x74] sm:$0xf]  ;;  %v3783_v0 = vld [vmem:[%s5357_s2 + $0x78] sm:$0xf0] }
 0x168   :  { %v1636_v38 = vpop.f32.mrf.mxu3  ;;  %v1661_v39 = vadd.f32 %v1660_v27, %v1648_v30  ;;  %v3838_v27 = vor.u32 %v4376_v24, %v3837_v22  ;;  %2221 = vmatpush.bf16.msrb.mxu2 %v3902_v29  ;;  %v4406_v22 = vld [vmem:[%s5357_s2 + $0x1d4] sm:$0xf0]  ;;  %v3885_v29 = vld [vmem:[%s5357_s2 + $0x140] sm:$0xf]  ;;  %v3726_v19 = vor.u32 %v4348_v17, %v3725_v16  ;;  %v4403_v16 = vld [vmem:[%s5357_s2 + $0x1c4] sm:$0xf] }
 0x169   :  { %v3958_v24 = vor.u32 %v4406_v22, %v3957_v21  ;;  %v4380_v21 = vld [vmem:[%s5357_s2 + $0x104] sm:$0xf0]  ;;  %v3951_v17 = vld [vmem:[%s5357_s2 + $0x1c8] sm:$0xf0] }
 0x16a   :  { %v1673_v42 = vpop.f32.mrf.mxu1  ;;  %2208 = vmatpush.bf16.msrb.mxu1 %v3838_v27  ;;  %v4356_v27 = vld [vmem:[%s5357_s2 + $0x44] sm:$0xf0] }
 0x16b   :  { %v4795_v46 = vadd.f32 %v1673_v42, %v1661_v39  ;;  %2235 = vmatpush.bf16.msra.mxu0 %v3958_v24  ;;  %v3758_v28 = vor.u32 %v4356_v27, %v3757_v26  ;;  %v3917_v26 = vld [vmem:[%s5357_s2 + $0x180] sm:$0xf]  ;;  %v4396_v27 = vld [vmem:[%s5357_s2 + $0x184] sm:$0xf0] }
 0x16c   :  { %2222 = vmatpush.bf16.msrb.mxu2 %v3894_v20  ;;  %v3853_v20 = vld [vmem:[%s5357_s2 + $0x100] sm:$0xf] }
 0x16d   :  { %v1649_v47 = vpop.f32.mrf.mxu2  ;;  %v1697_v49 = vmul.f32 %v3722_v44, %v4795_v46  ;;  %2197 = vmatpush.bf16.msra.mxu3 %v3758_v28  ;;  %v3854_v24 = vor.u32 %v4380_v21, %v3853_v20  ;;  %v3918_v28 = vor.u32 %v4396_v27, %v3917_v26  ;;  %v3954_v20 = vor.u32 %v4403_v16, %v3951_v17  ;;  %v4353_v21 = vld [vmem:[%s5357_s2 + $0x34] sm:$0xf]  ;;  %v3815_v27 = vld [vmem:[%s5357_s2 + $0xb8] sm:$0xf0]  ;;  %v4395_v16 = vld [vmem:[%s5357_s2 + $0x184] sm:$0xf] }
 0x16e   :  { %2209 = vmatpush.bf16.msrb.mxu1 %v3830_v55  ;;  %v4364_v55 = vld [vmem:[%s5357_s2 + $0x84] sm:$0xf0]  ;;  %v3919_v17 = vld [vmem:[%s5357_s2 + $0x188] sm:$0xf0] }
 0x16f   :  { %v1716_v53 = vrot.slane %v1697_v49, 4  ;;  %v3790_v22 = vor.u32 %v4364_v55, %v3789_v18  ;;  %v3890_v55 = vor.u32 %v4387_v13, %v3887_v14 }
 0x171   :  { %v1717_v59 = vadd.f32 %v1716_v53, %v1697_v49 }
 0x172   :  { %v1675_v60 = vpop.f32.mrf.mxu1  ;;  %2210 = vmatpush.bf16.msrb.mxu1 %v3822_v51  ;;  %v3786_v51 = vor.u32 %v4361_v7, %v3783_v0  ;;  %v4385_v7 = vld [vmem:[%s5357_s2 + $0x134] sm:$0xf] }
 0x173   :  { %v1718_v62 = vrot.slane %v1717_v59, 2 }
 0x175   :  { %v1719_v2 = vadd.f32 %v1718_v62, %v1717_v59 }
 0x177   :  { %v1720_v3 = vrot.slane %v1719_v2, 1 }
 0x179   :  { %v1721_v5 = vadd.f32 %v1720_v3, %v1719_v2 }
 0x17b   :  { %v1724_v8 = vadd.f32 %v1723_v6, %v1721_v5 }
 0x17d   :  { %1725 = vadd.xlane.f32.xlu0 %v1724_v8 }
 0x1f0   :  { %v1726_v57 = vpop.xlane.xlu0 %1725 }
 0x1f1   :  { %v4846_v33 = vmul.f32 0.00031887754, %v1726_v57  ;;  %v3886_v57 = vor.u32 %v4388_v32, %v3885_v29  ;;  %v4377_v29 = vld [vmem:[%s5357_s2 + $0xf4] sm:$0xf]  ;;  %v3847_v32 = vld [vmem:[%s5357_s2 + $0xf8] sm:$0xf0] }
 0x1f3   :  { %v1728_v34 = vsub.f32 %v4774_v31, %v4846_v33  ;;  %v1729_v30 = vsub.f32 %v4779_v50, %v4846_v33  ;;  %v1730_v36 = vsub.f32 %v4783_v23, %v4846_v33  ;;  %v1731_v37 = vsub.f32 %v4795_v46, %v4846_v33  ;;  %2223 = vmatpush.bf16.msrb.mxu2 %v3886_v57 }
 0x1f4   :  { %v3850_v57 = vor.u32 %v4377_v29, %v3847_v32 }
 0x1f5   :  { %v1735_v35 = vmul.f32 %v3722_v44, %v1731_v37  ;;  %v1736_v38 = vmul.f32 %v1728_v34, %v1728_v34  ;;  %v1737_v39 = vmul.f32 %v1729_v30, %v1729_v30  ;;  %v1738_v40 = vmul.f32 %v1730_v36, %v1730_v36  ;;  %v3949_v34 = vld [vmem:[%s5357_s2 + $0x1c0] sm:$0xf]  ;;  %v4404_v30 = vld [vmem:[%s5357_s2 + $0x1c4] sm:$0xf0]  ;;  %v3749_v37 = vld [vmem:[%s5357_s2 + $0x30] sm:$0xf] }
 0x1f6   :  { %v3950_v36 = vor.u32 %v4404_v30, %v3949_v34  ;;  %v4393_v34 = vld [vmem:[%s5357_s2 + $0x174] sm:$0xf]  ;;  %v3911_v30 = vld [vmem:[%s5357_s2 + $0x178] sm:$0xf0] }
 0x1f7   :  { %v1739_v41 = vmul.f32 %v1735_v35, %v1735_v35  ;;  %v1740_v42 = vrot.slane %v1736_v38, 4  ;;  %v1746_v47 = vrot.slane %v1737_v39, 4  ;;  %v1752_v48 = vrot.slane %v1738_v40, 4  ;;  %v4354_v35 = vld [vmem:[%s5357_s2 + $0x34] sm:$0xf0] }
 0x1f8   :  { %2236 = vmatpush.bf16.msra.mxu0 %v3950_v36  ;;  %v4409_v36 = vld [vmem:[%s5357_s2 + $0x1f4] sm:$0xf] }
 0x1f9   :  { %v1741_v49 = vadd.f32 %v1740_v42, %v1736_v38  ;;  %v1747_v45 = vadd.f32 %v1746_v47, %v1737_v39  ;;  %v1753_v52 = vadd.f32 %v1752_v48, %v1738_v40  ;;  %v1758_v53 = vrot.slane %v1739_v41, 4  ;;  %v3813_v38 = vld [vmem:[%s5357_s2 + $0xb0] sm:$0xf]  ;;  %v4370_v40 = vld [vmem:[%s5357_s2 + $0xb4] sm:$0xf0] }
 0x1fa   :  { %v3750_v39 = vor.u32 %v4354_v35, %v3749_v37  ;;  %v4386_v42 = vld [vmem:[%s5357_s2 + $0x134] sm:$0xf0]  ;;  %v3814_v47 = vor.u32 %v4370_v40, %v3813_v38  ;;  %v3914_v37 = vor.u32 %v4393_v34, %v3911_v30  ;;  %v3975_v35 = vld [vmem:[%s5357_s2 + $0x1f8] sm:$0xf0]  ;;  %v4359_v38 = vld [vmem:[%s5357_s2 + $0x64] sm:$0xf] }
 0x1fb   :  { %v1742_v54 = vrot.slane %v1741_v49, 2  ;;  %v1748_v56 = vrot.slane %v1747_v45, 2  ;;  %v1754_v58 = vrot.slane %v1753_v52, 2  ;;  %v1759_v59 = vadd.f32 %v1758_v53, %v1739_v41  ;;  %v3877_v41 = vld [vmem:[%s5357_s2 + $0x130] sm:$0xf] }
 0x1fc   :  { %v3878_v48 = vor.u32 %v4386_v42, %v3877_v41  ;;  %2198 = vmatpush.bf16.msra.mxu3 %v3750_v39  ;;  %2211 = vmatpush.bf16.msrb.mxu1 %v3814_v47  ;;  %v3741_v53 = vld [vmem:[%s5357_s2 + $0x20] sm:$0xf]  ;;  %v3775_v39 = vld [vmem:[%s5357_s2 + $0x68] sm:$0xf0]  ;;  %v3978_v40 = vor.u32 %v4409_v36, %v3975_v35  ;;  %v4375_v42 = vld [vmem:[%s5357_s2 + $0xe4] sm:$0xf] }
 0x1fd   :  { %v1743_v60 = vadd.f32 %v1742_v54, %v1741_v49  ;;  %v1749_v61 = vadd.f32 %v1748_v56, %v1747_v45  ;;  %v1755_v62 = vadd.f32 %v1754_v58, %v1753_v52  ;;  %v1760_v63 = vrot.slane %v1759_v59, 2  ;;  %v3941_v49 = vld [vmem:[%s5357_s2 + $0x1b0] sm:$0xf]  ;;  %v4402_v45 = vld [vmem:[%s5357_s2 + $0x1b4] sm:$0xf0] }
 0x1fe   :  { %v3942_v52 = vor.u32 %v4402_v45, %v3941_v49  ;;  %2224 = vmatpush.bf16.msrb.mxu2 %v3878_v48  ;;  %v4352_v54 = vld [vmem:[%s5357_s2 + $0x24] sm:$0xf0]  ;;  %v3805_v56 = vld [vmem:[%s5357_s2 + $0xa0] sm:$0xf]  ;;  %v3778_v41 = vor.u32 %v4359_v38, %v3775_v39  ;;  %v3839_v47 = vld [vmem:[%s5357_s2 + $0xe8] sm:$0xf0] }
 0x1ff   :  { %v1744_v44 = vrot.slane %v1743_v60, 1  ;;  %v1750_v1 = vrot.slane %v1749_v61, 1  ;;  %v1756_v2 = vrot.slane %v1755_v62, 1  ;;  %v1761_v3 = vadd.f32 %v1760_v63, %v1759_v59  ;;  %v4368_v59 = vld [vmem:[%s5357_s2 + $0xa4] sm:$0xf0] }
 0x200   :  { %2237 = vmatpush.bf16.msra.mxu0 %v3942_v52  ;;  %v3742_v58 = vor.u32 %v4352_v54, %v3741_v53  ;;  %v4391_v48 = vld [vmem:[%s5357_s2 + $0x164] sm:$0xf]  ;;  %v3842_v49 = vor.u32 %v4375_v42, %v3839_v47  ;;  %v3903_v45 = vld [vmem:[%s5357_s2 + $0x168] sm:$0xf0] }
 0x201   :  { %v1745_v4 = vadd.f32 %v1744_v44, %v1743_v60  ;;  %v1751_v5 = vadd.f32 %v1750_v1, %v1749_v61  ;;  %v1762_v6 = vrot.slane %v1761_v3, 1  ;;  %v1757_v8 = vadd.f32 %v1756_v2, %v1755_v62  ;;  %v3869_v60 = vld [vmem:[%s5357_s2 + $0x120] sm:$0xf]  ;;  %v4384_v61 = vld [vmem:[%s5357_s2 + $0x124] sm:$0xf0] }
 0x202   :  { %v3806_v62 = vor.u32 %v4368_v59, %v3805_v56  ;;  %v3870_v63 = vor.u32 %v4384_v61, %v3869_v60  ;;  %v3933_v44 = vld [vmem:[%s5357_s2 + $0x1a0] sm:$0xf]  ;;  %v4400_v1 = vld [vmem:[%s5357_s2 + $0x1a4] sm:$0xf0]  ;;  %2199 = vmatpush.bf16.msra.mxu3 %v3742_v58  ;;  %v4407_v52 = vld [vmem:[%s5357_s2 + $0x1e4] sm:$0xf]  ;;  %v3906_v54 = vor.u32 %v4391_v48, %v3903_v45 }
 0x203   :  { %v1764_v9 = vadd.f32 %v1751_v5, %v1745_v4  ;;  %v1763_v10 = vadd.f32 %v1762_v6, %v1761_v3  ;;  %v3934_v2 = vor.u32 %v4400_v1, %v3933_v44  ;;  %v3733_v3 = vld [vmem:[%s5357_s2 + $0x10] sm:$0xf]  ;;  %v4350_v4 = vld [vmem:[%s5357_s2 + $0x14] sm:$0xf0]  ;;  %v3967_v53 = vld [vmem:[%s5357_s2 + $0x1e8] sm:$0xf0] }
 0x204   :  { %2212 = vmatpush.bf16.msrb.mxu1 %v3806_v62  ;;  %2225 = vmatpush.bf16.msrb.mxu2 %v3870_v63  ;;  %v3797_v5 = vld [vmem:[%s5357_s2 + $0x90] sm:$0xf]  ;;  %v3734_v6 = vor.u32 %v4350_v4, %v3733_v3  ;;  %v3970_v56 = vor.u32 %v4407_v52, %v3967_v53  ;;  %v4357_v58 = vld [vmem:[%s5357_s2 + $0x54] sm:$0xf]  ;;  %v3767_v59 = vld [vmem:[%s5357_s2 + $0x58] sm:$0xf0] }
 0x205   :  { %v1765_v11 = vadd.f32 %v1764_v9, %v1757_v8  ;;  %2238 = vmatpush.bf16.msra.mxu0 %v3934_v2  ;;  %v4366_v8 = vld [vmem:[%s5357_s2 + $0x94] sm:$0xf0]  ;;  %v3861_v9 = vld [vmem:[%s5357_s2 + $0x110] sm:$0xf]  ;;  %v4373_v60 = vld [vmem:[%s5357_s2 + $0xd4] sm:$0xf]  ;;  %v3770_v1 = vor.u32 %v4357_v58, %v3767_v59 }
 0x206   :  { %2200 = vmatpush.bf16.msra.mxu3 %v3734_v6  ;;  %v3831_v61 = vld [vmem:[%s5357_s2 + $0xd8] sm:$0xf0]  ;;  %v4389_v62 = vld [vmem:[%s5357_s2 + $0x154] sm:$0xf]  ;;  %v4351_v34 = vld [vmem:[%s5357_s2 + $0x24] sm:$0xf] }
 0x207   :  { %v1766_v12 = vadd.f32 %v1765_v11, %v1763_v10  ;;  %v4382_v10 = vld [vmem:[%s5357_s2 + $0x114] sm:$0xf0]  ;;  %v3798_v11 = vor.u32 %v4366_v8, %v3797_v5  ;;  %v3895_v63 = vld [vmem:[%s5357_s2 + $0x158] sm:$0xf0]  ;;  %v3834_v2 = vor.u32 %v4373_v60, %v3831_v61  ;;  %v4405_v3 = vld [vmem:[%s5357_s2 + $0x1d4] sm:$0xf] }
 0x208   :  { %v3959_v4 = vld [vmem:[%s5357_s2 + $0x1d8] sm:$0xf0]  ;;  %v4355_v5 = vld [vmem:[%s5357_s2 + $0x44] sm:$0xf]  ;;  %v3898_v8 = vor.u32 %v4389_v62, %v3895_v63  ;;  %v3807_v38 = vld [vmem:[%s5357_s2 + $0xa8] sm:$0xf0] }
 0x209   :  { %1767 = vadd.xlane.f32.xlu0 %v1766_v12  ;;  %v3862_v12 = vor.u32 %v4382_v10, %v3861_v9  ;;  %2213 = vmatpush.bf16.msrb.mxu1 %v3798_v11  ;;  %v3759_v9 = vld [vmem:[%s5357_s2 + $0x48] sm:$0xf0]  ;;  %v4371_v10 = vld [vmem:[%s5357_s2 + $0xc4] sm:$0xf]  ;;  %v3962_v11 = vor.u32 %v4405_v3, %v3959_v4  ;;  %v4349_v52 = vld [vmem:[%s5357_s2 + $0x14] sm:$0xf] }
 0x20a   :  { %2239 = vmatpush.bf16.msra.mxu0 %v3926_v15  ;;  %2201 = vmatpush.bf16.msra.mxu3 %v3726_v19  ;;  %v3762_v18 = vor.u32 %v4355_v5, %v3759_v9  ;;  %v4367_v35 = vld [vmem:[%s5357_s2 + $0xa4] sm:$0xf]  ;;  %v3871_v42 = vld [vmem:[%s5357_s2 + $0x128] sm:$0xf0]  ;;  %v3799_v58 = vld [vmem:[%s5357_s2 + $0x98] sm:$0xf0] }
 0x20b   :  { %2226 = vmatpush.bf16.msrb.mxu2 %v3862_v12  ;;  %v3823_v12 = vld [vmem:[%s5357_s2 + $0xc8] sm:$0xf0]  ;;  %v4381_v61 = vld [vmem:[%s5357_s2 + $0x114] sm:$0xf]  ;;  %v3863_v62 = vld [vmem:[%s5357_s2 + $0x118] sm:$0xf0] }
 0x20c   :  { %v3826_v19 = vor.u32 %v4371_v10, %v3823_v12  ;;  %v3935_v45 = vld [vmem:[%s5357_s2 + $0x1a8] sm:$0xf0]  ;;  %v4347_v3 = vld [vmem:[%s5357_s2 + $0x4] sm:$0xf]  ;;  %v1782_v12 = vstv %s5099_s6 }
 0x20d   :  { %2214 = vmatpush.bf16.msrb.mxu1 %v3790_v22  ;;  %v3751_v22 = vld [vmem:[%s5357_s2 + $0x38] sm:$0xf0]  ;;  %v3791_v9 = vld [vmem:[%s5357_s2 + $0x88] sm:$0xf0]  ;;  %v4379_v10 = vld [vmem:[%s5357_s2 + $0x104] sm:$0xf] }
 0x20e   :  { %2240 = vmatpush.bf16.msra.mxu0 %v3918_v28  ;;  %2246 = vmatpush.bf16.msrb.mxu3 %v3786_v51  ;;  %v3754_v26 = vor.u32 %v4353_v21, %v3751_v22  ;;  %v3879_v28 = vld [vmem:[%s5357_s2 + $0x138] sm:$0xf0]  ;;  %v4401_v51 = vld [vmem:[%s5357_s2 + $0x1b4] sm:$0xf]  ;;  %v1786_v21 = vstv %s5141_s24 }
 0x20f   :  { %2227 = vmatpush.bf16.msrb.mxu2 %v3854_v24  ;;  %v4369_v24 = vld [vmem:[%s5357_s2 + $0xb4] sm:$0xf]  ;;  %v3882_v32 = vor.u32 %v4385_v7, %v3879_v28 }
 0x210   :  { %v3818_v29 = vor.u32 %v4369_v24, %v3815_v27 }
 0x211   :  { %2259 = vmatpush.bf16.msra.mxu1 %v3850_v57  ;;  %v3943_v57 = vld [vmem:[%s5357_s2 + $0x1b8] sm:$0xf0] }
 0x212   :  { %2285 = vmatpush.bf16.msrb.mxu0 %v3978_v40  ;;  %2247 = vmatpush.bf16.msrb.mxu3 %v3778_v41  ;;  %v3946_v36 = vor.u32 %v4401_v51, %v3943_v57  ;;  %v3810_v40 = vor.u32 %v4367_v35, %v3807_v38  ;;  %v4383_v41 = vld [vmem:[%s5357_s2 + $0x124] sm:$0xf] }
 0x213   :  { %2272 = vmatpush.bf16.msra.mxu2 %v3914_v37  ;;  %v3743_v37 = vld [vmem:[%s5357_s2 + $0x28] sm:$0xf0]  ;;  %v3874_v48 = vor.u32 %v4383_v41, %v3871_v42 }
 0x214   :  { %v3746_v39 = vor.u32 %v4351_v34, %v3743_v37 }
 0x215   :  { %2260 = vmatpush.bf16.msra.mxu1 %v3842_v49  ;;  %v4399_v49 = vld [vmem:[%s5357_s2 + $0x1a4] sm:$0xf] }
 0x216   :  { %2286 = vmatpush.bf16.msrb.mxu0 %v3970_v56  ;;  %2248 = vmatpush.bf16.msrb.mxu3 %v3770_v1  ;;  %v3938_v53 = vor.u32 %v4399_v49, %v3935_v45  ;;  %v4365_v56 = vld [vmem:[%s5357_s2 + $0x94] sm:$0xf] }
 0x217   :  { %2273 = vmatpush.bf16.msra.mxu2 %v3906_v54  ;;  %v3735_v54 = vld [vmem:[%s5357_s2 + $0x18] sm:$0xf0]  ;;  %v3802_v63 = vor.u32 %v4365_v56, %v3799_v58  ;;  %v4397_v1 = vld [vmem:[%s5357_s2 + $0x194] sm:$0xf] }
 0x218   :  { %v3738_v60 = vor.u32 %v4349_v52, %v3735_v54 }
 0x219   :  { %2261 = vmatpush.bf16.msra.mxu1 %v3834_v2  ;;  %v3927_v2 = vld [vmem:[%s5357_s2 + $0x198] sm:$0xf0] }
 0x21a   :  { %2287 = vmatpush.bf16.msrb.mxu0 %v3962_v11  ;;  %2249 = vmatpush.bf16.msrb.mxu3 %v3762_v18  ;;  %v3930_v5 = vor.u32 %v4397_v1, %v3927_v2  ;;  %v3855_v11 = vld [vmem:[%s5357_s2 + $0x108] sm:$0xf0] }
 0x21b   :  { %2274 = vmatpush.bf16.msra.mxu2 %v3898_v8  ;;  %v4363_v8 = vld [vmem:[%s5357_s2 + $0x84] sm:$0xf] }
 0x21c   :  { %v3794_v18 = vor.u32 %v4363_v8, %v3791_v9 }
 0x21d   :  { %2262 = vmatpush.bf16.msra.mxu1 %v3826_v19 }
 0x21e   :  { %2288 = vmatpush.bf16.msrb.mxu0 %v3954_v20  ;;  %2250 = vmatpush.bf16.msrb.mxu3 %v3754_v26 }
 0x21f   :  { %2275 = vmatpush.bf16.msra.mxu2 %v3890_v55  ;;  %v3922_v55 = vor.u32 %v4395_v16, %v3919_v17 }
 0x221   :  { %2263 = vmatpush.bf16.msra.mxu1 %v3818_v29 }
 0x222   :  { %2289 = vmatpush.bf16.msrb.mxu0 %v3946_v36  ;;  %2251 = vmatpush.bf16.msrb.mxu3 %v3746_v39 }
 0x223   :  { %2276 = vmatpush.bf16.msra.mxu2 %v3882_v32 }
 0x225   :  { %2264 = vmatpush.bf16.msra.mxu1 %v3810_v40 }
 0x226   :  { %2290 = vmatpush.bf16.msrb.mxu0 %v3938_v53  ;;  %2252 = vmatpush.bf16.msrb.mxu3 %v3738_v60 }
 0x227   :  { %2277 = vmatpush.bf16.msra.mxu2 %v3874_v48 }
 0x229   :  { %2265 = vmatpush.bf16.msra.mxu1 %v3802_v63 }
 0x22a   :  { %2291 = vmatpush.bf16.msrb.mxu0 %v3930_v5 }
 0x22d   :  { %2266 = vmatpush.bf16.msra.mxu1 %v3794_v18 }
 0x22e   :  { %2292 = vmatpush.bf16.msrb.mxu0 %v3922_v55 }
 0x27c   :  { %v1768_v44 = vpop.xlane.xlu0 %1767 }
 0x27d   :  { %v1769_v6 = vmul.f32 0.00031887754, %v1768_v44  ;;  %v3866_v44 = vor.u32 %v4381_v61, %v3863_v62 }
 0x27f   :  { %v5090_v15 = vadd.f32 1e-05, %v1769_v6  ;;  %v3727_v6 = vld [vmem:[%s5357_s2 + $0x8] sm:$0xf0]  ;;  %2278 = vmatpush.bf16.msra.mxu2 %v3866_v44  ;;  %s4083_s2 = sld [smem:[#allocation9 + $0x3]] }
 0x280   :  { %v3730_v14 = vor.u32 %v4347_v3, %v3727_v6 }
 0x281   :  { %4465 = vrsqrt.f32 %v5090_v15  ;;  %vm1778_vm3 = vweird.f32 %v5090_v15 }
 0x282   :  { %2253 = vmatpush.bf16.msrb.mxu3 %v3730_v14 }
 0x287   :  { %v5119_v0 = vpop.eup %4465 }
 0x288   :  { %v1773_v30 = vmul.f32 %v5119_v0, %v5090_v15  ;;  %vm1779_vm2 = vweird.f32 %v5119_v0  ;;  %v3858_v15 = vor.u32 %v4379_v10, %v3855_v11 }
 0x289   :  { %vm1780_vm4 = vmor %vm1778_vm3, %vm1779_vm2 }
 0x28a   :  { %v1774_v47 = vmul.f32 %v5119_v0, %v1773_v30  ;;  %2279 = vmatpush.bf16.msra.mxu2 %v3858_v15 }
 0x28c   :  { %v1775_v59 = vmul.f32 0.5, %v1774_v47 }
 0x28e   :  { %v1776_v4 = vsub.f32 1.5, %v1775_v59  ;;  %v1679_v59 = vadd.s32 128, %v4786_v25 }
 0x290   :  { %v1777_v13 = vmul.f32 %v5119_v0, %v1776_v4  ;;  %vm2299_vm5 = vcmp.lt.s32.totalorder %v1679_v59, 196 }
 0x291   :  { %v3979_v5 = vsel %vm2299_vm5, 1.0, %v4609_v43 }
 0x292   :  { %v1781_v19 = vsel %vm1780_vm4, %v5119_v0, %v1777_v13 }
 0x293   :  { %v1783_v20 = vmul.f32 %v1782_v12, %v1781_v19 }
 0x295   :  { %v1785_v22 = vmul.f32 %v1783_v20, %v4846_v33  ;;  %v1788_v26 = vmul.f32 %v1783_v20, %v4774_v31  ;;  %v1789_v27 = vmul.f32 %v1783_v20, %v4779_v50  ;;  %v1790_v7 = vmul.f32 %v1783_v20, %v4783_v23 }
 0x296   :  { %v1791_v28 = vmul.f32 %v1783_v20, %v4795_v46  ;;  %v1868_v46 = vld [vmem:[%s5363_s8] sm:$0x3]  ;;  %s4118_s8 = sld [smem:[#allocation9 + $0x4]] }
 0x297   :  { %v1787_v24 = vsub.f32 %v1786_v21, %v1785_v22  ;;  %v1870_v38 = vperm.slane %v1868_v46, 0  ;;  %v1871_v58 = vperm.slane %v1868_v46, 1 }
 0x299   :  { %v1792_v0 = vadd.f32 %v1788_v26, %v1787_v24  ;;  %v1793_v29 = vadd.f32 %v1789_v27, %v1787_v24  ;;  %v1794_v32 = vadd.f32 %v1790_v7, %v1787_v24  ;;  %v1795_v51 = vadd.f32 %v1791_v28, %v1787_v24 }
 0x29b   :  { %4467 = vtanh.f32 %v1792_v0 }
 0x29c   :  { %4469 = vtanh.f32 %v1793_v29 }
 0x29d   :  { %4471 = vtanh.f32 %v1794_v32 }
 0x29e   :  { %4473 = vtanh.f32 %v1795_v51 }
 0x2a1   :  { %v4468_v33 = vpop.eup %4467 }
 0x2a2   :  { %v4470_v57 = vpop.eup %4469  ;;  %v1800_v34 = vpack.c.bf16 %v4468_v33, %v4468_v33 }
 0x2a3   :  { %v4472_v30 = vpop.eup %4471  ;;  %v1801_v36 = vpack.c.bf16 %v4470_v57, %v4470_v57 }
 0x2a4   :  { %v4474_v31 = vpop.eup %4473  ;;  %2202 = vmatmul.bf16.vlgmr.msra.gmra.mxu3 %v1800_v34  ;;  %v1802_v50 = vpack.c.bf16 %v4472_v30, %v4472_v30 }
 0x2a5   :  { %2215 = vmatmul.bf16.vlgmr.msrb.gmra.mxu1 %v1801_v36  ;;  %v1803_v23 = vpack.c.bf16 %v4474_v31, %v4474_v31 }
 0x2a6   :  { %2228 = vmatmul.bf16.vlgmr.msrb.gmra.mxu2 %v1802_v50 }
 0x2a7   :  { %2241 = vmatmul.bf16.vlgmr.msra.gmra.mxu0 %v1803_v23 }
 0x2b4   :  { %2254 = vmatmul.bf16.vlgmr.msrb.gmra.mxu3 %v1800_v34 }
 0x2b5   :  { %2267 = vmatmul.bf16.vlgmr.msra.gmra.mxu1 %v1801_v36 }
 0x2b6   :  { %2280 = vmatmul.bf16.vlgmr.msra.gmra.mxu2 %v1802_v50 }
 0x2b7   :  { %2293 = vmatmul.bf16.vlgmr.msrb.gmra.mxu0 %v1803_v23 }
 0x322   :  { %v2216_v37 = vpop.f32.mrf.mxu1 }
 0x324   :  { %v2242_v35 = vpop.f32.mrf.mxu0 }
 0x327   :  { %v2203_v39 = vpop.f32.mrf.mxu3 }
 0x328   :  { %v2204_v40 = vadd.f32 %v2203_v39, %v1870_v38  ;;  %v4417_v38 = vld [vmem:[%s5358_s3 + $0x30] sm:$0xff] }
 0x329   :  { %v2229_v41 = vpop.f32.mrf.mxu2  ;;  %v4425_v39 = vld [vmem:[%s5358_s3 + $0x70] sm:$0xff] }
 0x32a   :  { %v2218_v42 = vpop.f32.mrf.mxu1  ;;  %v2217_v47 = vadd.f32 %v2216_v37, %v2204_v40  ;;  %v4418_v37 = vld [vmem:[%s5358_s3 + $0x38] sm:$0xff]  ;;  %v4416_v40 = vld [vmem:[%s5358_s3 + $0x28] sm:$0xff] }
 0x32b   :  { %2502 = vmatpush.bf16.msra.mxu3 %v4418_v37  ;;  %v4415_v42 = vld [vmem:[%s5358_s3 + $0x20] sm:$0xff] }
 0x32c   :  { %v2244_v48 = vpop.f32.mrf.mxu0  ;;  %v2230_v45 = vadd.f32 %v2229_v41, %v2217_v47  ;;  %v4424_v41 = vld [vmem:[%s5358_s3 + $0x68] sm:$0xff]  ;;  %v4423_v47 = vld [vmem:[%s5358_s3 + $0x60] sm:$0xff] }
 0x32d   :  { %v4414_v48 = vld [vmem:[%s5358_s3 + $0x18] sm:$0xff] }
 0x32e   :  { %v5220_v54 = vadd.f32 %v2242_v35, %v2230_v45  ;;  %v4426_v35 = vld [vmem:[%s5358_s3 + $0x78] sm:$0xff]  ;;  %v4413_v45 = vld [vmem:[%s5358_s3 + $0x10] sm:$0xff] }
 0x32f   :  { %v2205_v49 = vpop.f32.mrf.mxu3  ;;  %2515 = vmatpush.bf16.msrb.mxu1 %v4426_v35  ;;  %2503 = vmatpush.bf16.msra.mxu3 %v4417_v38 }
 0x330   :  { %v2306_v62 = vrot.slane %v5220_v54, 4  ;;  %v4422_v49 = vld [vmem:[%s5358_s3 + $0x58] sm:$0xff] }
 0x331   :  { %v2231_v52 = vpop.f32.mrf.mxu2 }
 0x332   :  { %v2268_v53 = vpop.f32.mrf.mxu1  ;;  %v2307_v4 = vadd.f32 %v2306_v62, %v5220_v54  ;;  %v4421_v52 = vld [vmem:[%s5358_s3 + $0x50] sm:$0xff]  ;;  %v4419_v62 = vld [vmem:[%s5358_s3 + $0x40] sm:$0xff] }
 0x333   :  { %2516 = vmatpush.bf16.msrb.mxu1 %v4425_v39  ;;  %2504 = vmatpush.bf16.msra.mxu3 %v4416_v40  ;;  %v4434_v39 = vld [vmem:[%s5359_s4 + $0x38] sm:$0xff]  ;;  %v4433_v40 = vld [vmem:[%s5359_s4 + $0x30] sm:$0xff] }
 0x334   :  { %v2294_v56 = vpop.f32.mrf.mxu0  ;;  %v2308_v10 = vrot.slane %v2307_v4, 2  ;;  %2643 = vmatpush.bf16.msrb.mxu2 %v4434_v39 }
 0x336   :  { %v2309_v13 = vadd.f32 %v2308_v10, %v2307_v4  ;;  %v2356_v4 = vstv %s3980_s18  ;;  %v2360_v10 = vstv %s3981_s0 }
 0x337   :  { %v2255_v60 = vpop.f32.mrf.mxu3  ;;  %2517 = vmatpush.bf16.msrb.mxu1 %v4424_v41  ;;  %2505 = vmatpush.bf16.msra.mxu3 %v4415_v42  ;;  %v4432_v41 = vld [vmem:[%s5359_s4 + $0x28] sm:$0xff]  ;;  %v4431_v42 = vld [vmem:[%s5359_s4 + $0x20] sm:$0xff] }
 0x338   :  { %v2256_v61 = vadd.f32 %v2255_v60, %v1871_v58  ;;  %v2310_v17 = vrot.slane %v2309_v13, 1  ;;  %v4420_v58 = vld [vmem:[%s5358_s3 + $0x48] sm:$0xff]  ;;  %2644 = vmatpush.bf16.msrb.mxu2 %v4433_v40 }
 0x339   :  { %v2281_v63 = vpop.f32.mrf.mxu2 }
 0x33a   :  { %v2269_v44 = vadd.f32 %v2268_v53, %v2256_v61  ;;  %v2270_v1 = vpop.f32.mrf.mxu1  ;;  %v2311_v15 = vadd.f32 %v2310_v17, %v2309_v13  ;;  %v4411_v61 = vld [vmem:[%s5358_s3] sm:$0xff] }
 0x33b   :  { %2518 = vmatpush.bf16.msrb.mxu1 %v4423_v47  ;;  %2506 = vmatpush.bf16.msra.mxu3 %v4414_v48  ;;  %v4430_v47 = vld [vmem:[%s5359_s4 + $0x18] sm:$0xff]  ;;  %v4429_v48 = vld [vmem:[%s5359_s4 + $0x10] sm:$0xff] }
 0x33c   :  { %v2282_v2 = vadd.f32 %v2281_v63, %v2269_v44  ;;  %v2296_v3 = vpop.f32.mrf.mxu0  ;;  %2645 = vmatpush.bf16.msrb.mxu2 %v4432_v41 }
 0x33e   :  { %v5226_v6 = vadd.f32 %v2294_v56, %v2282_v2  ;;  %v4412_v56 = vld [vmem:[%s5358_s3 + $0x8] sm:$0xff] }
 0x33f   :  { %v2257_v8 = vpop.f32.mrf.mxu3  ;;  %2519 = vmatpush.bf16.msrb.mxu1 %v4422_v49  ;;  %2507 = vmatpush.bf16.msra.mxu3 %v4413_v45  ;;  %v4428_v45 = vld [vmem:[%s5359_s4 + $0x8] sm:$0xff] }
 0x340   :  { %v2305_v9 = vmul.f32 %v3979_v5, %v5226_v6  ;;  %2646 = vmatpush.bf16.msrb.mxu2 %v4431_v42 }
 0x341   :  { %v2283_v11 = vpop.f32.mrf.mxu2 }
 0x342   :  { %v2312_v12 = vrot.slane %v2305_v9, 4 }
 0x343   :  { %2520 = vmatpush.bf16.msrb.mxu1 %v4421_v52  ;;  %2508 = vmatpush.bf16.msra.mxu3 %v4412_v56  ;;  %v4427_v56 = vld [vmem:[%s5359_s4] sm:$0xff] }
 0x344   :  { %v2313_v14 = vadd.f32 %v2312_v12, %v2305_v9  ;;  %2647 = vmatpush.bf16.msrb.mxu2 %v4430_v47  ;;  %v2693_v47 = vstv %s4082_s26 }
 0x346   :  { %v2314_v16 = vrot.slane %v2313_v14, 2 }
 0x347   :  { %2521 = vmatpush.bf16.msrb.mxu1 %v4420_v58  ;;  %2509 = vmatpush.bf16.msra.mxu3 %v4411_v61 }
 0x348   :  { %v2315_v18 = vadd.f32 %v2314_v16, %v2313_v14  ;;  %2648 = vmatpush.bf16.msrb.mxu2 %v4429_v48 }
 0x34a   :  { %v2316_v19 = vrot.slane %v2315_v18, 1 }
 0x34b   :  { %2522 = vmatpush.bf16.msrb.mxu1 %v4419_v62 }
 0x34c   :  { %v2317_v55 = vadd.f32 %v2316_v19, %v2315_v18  ;;  %2649 = vmatpush.bf16.msrb.mxu2 %v4428_v45 }
 0x34e   :  { %v2318_v20 = vadd.f32 %v2317_v55, %v2311_v15 }
 0x350   :  { %2319 = vadd.xlane.f32.xlu1 %v2318_v20  ;;  %2650 = vmatpush.bf16.msrb.mxu2 %v4427_v56 }
 0x3c3   :  { %v2320_v21 = vpop.xlane.xlu1 %2319 }
 0x3c4   :  { %v5229_v22 = vmul.f32 0.0006377551, %v2320_v21  ;;  %v4461_v21 = vld [vmem:[%s5364_s9] ss:$0 sm:$0xff] }
 0x3c6   :  { %v2322_v24 = vsub.f32 %v5220_v54, %v5229_v22  ;;  %v2323_v26 = vsub.f32 %v5226_v6, %v5229_v22 }
 0x3c8   :  { %v2325_v27 = vmul.f32 %v3979_v5, %v2323_v26  ;;  %v2326_v7 = vmul.f32 %v2322_v24, %v2322_v24 }
 0x3ca   :  { %v2327_v28 = vmul.f32 %v2325_v27, %v2325_v27  ;;  %v2328_v0 = vrot.slane %v2326_v7, 4 }
 0x3cc   :  { %v2329_v29 = vadd.f32 %v2328_v0, %v2326_v7  ;;  %v2334_v32 = vrot.slane %v2327_v28, 4 }
 0x3ce   :  { %v2330_v51 = vrot.slane %v2329_v29, 2  ;;  %v2335_v33 = vadd.f32 %v2334_v32, %v2327_v28 }
 0x3d0   :  { %v2331_v57 = vadd.f32 %v2330_v51, %v2329_v29  ;;  %v2336_v34 = vrot.slane %v2335_v33, 2 }
 0x3d2   :  { %v2332_v30 = vrot.slane %v2331_v57, 1  ;;  %v2337_v36 = vadd.f32 %v2336_v34, %v2335_v33 }
 0x3d4   :  { %v2338_v31 = vrot.slane %v2337_v36, 1  ;;  %v2333_v50 = vadd.f32 %v2332_v30, %v2331_v57 }
 0x3d6   :  { %v2339_v23 = vadd.f32 %v2338_v31, %v2337_v36 }
 0x3d8   :  { %v2340_v46 = vadd.f32 %v2339_v23, %v2333_v50 }
 0x3da   :  { %2341 = vadd.xlane.f32.xlu1 %v2340_v46 }
 0x44d   :  { %v2342_v53 = vpop.xlane.xlu1 %2341 }
 0x44e   :  { %v2343_v59 = vmul.f32 0.0006377551, %v2342_v53 }
 0x450   :  { %v2345_v60 = vadd.f32 1e-05, %v2343_v59 }
 0x452   :  { %4475 = vrsqrt.f32 %v2345_v60  ;;  %vm2352_vm7 = vweird.f32 %v2345_v60 }
 0x458   :  { %v4476_v63 = vpop.eup %4475 }
 0x459   :  { %v2347_v44 = vmul.f32 %v4476_v63, %v2345_v60  ;;  %vm2353_vm6 = vweird.f32 %v4476_v63 }
 0x45a   :  { %vm2354_vm8 = vmor %vm2352_vm7, %vm2353_vm6 }
 0x45b   :  { %v2348_v1 = vmul.f32 %v4476_v63, %v2347_v44 }
 0x45d   :  { %v2349_v2 = vmul.f32 0.5, %v2348_v1 }
 0x45f   :  { %v2350_v3 = vsub.f32 1.5, %v2349_v2 }
 0x461   :  { %v2351_v5 = vmul.f32 %v4476_v63, %v2350_v3  ;;  %v2569_v3 = vstv %s4048_s30 }
 0x463   :  { %v2355_v8 = vsel %vm2354_vm8, %v4476_v63, %v2351_v5  ;;  %v2565_v63 = vstv %s4047_s29  ;;  %s2919_s29 = sshll.u32 %s4610_s28, 4  ;;  %s2920_s29 = int_to_ptr.vmem [resolvable:$true] %s2919_s29 }
 0x464   :  { %v2357_v9 = vmul.f32 %v2356_v4, %v2355_v8 }
 0x466   :  { %v2359_v11 = vmul.f32 %v2357_v9, %v5229_v22  ;;  %v2362_v13 = vmul.f32 %v2357_v9, %v5220_v54  ;;  %v2363_v14 = vmul.f32 %v2357_v9, %v5226_v6  ;;  %v4046_v6 = vsel %vm2528_vm9, 1.0, %v4609_v43 }
 0x468   :  { %v2361_v12 = vsub.f32 %v2360_v10, %v2359_v11 }
 0x46a   :  { %v2364_v16 = vadd.f32 %v2362_v13, %v2361_v12  ;;  %v2365_v17 = vadd.f32 %v2363_v14, %v2361_v12  ;;  %v4462_v12 = vld [vmem:[%s5365_s10] ss:$0 sm:$0xff]  ;;  %v4081_v14 = vsel %vm2656_vm13, 1.0, %v4609_v43 }
 0x46c   :  { %4477 = vtanh.f32 %v2364_v16 }
 0x46d   :  { %4479 = vtanh.f32 %v2365_v17 }
 0x472   :  { %v4478_v18 = vpop.eup %4477 }
 0x473   :  { %v4480_v19 = vpop.eup %4479  ;;  %v2368_v15 = vpack.c.bf16 %v4478_v18, %v4478_v18 }
 0x474   :  { %v2369_v55 = vpack.c.bf16 %v4480_v19, %v4480_v19 }
 0x475   :  { %2510 = vmatmul.bf16.vlgmr.msra.gmra.mxu3 %v2368_v15 }
 0x476   :  { %2523 = vmatmul.bf16.vlgmr.msrb.gmra.mxu1 %v2369_v55 }
 0x4f3   :  { %v2524_v20 = vpop.f32.mrf.mxu1 }
 0x4f8   :  { %v2511_v54 = vpop.f32.mrf.mxu3 }
 0x4f9   :  { %v2512_v22 = vadd.f32 %v4461_v21, %v2511_v54 }
 0x4fb   :  { %v2525_v24 = vadd.f32 %v2524_v20, %v2512_v22  ;;  %v2526_v26 = vpop.f32.mrf.mxu1 }
 0x4fd   :  { %v2531_v27 = vmul.f32 %v4046_v6, %v2525_v24 }
 0x4ff   :  { %v2532_v7 = vrot.slane %v2531_v27, 4 }
 0x500   :  { %v2513_v28 = vpop.f32.mrf.mxu3 }
 0x501   :  { %v2533_v0 = vadd.f32 %v2532_v7, %v2531_v27 }
 0x503   :  { %v2534_v29 = vrot.slane %v2533_v0, 2 }
 0x505   :  { %v2535_v32 = vadd.f32 %v2534_v29, %v2533_v0 }
 0x507   :  { %v2536_v51 = vrot.slane %v2535_v32, 1 }
 0x509   :  { %v2537_v33 = vadd.f32 %v2536_v51, %v2535_v32 }
 0x50b   :  { %2538 = vadd.xlane.f32.xlu2 %v2537_v33  ;;  %v4442_v33 = vld [vmem:[%s5360_s5 + $0x38] sm:$0xff] }
 0x50c   :  { %2771 = vmatpush.bf16.msra.mxu0 %v4442_v33 }
 0x57e   :  { %v2539_v57 = vpop.xlane.xlu2 %2538 }
 0x57f   :  { %v2540_v34 = vmul.f32 0.0012755102, %v2539_v57  ;;  %v4441_v57 = vld [vmem:[%s5360_s5 + $0x30] sm:$0xff] }
 0x580   :  { %2772 = vmatpush.bf16.msra.mxu0 %v4441_v57 }
 0x581   :  { %v2541_v30 = vsub.f32 %v2525_v24, %v2540_v34 }
 0x583   :  { %v2542_v36 = vmul.f32 %v4046_v6, %v2541_v30  ;;  %v4439_v30 = vld [vmem:[%s5360_s5 + $0x20] sm:$0xff] }
 0x585   :  { %v2543_v31 = vmul.f32 %v2542_v36, %v2542_v36  ;;  %v4438_v36 = vld [vmem:[%s5360_s5 + $0x18] sm:$0xff] }
 0x587   :  { %v2544_v50 = vrot.slane %v2543_v31, 4 }
 0x589   :  { %v2545_v23 = vadd.f32 %v2544_v50, %v2543_v31  ;;  %v4437_v31 = vld [vmem:[%s5360_s5 + $0x10] sm:$0xff] }
 0x58b   :  { %v2546_v46 = vrot.slane %v2545_v23, 2 }
 0x58d   :  { %v2547_v37 = vadd.f32 %v2546_v46, %v2545_v23  ;;  %v4436_v23 = vld [vmem:[%s5360_s5 + $0x8] sm:$0xff] }
 0x58f   :  { %v2548_v35 = vrot.slane %v2547_v37, 1 }
 0x591   :  { %v2549_v38 = vadd.f32 %v2548_v35, %v2547_v37  ;;  %v4435_v35 = vld [vmem:[%s5360_s5] sm:$0xff] }
 0x593   :  { %2550 = vadd.xlane.f32.xlu2 %v2549_v38 }
 0x606   :  { %v2551_v49 = vpop.xlane.xlu2 %2550 }
 0x607   :  { %v2552_v52 = vmul.f32 0.0012755102, %v2551_v49 }
 0x609   :  { %v2554_v53 = vadd.f32 1e-05, %v2552_v52  ;;  %v2697_v52 = vstv %s4083_s2 }
 0x60b   :  { %4481 = vrsqrt.f32 %v2554_v53  ;;  %vm2561_vm11 = vweird.f32 %v2554_v53 }
 0x611   :  { %v4482_v58 = vpop.eup %4481 }
 0x612   :  { %v2556_v59 = vmul.f32 %v4482_v58, %v2554_v53  ;;  %vm2562_vm10 = vweird.f32 %v4482_v58 }
 0x613   :  { %vm2563_vm12 = vmor %vm2561_vm11, %vm2562_vm10 }
 0x614   :  { %v2557_v60 = vmul.f32 %v4482_v58, %v2556_v59 }
 0x616   :  { %v2558_v61 = vmul.f32 0.5, %v2557_v60 }
 0x618   :  { %v2559_v62 = vsub.f32 1.5, %v2558_v61 }
 0x61a   :  { %v2560_v44 = vmul.f32 %v4482_v58, %v2559_v62  ;;  %v4463_v62 = vld [vmem:[%s5366_s11] ss:$0 sm:$0xff]  ;;  %s4117_s11 = sld [smem:[#allocation8 + $0x4]] }
 0x61c   :  { %v2564_v1 = vsel %vm2563_vm12, %v4482_v58, %v2560_v44  ;;  %v4116_v44 = vsel %vm2784_vm1, 1.0, %v4609_v43 }
 0x61d   :  { %v2566_v2 = vmul.f32 %v2565_v63, %v2564_v1 }
 0x61f   :  { %v2568_v4 = vmul.f32 %v2566_v2, %v2540_v34  ;;  %v2571_v8 = vmul.f32 %v2566_v2, %v2525_v24  ;;  %v4440_v34 = vld [vmem:[%s5360_s5 + $0x28] sm:$0xff] }
 0x620   :  { %2773 = vmatpush.bf16.msra.mxu0 %v4440_v34  ;;  %v2821_v34 = vstv %s4117_s11 }
 0x621   :  { %v2570_v5 = vsub.f32 %v2569_v3, %v2568_v4 }
 0x623   :  { %v2572_v9 = vadd.f32 %v2571_v8, %v2570_v5 }
 0x624   :  { %2774 = vmatpush.bf16.msra.mxu0 %v4439_v30 }
 0x625   :  { %4483 = vtanh.f32 %v2572_v9 }
 0x628   :  { %2775 = vmatpush.bf16.msra.mxu0 %v4438_v36 }
 0x62b   :  { %v4484_v10 = vpop.eup %4483 }
 0x62c   :  { %v2574_v11 = vpack.c.bf16 %v4484_v10, %v4484_v10  ;;  %2776 = vmatpush.bf16.msra.mxu0 %v4437_v31 }
 0x62e   :  { %2651 = vmatmul.bf16.vlgmr.msrb.gmra.mxu2 %v2574_v11 }
 0x630   :  { %2777 = vmatpush.bf16.msra.mxu0 %v4436_v23 }
 0x634   :  { %2778 = vmatpush.bf16.msra.mxu0 %v4435_v35 }
 0x6b1   :  { %v2652_v13 = vpop.f32.mrf.mxu2 }
 0x6b2   :  { %v2653_v16 = vadd.f32 %v4462_v12, %v2652_v13 }
 0x6b4   :  { %v2659_v17 = vmul.f32 %v4081_v14, %v2653_v16 }
 0x6b6   :  { %v2660_v18 = vrot.slane %v2659_v17, 4 }
 0x6b8   :  { %v2661_v19 = vadd.f32 %v2660_v18, %v2659_v17 }
 0x6b9   :  { %v2654_v15 = vpop.f32.mrf.mxu2 }
 0x6ba   :  { %v2662_v55 = vrot.slane %v2661_v19, 2 }
 0x6bc   :  { %v2663_v20 = vadd.f32 %v2662_v55, %v2661_v19 }
 0x6be   :  { %v2664_v21 = vrot.slane %v2663_v20, 1 }
 0x6c0   :  { %v2665_v54 = vadd.f32 %v2664_v21, %v2663_v20  ;;  %v4450_v20 = vld [vmem:[#allocation6 + $0x38] sm:$0xff]  ;;  %v4449_v21 = vld [vmem:[#allocation6 + $0x30] sm:$0xff] }
 0x6c1   :  { %2899 = vmatpush.bf16.msrb.mxu3 %v4450_v20 }
 0x6c2   :  { %2666 = vadd.xlane.f32.xlu0 %v2665_v54  ;;  %v4448_v54 = vld [vmem:[#allocation6 + $0x28] sm:$0xff] }
 0x6c5   :  { %2900 = vmatpush.bf16.msrb.mxu3 %v4449_v21 }
 0x6c9   :  { %2901 = vmatpush.bf16.msrb.mxu3 %v4448_v54 }
 0x735   :  { %v2667_v22 = vpop.xlane.xlu0 %2666 }
 0x736   :  { %v2668_v6 = vmul.f32 0.0025510204, %v2667_v22  ;;  %v4447_v22 = vld [vmem:[#allocation6 + $0x20] sm:$0xff] }
 0x737   :  { %2902 = vmatpush.bf16.msrb.mxu3 %v4447_v22 }
 0x738   :  { %v2669_v24 = vsub.f32 %v2653_v16, %v2668_v6 }
 0x73a   :  { %v2670_v26 = vmul.f32 %v4081_v14, %v2669_v24  ;;  %v4445_v24 = vld [vmem:[#allocation6 + $0x10] sm:$0xff] }
 0x73c   :  { %v2671_v27 = vmul.f32 %v2670_v26, %v2670_v26 }
 0x73e   :  { %v2672_v7 = vrot.slane %v2671_v27, 4 }
 0x740   :  { %v2673_v28 = vadd.f32 %v2672_v7, %v2671_v27  ;;  %v4444_v27 = vld [vmem:[#allocation6 + $0x8] sm:$0xff] }
 0x742   :  { %v2674_v0 = vrot.slane %v2673_v28, 2 }
 0x744   :  { %v2675_v29 = vadd.f32 %v2674_v0, %v2673_v28  ;;  %v4443_v0 = vld [vmem:[#allocation6] sm:$0xff] }
 0x746   :  { %v2676_v32 = vrot.slane %v2675_v29, 1 }
 0x748   :  { %v2677_v51 = vadd.f32 %v2676_v32, %v2675_v29 }
 0x74a   :  { %2678 = vadd.xlane.f32.xlu1 %v2677_v51 }
 0x7bd   :  { %v2679_v50 = vpop.xlane.xlu1 %2678 }
 0x7be   :  { %v2680_v46 = vmul.f32 0.0025510204, %v2679_v50  ;;  %v2825_v50 = vstv %s4118_s8 }
 0x7c0   :  { %v2682_v37 = vadd.f32 1e-05, %v2680_v46 }
 0x7c2   :  { %4485 = vrsqrt.f32 %v2682_v37  ;;  %vm2689_vm15 = vweird.f32 %v2682_v37 }
 0x7c8   :  { %v4486_v38 = vpop.eup %4485 }
 0x7c9   :  { %v2684_v39 = vmul.f32 %v4486_v38, %v2682_v37  ;;  %vm2690_vm14 = vweird.f32 %v4486_v38 }
 0x7ca   :  { %vm2691_vm0 = vmor %vm2689_vm15, %vm2690_vm14 }
 0x7cb   :  { %v2685_v40 = vmul.f32 %v4486_v38, %v2684_v39 }
 0x7cd   :  { %v2686_v41 = vmul.f32 0.5, %v2685_v40  ;;  %v4464_v40 = vld [vmem:[%s5367_s12] ss:$0 sm:$0xff] }
 0x7cf   :  { %v2687_v42 = vsub.f32 1.5, %v2686_v41 }
 0x7d1   :  { %v2688_v48 = vmul.f32 %v4486_v38, %v2687_v42 }
 0x7d3   :  { %v2692_v49 = vsel %vm2691_vm0, %v4486_v38, %v2688_v48 }
 0x7d4   :  { %v2694_v45 = vmul.f32 %v2693_v47, %v2692_v49 }
 0x7d6   :  { %v2696_v53 = vmul.f32 %v2694_v45, %v2668_v6  ;;  %v2699_v56 = vmul.f32 %v2694_v45, %v2653_v16  ;;  %v4446_v6 = vld [vmem:[#allocation6 + $0x18] sm:$0xff] }
 0x7d7   :  { %2903 = vmatpush.bf16.msrb.mxu3 %v4446_v6 }
 0x7d8   :  { %v2698_v58 = vsub.f32 %v2697_v52, %v2696_v53 }
 0x7da   :  { %v2700_v59 = vadd.f32 %v2699_v56, %v2698_v58 }
 0x7db   :  { %2904 = vmatpush.bf16.msrb.mxu3 %v4445_v24 }
 0x7dc   :  { %4487 = vtanh.f32 %v2700_v59 }
 0x7df   :  { %2905 = vmatpush.bf16.msrb.mxu3 %v4444_v27 }
 0x7e2   :  { %v4488_v60 = vpop.eup %4487 }
 0x7e3   :  { %v2702_v61 = vpack.c.bf16 %v4488_v60, %v4488_v60  ;;  %2906 = vmatpush.bf16.msrb.mxu3 %v4443_v0 }
 0x7e5   :  { %2779 = vmatmul.bf16.vlgmr.msra.gmra.mxu0 %v2702_v61 }
 0x862   :  { %v2780_v63 = vpop.f32.mrf.mxu0 }
 0x863   :  { %v2781_v1 = vadd.f32 %v4463_v62, %v2780_v63 }
 0x865   :  { %v2787_v2 = vmul.f32 %v4116_v44, %v2781_v1 }
 0x867   :  { %v2788_v3 = vrot.slane %v2787_v2, 4 }
 0x869   :  { %v2789_v4 = vadd.f32 %v2788_v3, %v2787_v2 }
 0x86a   :  { %v2782_v5 = vpop.f32.mrf.mxu0 }
 0x86b   :  { %v2790_v8 = vrot.slane %v2789_v4, 2 }
 0x86d   :  { %v2791_v9 = vadd.f32 %v2790_v8, %v2789_v4 }
 0x86f   :  { %v2792_v10 = vrot.slane %v2791_v9, 1 }
 0x871   :  { %v2793_v11 = vadd.f32 %v2792_v10, %v2791_v9 }
 0x873   :  { %2794 = vadd.xlane.f32.xlu2 %v2793_v11 }
 0x8e6   :  { %v2795_v12 = vpop.xlane.xlu2 %2794 }
 0x8e7   :  { %v2796_v13 = vmul.f32 0.00390625, %v2795_v12 }
 0x8e9   :  { %v2797_v14 = vsub.f32 %v2781_v1, %v2796_v13 }
 0x8eb   :  { %v2798_v16 = vmul.f32 %v4116_v44, %v2797_v14 }
 0x8ed   :  { %v2799_v17 = vmul.f32 %v2798_v16, %v2798_v16 }
 0x8ef   :  { %v2800_v18 = vrot.slane %v2799_v17, 4 }
 0x8f1   :  { %v2801_v25 = vadd.f32 %v2800_v18, %v2799_v17 }
 0x8f3   :  { %v2802_v19 = vrot.slane %v2801_v25, 2 }
 0x8f5   :  { %v2803_v15 = vadd.f32 %v2802_v19, %v2801_v25 }
 0x8f7   :  { %v2804_v43 = vrot.slane %v2803_v15, 1 }
 0x8f9   :  { %v2805_v55 = vadd.f32 %v2804_v43, %v2803_v15 }
 0x8fb   :  { %2806 = vadd.xlane.f32.xlu0 %v2805_v55 }
 0x96e   :  { %v2807_v26 = vpop.xlane.xlu0 %2806 }
 0x96f   :  { %v2808_v7 = vmul.f32 0.00390625, %v2807_v26 }
 0x971   :  { %v2810_v28 = vadd.f32 1e-05, %v2808_v7 }
 0x973   :  { %4489 = vrsqrt.f32 %v2810_v28  ;;  %vm2817_vm3 = vweird.f32 %v2810_v28 }
 0x979   :  { %v4490_v29 = vpop.eup %4489 }
 0x97a   :  { %v2812_v32 = vmul.f32 %v4490_v29, %v2810_v28  ;;  %vm2818_vm2 = vweird.f32 %v4490_v29 }
 0x97b   :  { %vm2819_vm4 = vmor %vm2817_vm3, %vm2818_vm2 }
 0x97c   :  { %v2813_v51 = vmul.f32 %v4490_v29, %v2812_v32 }
 0x97e   :  { %v2814_v33 = vmul.f32 0.5, %v2813_v51 }
 0x980   :  { %v2815_v57 = vsub.f32 1.5, %v2814_v33 }
 0x982   :  { %v2816_v30 = vmul.f32 %v4490_v29, %v2815_v57 }
 0x984   :  { %v2820_v36 = vsel %vm2819_vm4, %v4490_v29, %v2816_v30 }
 0x985   :  { %v2822_v31 = vmul.f32 %v2821_v34, %v2820_v36 }
 0x987   :  { %v2824_v23 = vmul.f32 %v2822_v31, %v2796_v13  ;;  %v2827_v46 = vmul.f32 %v2822_v31, %v2781_v1 }
 0x989   :  { %v2826_v37 = vsub.f32 %v2825_v50, %v2824_v23 }
 0x98b   :  { %v2828_v35 = vadd.f32 %v2827_v46, %v2826_v37 }
 0x98d   :  { %4491 = vtanh.f32 %v2828_v35 }
 0x993   :  { %v4492_v38 = vpop.eup %4491 }
 0x994   :  { %v2830_v39 = vpack.c.bf16 %v4492_v38, %v4492_v38 }
 0x996   :  { %2907 = vmatmul.bf16.vlgmr.msrb.gmra.mxu3 %v2830_v39 }
 0xa19   :  { %v2908_v41 = vpop.f32.mrf.mxu3 }
 0xa1a   :  { %v2909_v42 = vadd.f32 %v4464_v40, %v2908_v41 }
 0xa1c   :  { %4493 = vtanh.f32 %v2909_v42 }
 0xa21   :  { %v2910_v47 = vpop.f32.mrf.mxu3 }
 0xa22   :  { %v4494_v48 = vpop.eup %4493 }
 0xa23   :  { %2913 = vst [vmem:[#allocation11] sm:$0xff] %v4494_v48 }
 0xa24   :  { %2924 = dma.vmem_to_hbm [thread:$0]  %s2920_s29, 128, %s2922_s16, [#allocation4]  }
 0xa25   :  { %4599 = dma.done.wait [#allocation4], 128  }
 0xa26   :  { %4600 = vsyncadd [#allocation4], 4294967168 }
 0xa27   :  { %2929 = vsyncpa [#allocation3], 1 }
 0xa28   :  { %2930 = vsyncpa [#allocation7], 1 }
 0xa29   :  { %2931 = vsyncpa [#allocation4], 1 }
 0xa2a   :  { %2932 = vsyncpa [#allocation5], 1 }
 0xa2b   :  { %2933 = vsyncpa [#allocation10], 1 }

</bundles_post_ra>
